<compile_context>
chip_gen: v7x
topology: tpu7x:2x2x1
jax: 0.10.0
libtpu: 0.0.40
codegen_flags: <defaults>
</compile_context>

<pallas_src>
import functools

import jax
import jax.numpy as jnp
from jax import lax
from jax.experimental import pallas as pl
from jax.experimental.pallas import tpu as pltpu
import numpy as np

CONV_K = 5
POOL = 2
N_OFF = POOL * POOL                   # 4 pool offsets
IN_H = IN_W = 28
CONV_H = CONV_W = IN_H - CONV_K + 1   # 24
POOL_H = POOL_W = CONV_H // POOL      # 12
FLAT = POOL_H * POOL_W                # 144 (matches nn.Linear(1*12*12, out_ch))
LANES = 128
BLOCK_B = 128                         # samples per grid step (lane axis)


def _net_kernel(cb_ref, wt_ref, x_ref, fw_ref, fb_ref, out_ref, conv_ref, *, flat):
    """One grid step = BLOCK_B samples; batch lives on the lane axis.

    cb_ref  : (1,)                 f32  SMEM  conv bias (scalar)
    wt_ref  : (4*flat, C*H*W)      bf16       pool-ordered Toeplitz conv weights
    x_ref   : (C*H*W, BLOCK_B)     bf16       raw flattened inputs, batch-minor
    fw_ref  : (OUT_PAD, flat)      bf16       FC weight (zero-padded rows)
    fb_ref  : (OUT_PAD, 1)         f32        FC bias   (zero-padded)
    out_ref : (OUT_PAD, BLOCK_B)   f32        logits in (class, sample) layout
    conv_ref: (4*flat, BLOCK_B)    f32  VMEM  scratch: all conv outputs
    """
    # Whole conv as ONE MXU matmul (bf16 operands, f32 accumulate).
    conv_ref[...] = jnp.dot(wt_ref[...], x_ref[...],
                            preferred_element_type=jnp.float32)

    # 2x2 max-pool = max over the four 144-row offset blocks.  Bias-add and
    # ReLU commute with max (monotone), so apply them once afterwards.
    m01 = jnp.maximum(conv_ref[0 * flat:1 * flat], conv_ref[1 * flat:2 * flat])
    m23 = jnp.maximum(conv_ref[2 * flat:3 * flat], conv_ref[3 * flat:4 * flat])
    pooled = jnp.maximum(jnp.maximum(m01, m23) + cb_ref[0], 0.0)   # (flat, 128)

    # FC on the MXU, lane-dense (OUT_PAD, 128) f32 store.
    out = jnp.dot(fw_ref[...], pooled.astype(jnp.bfloat16),
                  preferred_element_type=jnp.float32) + fb_ref[...]
    out_ref[...] = out


@jax.jit
def net_forward(x, conv_w, conv_b, fc_w, fc_b):
    """Matches PyTorch: fc1(flatten(pool(relu(conv1(x))))).

    x: (B, C, 28, 28); conv_w: (1, C, 5, 5); conv_b: (1,)
    fc_w: (out_ch, 144); fc_b: (out_ch,)  ->  (B, out_ch)
    """
    B, C, H, W = x.shape
    out_ch = fc_w.shape[0]
    OH, OW = H - CONV_K + 1, W - CONV_K + 1
    PH, PW = OH // POOL, OW // POOL
    flat = PH * PW                                  # 144 for 28x28 inputs
    K = C * H * W
    out_pad = ((out_ch + LANES - 1) // LANES) * LANES
    b_pad = ((B + BLOCK_B - 1) // BLOCK_B) * BLOCK_B
    nb = b_pad // BLOCK_B

    # Only the SMALL raw tensor gets the batch-to-lane transpose (bf16,
    # ~C*1.6 KB/sample).  No im2col / super-patch expansion in HBM.
    xp = x.astype(jnp.bfloat16).reshape(B, K).T               # (K, B)
    xp = jnp.pad(xp, ((0, 0), (0, b_pad - B)))                # (K, b_pad)

    # Pool-ordered Toeplitz conv matrix (4*flat, K), built from two static 0/1
    # banded indicators with a tiny einsum (exact values, exact zeros).
    band_h = jnp.asarray((np.arange(H)[None, :, None] ==
                          np.arange(OH)[:, None, None] +
                          np.arange(CONV_K)[None, None, :]).astype(np.float32))
    band_w = jnp.asarray((np.arange(W)[None, :, None] ==
                          np.arange(OW)[:, None, None] +
                          np.arange(CONV_K)[None, None, :]).astype(np.float32))
    # t2[oh, ow, c, ih, iw] = conv_w[0, c, ih-oh, iw-ow] (0 outside the window)
    t2 = jnp.einsum('cde,xad,ybe->xycab',
                    conv_w[0].astype(jnp.float32), band_h, band_w)
    t2 = t2.reshape(PH, POOL, PW, POOL, C, H, W)     # (i, pi, j, pj, c, ih, iw)
    wt = t2.transpose(1, 3, 0, 2, 4, 5, 6).reshape(N_OFF * flat, K)
    wt = wt.astype(jnp.bfloat16)

    cb = conv_b.reshape(-1).astype(jnp.float32)                      # (1,)
    fwp = jnp.zeros((out_pad, flat), jnp.bfloat16).at[:out_ch].set(
        fc_w.astype(jnp.bfloat16))                                   # (128, 144)
    fbp = jnp.zeros((out_pad, 1), jnp.float32).at[:out_ch, 0].set(
        fc_b.astype(jnp.float32))                                    # (128, 1)

    kernel = functools.partial(_net_kernel, flat=flat)

    out = pl.pallas_call(
        kernel,
        out_shape=jax.ShapeDtypeStruct((out_pad, b_pad), jnp.float32),
        grid=(nb,),
        in_specs=[
            pl.BlockSpec(memory_space=pltpu.MemorySpace.SMEM),        # conv bias
            pl.BlockSpec((N_OFF * flat, K), lambda b: (0, 0)),        # Wt (resident)
            pl.BlockSpec((K, BLOCK_B), lambda b: (0, b)),             # x block
            pl.BlockSpec((out_pad, flat), lambda b: (0, 0)),          # fc weight
            pl.BlockSpec((out_pad, 1), lambda b: (0, 0)),             # fc bias
        ],
        out_specs=pl.BlockSpec((out_pad, BLOCK_B), lambda b: (0, b)),
        scratch_shapes=[pltpu.VMEM((N_OFF * flat, BLOCK_B), jnp.float32)],
        compiler_params=pltpu.CompilerParams(
            dimension_semantics=("parallel",)),
    )(cb, wt, xp, fwp, fbp)

    return out.T[:B, :out_ch]


def _reference(x, conv_w, conv_b, fc_w, fc_b):
    """Pure-JAX f32 reference of the PyTorch forward pass (correctness check)."""
    y = lax.conv_general_dilated(
        x.astype(jnp.float32), conv_w.astype(jnp.float32),
        window_strides=(1, 1), padding="VALID",
        dimension_numbers=("NCHW", "OIHW", "NCHW"))
    y = y + conv_b.reshape(1, -1, 1, 1)
    y = jnp.maximum(y, 0.0)
    y = lax.reduce_window(y, -jnp.inf, lax.max,
                          window_dimensions=(1, 1, POOL, POOL),
                          window_strides=(1, 1, POOL, POOL),
                          padding="VALID")
    flat = y.reshape(y.shape[0], -1)
    return flat @ fc_w.T.astype(jnp.float32) + fc_b


if __name__ == "__main__":
    B, C, out_ch = 2, 3, 10
    key = jax.random.PRNGKey(0)
    kx, kcw, kcb, kfw, kfb = jax.random.split(key, 5)

    # Deterministic synthetic parameters (shapes from Net.__init__).
    x = jax.random.normal(kx, (B, C, IN_H, IN_W), dtype=jnp.float32)
    conv_w = jax.random.normal(kcw, (1, C, CONV_K, CONV_K), dtype=jnp.float32) * 0.1
    conv_b = jax.random.normal(kcb, (1,), dtype=jnp.float32) * 0.1
    fc_w = jax.random.normal(kfw, (out_ch, FLAT), dtype=jnp.float32) * 0.05
    fc_b = jax.random.normal(kfb, (out_ch,), dtype=jnp.float32) * 0.05

    out = jax.block_until_ready(net_forward(x, conv_w, conv_b, fc_w, fc_b))
    ref = jax.block_until_ready(_reference(x, conv_w, conv_b, fc_w, fc_b))
    assert out.shape == (B, out_ch)
    # bf16 weights + activations on the MXU path (f32 accumulate) -> loose tol.
    np.testing.assert_allclose(np.asarray(out), np.asarray(ref),
                               atol=3e-2, rtol=2e-2)
    print("KERNEL_OK")
</pallas_src>

<mosaic_0001>
module attributes {stable_mosaic.version = 11 : i64} {
  func.func @_net_kernel(%arg0: i32, %arg1: memref<1xf32, #tpu.memory_space<smem>>, %arg2: memref<576x2352xbf16, #tpu.memory_space<vmem>>, %arg3: memref<2352x128xbf16, #tpu.memory_space<vmem>>, %arg4: memref<128x144xbf16, #tpu.memory_space<vmem>>, %arg5: memref<128x1xf32, #tpu.memory_space<vmem>>, %arg6: memref<128x128xf32, #tpu.memory_space<vmem>>, %arg7: memref<576x128xf32, #tpu.memory_space<vmem>>) attributes {dimension_semantics = [#tpu.dimension_semantics<parallel>], iteration_bounds = array<i64: 1>, scalar_prefetch = 0 : i64, scratch_operands = 1 : i64, tpu.core_type = #tpu.core_type<tc>, window_params = [{transform_indices = @transform_0, window_bounds = array<i64: 1>}, {pipeline_mode = #tpu.pipeline_mode<synchronous>, transform_indices = @transform_1, window_bounds = array<i64: 576, 2352>}, {transform_indices = @transform_2, window_bounds = array<i64: 2352, 128>}, {pipeline_mode = #tpu.pipeline_mode<synchronous>, transform_indices = @transform_3, window_bounds = array<i64: 128, 144>}, {pipeline_mode = #tpu.pipeline_mode<synchronous>, transform_indices = @transform_4, window_bounds = array<i64: 128, 1>}, {transform_indices = @transform_5, window_bounds = array<i64: 128, 128>}]} {
    %c0 = arith.constant 0 : index
    %c0_0 = arith.constant 0 : index
    %0 = vector.load %arg2[%c0, %c0_0] : memref<576x2352xbf16, #tpu.memory_space<vmem>>, vector<576x2352xbf16>
    %c0_1 = arith.constant 0 : index
    %c0_2 = arith.constant 0 : index
    %1 = vector.load %arg3[%c0_1, %c0_2] : memref<2352x128xbf16, #tpu.memory_space<vmem>>, vector<2352x128xbf16>
    %cst = arith.constant dense<0.000000e+00> : vector<576x128xf32>
    %2 = tpu.matmul %0, %1, %cst {dimension_numbers = #tpu.dot_dimension_numbers<[1], [0], [0], [1], [0, 0, 1, 1], [], []>} : vector<576x2352xbf16>, vector<2352x128xbf16>, vector<576x128xf32> -> vector<576x128xf32>
    %c0_3 = arith.constant 0 : index
    %c0_4 = arith.constant 0 : index
    %3 = vector.load %arg7[%c0_3, %c0_4] : memref<576x128xf32, #tpu.memory_space<vmem>>, vector<576x128xf32>
    tpu.vector_store %arg7[%c0_3, %c0_4], %2 {strides = array<i32>} : memref<576x128xf32, #tpu.memory_space<vmem>>, vector<576x128xf32>,
    %c0_5 = arith.constant 0 : index
    %c0_6 = arith.constant 0 : index
    %4 = vector.load %arg7[%c0_5, %c0_6] : memref<576x128xf32, #tpu.memory_space<vmem>>, vector<144x128xf32>
    %c144 = arith.constant 144 : index
    %c0_7 = arith.constant 0 : index
    %5 = vector.load %arg7[%c144, %c0_7] : memref<576x128xf32, #tpu.memory_space<vmem>>, vector<144x128xf32>
    %6 = arith.maximumf %4, %5 : vector<144x128xf32>
    %c288 = arith.constant 288 : index
    %c0_8 = arith.constant 0 : index
    %7 = vector.load %arg7[%c288, %c0_8] : memref<576x128xf32, #tpu.memory_space<vmem>>, vector<144x128xf32>
    %c432 = arith.constant 432 : index
    %c0_9 = arith.constant 0 : index
    %8 = vector.load %arg7[%c432, %c0_9] : memref<576x128xf32, #tpu.memory_space<vmem>>, vector<144x128xf32>
    %9 = arith.maximumf %7, %8 : vector<144x128xf32>
    %10 = arith.maximumf %6, %9 : vector<144x128xf32>
    %c0_10 = arith.constant 0 : index
    %11 = memref.load %arg1[%c0_10] : memref<1xf32, #tpu.memory_space<smem>>
    %12 = vector.broadcast %11 : f32 to vector<144x128xf32>
    %13 = arith.addf %10, %12 : vector<144x128xf32>
    %cst_11 = arith.constant 0.000000e+00 : f32
    %14 = vector.broadcast %cst_11 : f32 to vector<144x128xf32>
    %15 = arith.maximumf %13, %14 : vector<144x128xf32>
    %c0_12 = arith.constant 0 : index
    %c0_13 = arith.constant 0 : index
    %16 = vector.load %arg4[%c0_12, %c0_13] : memref<128x144xbf16, #tpu.memory_space<vmem>>, vector<128x144xbf16>
    %17 = arith.truncf %15 : vector<144x128xf32> to vector<144x128xbf16>
    %cst_14 = arith.constant dense<0.000000e+00> : vector<128x128xf32>
    %18 = tpu.matmul %16, %17, %cst_14 {dimension_numbers = #tpu.dot_dimension_numbers<[1], [0], [0], [1], [0, 0, 1, 1], [], []>} : vector<128x144xbf16>, vector<144x128xbf16>, vector<128x128xf32> -> vector<128x128xf32>
    %c0_15 = arith.constant 0 : index
    %c0_16 = arith.constant 0 : index
    %19 = vector.load %arg5[%c0_15, %c0_16] : memref<128x1xf32, #tpu.memory_space<vmem>>, vector<128x1xf32>
    %20 = vector.broadcast %19 : vector<128x1xf32> to vector<128x128xf32>
    %21 = arith.addf %18, %20 : vector<128x128xf32>
    %c0_17 = arith.constant 0 : index
    %c0_18 = arith.constant 0 : index
    %22 = vector.load %arg6[%c0_17, %c0_18] : memref<128x128xf32, #tpu.memory_space<vmem>>, vector<128x128xf32>
    tpu.vector_store %arg6[%c0_17, %c0_18], %21 {strides = array<i32>} : memref<128x128xf32, #tpu.memory_space<vmem>>, vector<128x128xf32>,
    return
  }
  func.func @transform_0(%arg0: i32) -> i32 {
    %c0_i32 = arith.constant 0 : i32
    %c0_i32_0 = arith.constant 0 : i32
    return %c0_i32 : i32
  }
  func.func @transform_1(%arg0: i32) -> (i32, i32) {
    %c0_i32 = arith.constant 0 : i32
    %c0_i32_0 = arith.constant 0 : i32
    %c0_i32_1 = arith.constant 0 : i32
    return %c0_i32, %c0_i32_0 : i32, i32
  }
  func.func @transform_2(%arg0: i32) -> (i32, i32) {
    %c0_i32 = arith.constant 0 : i32
    %c0_i32_0 = arith.constant 0 : i32
    return %c0_i32, %arg0 : i32, i32
  }
  func.func @transform_3(%arg0: i32) -> (i32, i32) {
    %c0_i32 = arith.constant 0 : i32
    %c0_i32_0 = arith.constant 0 : i32
    %c0_i32_1 = arith.constant 0 : i32
    return %c0_i32, %c0_i32_0 : i32, i32
  }
  func.func @transform_4(%arg0: i32) -> (i32, i32) {
    %c0_i32 = arith.constant 0 : i32
    %c0_i32_0 = arith.constant 0 : i32
    %c0_i32_1 = arith.constant 0 : i32
    return %c0_i32, %c0_i32_0 : i32, i32
  }
  func.func @transform_5(%arg0: i32) -> (i32, i32) {
    %c0_i32 = arith.constant 0 : i32
    %c0_i32_0 = arith.constant 0 : i32
    return %c0_i32, %arg0 : i32, i32
  }
}

</mosaic_0001>

<bundles_post_ra>
// kernel: net_forward.1
= control target key start
LH: loop header
LB: loop body
LE: loop exit
PB: predicated region body
PF: predicated region fallthrough
CT: control target
= control target key end

     0   :  { %v16056_v0 = vmov 0   ;;  %vm5338_vm0 = vcmask 392192   ;;  %vm9086_vm1 = vcmask 130048   ;;  %s16050_s2 = inlined_call_operand.vmem [shape: bf16[2352,128], index: 2, kind: input, shape index: {}]   ;;  %s16051_s1 = inlined_call_operand.vmem [shape: bf16[576,2352], index: 1, kind: input, shape index: {}]   ;;  %s16052_s3 = inlined_call_operand.vmem [shape: bf16[128,144], index: 3, kind: input, shape index: {}]   ;;  %s16053_s0 = inlined_call_operand.<no memory space> [shape: f32[1], index: 0, kind: input, shape index: {}]   ;;  %s16054_s4 = inlined_call_operand.vmem [shape: f32[128,1], index: 4, kind: input, shape index: {}]   ;;  %s16055_s5 = inlined_call_operand.vmem [shape: f32[128,128], index: 5, kind: output, shape index: {}]  }
   0x1   :  { %5447 = vmatprep.subr.bf16.mxu1 %v16056_v0  ;;  %6731 = vmatprep.subr.bf16.mxu0 %v16056_v0  ;;  %v11351_v1 = vld [vmem:[%s16050_s2] sm:$0xff]   ;;  %v11353_v3 = vld [vmem:[%s16050_s2 + $0x8] sm:$0xff]   ;;  %v11355_v5 = vld [vmem:[%s16050_s2 + $0x10] sm:$0xff]  }
   0x2   :  { %v11352_v2 = vld [vmem:[%s16050_s2 + $0x200] sm:$0xff]   ;;  %11349 = vset.pattern.permute.xlu0 %v16056_v0  ;;  %11350 = vset.pattern.permute.xlu1 %v16056_v0  ;;  %v11354_v4 = vld [vmem:[%s16050_s2 + $0x208] sm:$0xff]   ;;  %v11356_v6 = vld [vmem:[%s16050_s2 + $0x210] sm:$0xff]  }
   0x3   :  { %5448 = vmatpush1.bf16.msra.mxu1 %v11351_v1  ;;  %6732 = vmatpush1.bf16.msra.mxu0 %v11352_v2  ;;  %v11357_v7 = vld [vmem:[%s16050_s2 + $0x18] sm:$0xff]   ;;  %v11359_v9 = vld [vmem:[%s16050_s2 + $0x20] sm:$0xff]   ;;  %v11361_v11 = vld [vmem:[%s16050_s2 + $0x28] sm:$0xff]  }
   0x4   :  { %5449 = vmatprep.subr.bf16.mxu1 %v16056_v0  ;;  %6733 = vmatprep.subr.bf16.mxu0 %v16056_v0  ;;  %v11358_v8 = vld [vmem:[%s16050_s2 + $0x218] sm:$0xff]   ;;  %v11360_v10 = vld [vmem:[%s16050_s2 + $0x220] sm:$0xff]   ;;  %v11362_v12 = vld [vmem:[%s16050_s2 + $0x228] sm:$0xff]  }
   0x5   :  { %v11363_v13 = vld [vmem:[%s16050_s2 + $0x30] sm:$0xff]   ;;  %v11365_v15 = vld [vmem:[%s16050_s2 + $0x38] sm:$0xff]   ;;  %v11367_v17 = vld [vmem:[%s16050_s2 + $0x40] sm:$0xff]  }
   0x6   :  { %v11364_v14 = vld [vmem:[%s16050_s2 + $0x230] sm:$0xff]   ;;  %v11366_v16 = vld [vmem:[%s16050_s2 + $0x238] sm:$0xff]   ;;  %v11368_v18 = vld [vmem:[%s16050_s2 + $0x240] sm:$0xff]  }
   0x7   :  { %5450 = vmatpush1.bf16.msra.mxu1 %v11353_v3  ;;  %6734 = vmatpush1.bf16.msra.mxu0 %v11354_v4  ;;  %v11385_v19 = vld [vmem:[%s16051_s1 + $0x4] ss:$76 sps:$4 sm:$0xff]   ;;  %v11369_v20 = vld [vmem:[%s16050_s2 + $0x48] sm:$0xff]   ;;  %v11373_v25 = vld [vmem:[%s16050_s2 + $0x58] sm:$0xff]  }
   0x8   :  { %5451 = vmatprep.subr.bf16.mxu1 %v16056_v0  ;;  %6735 = vmatprep.subr.bf16.mxu0 %v16056_v0  ;;  %v11388_v21 = vld [vmem:[%s16051_s1 + $0x24] ss:$76 sps:$4 sm:$0xff]   ;;  %v11370_v22 = vld [vmem:[%s16050_s2 + $0x248] sm:$0xff]   ;;  %v11374_v26 = vld [vmem:[%s16050_s2 + $0x258] sm:$0xff]  }
   0x9   :  { %5479 = vmatprep.mubr.bf16.mxu1 %v11385_v19  ;;  %6763 = vmatprep.mubr.bf16.mxu0 %v11388_v21  ;;  %v11371_v23 = vld [vmem:[%s16050_s2 + $0x50] sm:$0xff]   ;;  %v11375_v27 = vld [vmem:[%s16050_s2 + $0x60] sm:$0xff]   ;;  %v11377_v29 = vld [vmem:[%s16050_s2 + $0x68] sm:$0xff]  }
   0xa   :  { %v11372_v24 = vld [vmem:[%s16050_s2 + $0x250] sm:$0xff]   ;;  %v11376_v28 = vld [vmem:[%s16050_s2 + $0x260] sm:$0xff]   ;;  %v11378_v30 = vld [vmem:[%s16050_s2 + $0x268] sm:$0xff]  }
   0xb   :  { %5452 = vmatpush1.bf16.msra.mxu1 %v11355_v5  ;;  %6736 = vmatpush1.bf16.msra.mxu0 %v11356_v6  ;;  %v11379_v31 = vld [vmem:[%s16050_s2 + $0x70] sm:$0xff]   ;;  %v11381_v33 = vld [vmem:[%s16050_s2 + $0x78] sm:$0xff]   ;;  %v11383_v35 = vld [vmem:[%s16051_s1] ss:$76 sps:$4 sm:$0xff]  }
   0xc   :  { %5453 = vmatprep.subr.bf16.mxu1 %v16056_v0  ;;  %6737 = vmatprep.subr.bf16.mxu0 %v16056_v0  ;;  %v11380_v32 = vld [vmem:[%s16050_s2 + $0x270] sm:$0xff]   ;;  %v11382_v34 = vld [vmem:[%s16050_s2 + $0x278] sm:$0xff]   ;;  %v11386_v36 = vld [vmem:[%s16051_s1 + $0x20] ss:$76 sps:$4 sm:$0xff]  }
   0xd   :  { %v11389_v37 = vld [vmem:[%s16051_s1 + $0x9c] ss:$76 sps:$4 sm:$0xff]   ;;  %v11443_v39 = vld [vmem:[%s16050_s2 + $0x280] sm:$0xff]   ;;  %v11469_v45 = vld [vmem:[%s16050_s2 + $0x290] sm:$0xff]  }
   0xe   :  { %v11391_v38 = vld [vmem:[%s16051_s1 + $0xbc] ss:$76 sps:$4 sm:$0xff]   ;;  %v11393_v41 = vld [vmem:[%s16051_s1 + $0x98] ss:$76 sps:$4 sm:$0xff]   ;;  %v11395_v43 = vld [vmem:[%s16051_s1 + $0x134] ss:$76 sps:$4 sm:$0xff]  }
   0xf   :  { %5454 = vmatpush1.bf16.msra.mxu1 %v11357_v7  ;;  %6738 = vmatpush1.bf16.msra.mxu0 %v11358_v8  ;;  %v11456_v40 = vld [vmem:[%s16050_s2 + $0x288] sm:$0xff]   ;;  %v11394_v42 = vld [vmem:[%s16051_s1 + $0xb8] ss:$76 sps:$4 sm:$0xff]   ;;  %v11397_v44 = vld [vmem:[%s16051_s1 + $0x154] ss:$76 sps:$4 sm:$0xff]  }
  0x10   :  { %5455 = vmatprep.subr.bf16.mxu1 %v16056_v0  ;;  %6739 = vmatprep.subr.bf16.mxu0 %v16056_v0  ;;  %v11399_v46 = vld [vmem:[%s16051_s1 + $0x130] ss:$76 sps:$4 sm:$0xff]   ;;  %v11401_v48 = vld [vmem:[%s16051_s1 + $0x1cc] ss:$76 sps:$4 sm:$0xff]   ;;  %v11405_v51 = vld [vmem:[%s16051_s1 + $0x1c8] ss:$76 sps:$4 sm:$0xff]  }
  0x11   :  { %v11400_v47 = vld [vmem:[%s16051_s1 + $0x150] ss:$76 sps:$4 sm:$0xff]   ;;  %v11403_v50 = vld [vmem:[%s16051_s1 + $0x1ec] ss:$76 sps:$4 sm:$0xff]   ;;  %v11406_v52 = vld [vmem:[%s16051_s1 + $0x1e8] ss:$76 sps:$4 sm:$0xff]  }
  0x12   :  { %v11482_v49 = vld [vmem:[%s16050_s2 + $0x298] sm:$0xff]   ;;  %v11495_v53 = vld [vmem:[%s16050_s2 + $0x80] sm:$0xff]   ;;  %v11509_v59 = vld [vmem:[%s16050_s2 + $0x2a8] sm:$0xff]  }
  0x13   :  { %5456 = vmatpush1.bf16.msra.mxu1 %v11359_v9  ;;  %6740 = vmatpush1.bf16.msra.mxu0 %v11360_v10  ;;  %v11496_v54 = vld [vmem:[%s16050_s2 + $0x2a0] sm:$0xff]   ;;  %v11510_v60 = vld [vmem:[%s16050_s2 + $0x88] sm:$0xff]   ;;  %v11523_v4 = vld [vmem:[%s16050_s2 + $0x2b0] sm:$0xff]  }
  0x14   :  { %5457 = vmatprep.subr.bf16.mxu1 %v16056_v0  ;;  %6741 = vmatprep.subr.bf16.mxu0 %v16056_v0  ;;  %v11407_v55 = vld [vmem:[%s16051_s1 + $0x264] ss:$76 sps:$4 sm:$0xff]   ;;  %v11411_v57 = vld [vmem:[%s16051_s1 + $0x260] ss:$76 sps:$4 sm:$0xff]   ;;  %v11413_v61 = vld [vmem:[%s16051_s1 + $0x2fc] ss:$76 sps:$4 sm:$0xff]  }
  0x15   :  { %v11409_v56 = vld [vmem:[%s16051_s1 + $0x284] ss:$76 sps:$4 sm:$0xff]   ;;  %v11412_v58 = vld [vmem:[%s16051_s1 + $0x280] ss:$76 sps:$4 sm:$0xff]   ;;  %v11415_v62 = vld [vmem:[%s16051_s1 + $0x31c] ss:$76 sps:$4 sm:$0xff]  }
  0x16   :  { %v11417_v63 = vld [vmem:[%s16051_s1 + $0x2f8] ss:$76 sps:$4 sm:$0xff]   ;;  %v11419_v2 = vld [vmem:[%s16051_s1 + $0x394] ss:$76 sps:$4 sm:$0xff]   ;;  %v11423_v6 = vld [vmem:[%s16051_s1 + $0x390] ss:$76 sps:$4 sm:$0xff]  }
  0x17   :  { %5458 = vmatpush1.bf16.msra.mxu1 %v11361_v11  ;;  %6742 = vmatpush1.bf16.msra.mxu0 %v11362_v12  ;;  %v11418_v1 = vld [vmem:[%s16051_s1 + $0x318] ss:$76 sps:$4 sm:$0xff]   ;;  %v11421_v3 = vld [vmem:[%s16051_s1 + $0x3b4] ss:$76 sps:$4 sm:$0xff]   ;;  %v11424_v7 = vld [vmem:[%s16051_s1 + $0x3b0] ss:$76 sps:$4 sm:$0xff]  }
  0x18   :  { %5459 = vmatprep.subr.bf16.mxu1 %v16056_v0  ;;  %6743 = vmatprep.subr.bf16.mxu0 %v16056_v0  ;;  %v11524_v5 = vld [vmem:[%s16050_s2 + $0x90] sm:$0xff]   ;;  %v11425_v8 = vld [vmem:[%s16051_s1 + $0x42c] ss:$76 sps:$4 sm:$0xff]  }
  0x19   :  { %v11427_v9 = vld [vmem:[%s16051_s1 + $0x44c] ss:$76 sps:$4 sm:$0xff]   ;;  %v11429_v10 = vld [vmem:[%s16051_s1 + $0x428] ss:$76 sps:$4 sm:$0xff]   ;;  %v11431_v12 = vld [vmem:[%s16051_s1 + $0x4c4] ss:$76 sps:$4 sm:$0xff]  }
  0x1a   :  { %v11430_v11 = vld [vmem:[%s16051_s1 + $0x448] ss:$76 sps:$4 sm:$0xff]   ;;  %v11543_v19 = vld [vmem:[%s16050_s2 + $0x98] sm:$0xff]  }
  0x1b   :  { %5460 = vmatpush1.bf16.msra.mxu1 %v11363_v13  ;;  %6744 = vmatpush1.bf16.msra.mxu0 %v11364_v14  ;;  %v11433_v13 = vld [vmem:[%s16051_s1 + $0x4e4] ss:$76 sps:$4 sm:$0xff]   ;;  %v11537_v14 = vld [vmem:[%s16050_s2 + $0x2b8] sm:$0xff]  }
  0x1c   :  { %5461 = vmatprep.subr.bf16.mxu1 %v16056_v0  ;;  %6745 = vmatprep.subr.bf16.mxu0 %v16056_v0  ;;  %v11442_v21 = vld [vmem:[%s16051_s1 + $0x578] ss:$76 sps:$4 sm:$0xff]  }
  0x1f   :  { %5462 = vmatpush1.bf16.msra.mxu1 %v11365_v15  ;;  %6746 = vmatpush1.bf16.msra.mxu0 %v11366_v16  ;;  %v11435_v15 = vld [vmem:[%s16051_s1 + $0x4c0] ss:$76 sps:$4 sm:$0xff]  }
  0x20   :  { %5463 = vmatprep.subr.bf16.mxu1 %v16056_v0  ;;  %6747 = vmatprep.subr.bf16.mxu0 %v16056_v0  ;;  %v11436_v16 = vld [vmem:[%s16051_s1 + $0x4e0] ss:$76 sps:$4 sm:$0xff]  }
  0x23   :  { %5464 = vmatpush1.bf16.msra.mxu1 %v11367_v17  ;;  %6748 = vmatpush1.bf16.msra.mxu0 %v11368_v18  ;;  %v11437_v17 = vld [vmem:[%s16051_s1 + $0x55c] ss:$76 sps:$4 sm:$0xff]  }
  0x24   :  { %5465 = vmatprep.subr.bf16.mxu1 %v16056_v0  ;;  %6749 = vmatprep.subr.bf16.mxu0 %v16056_v0  ;;  %v11439_v18 = vld [vmem:[%s16051_s1 + $0x57c] ss:$76 sps:$4 sm:$0xff]  }
  0x27   :  { %5466 = vmatpush1.bf16.msra.mxu1 %v11369_v20  ;;  %6750 = vmatpush1.bf16.msra.mxu0 %v11370_v22  ;;  %v11441_v20 = vld [vmem:[%s16051_s1 + $0x558] ss:$76 sps:$4 sm:$0xff]   ;;  %v11444_v22 = vld [vmem:[%s16051_s1 + $0x5f4] ss:$76 sps:$4 sm:$0xff]  }
  0x28   :  { %5467 = vmatprep.subr.bf16.mxu1 %v16056_v0  ;;  %6751 = vmatprep.subr.bf16.mxu0 %v16056_v0 }
  0x2b   :  { %5468 = vmatpush1.bf16.msra.mxu1 %v11371_v23  ;;  %6752 = vmatpush1.bf16.msra.mxu0 %v11372_v24  ;;  %v11446_v23 = vld [vmem:[%s16051_s1 + $0x614] ss:$76 sps:$4 sm:$0xff]  }
  0x2c   :  { %5469 = vmatprep.subr.bf16.mxu1 %v16056_v0  ;;  %6753 = vmatprep.subr.bf16.mxu0 %v16056_v0  ;;  %v11551_v24 = vld [vmem:[%s16050_s2 + $0x2c0] sm:$0xff]  }
  0x2f   :  { %5470 = vmatpush1.bf16.msra.mxu1 %v11373_v25  ;;  %6754 = vmatpush1.bf16.msra.mxu0 %v11374_v26  ;;  %v11448_v25 = vld [vmem:[%s16051_s1 + $0x5f0] ss:$76 sps:$4 sm:$0xff]  }
  0x30   :  { %5471 = vmatprep.subr.bf16.mxu1 %v16056_v0  ;;  %6755 = vmatprep.subr.bf16.mxu0 %v16056_v0  ;;  %v11449_v26 = vld [vmem:[%s16051_s1 + $0x610] ss:$76 sps:$4 sm:$0xff]  }
  0x33   :  { %5472 = vmatpush1.bf16.msra.mxu1 %v11375_v27  ;;  %6756 = vmatpush1.bf16.msra.mxu0 %v11376_v28  ;;  %v11450_v27 = vld [vmem:[%s16051_s1 + $0x68c] ss:$76 sps:$4 sm:$0xff]  }
  0x34   :  { %5473 = vmatprep.subr.bf16.mxu1 %v16056_v0  ;;  %6757 = vmatprep.subr.bf16.mxu0 %v16056_v0  ;;  %v11452_v28 = vld [vmem:[%s16051_s1 + $0x6ac] ss:$76 sps:$4 sm:$0xff]  }
  0x37   :  { %5474 = vmatpush1.bf16.msra.mxu1 %v11377_v29  ;;  %6758 = vmatpush1.bf16.msra.mxu0 %v11378_v30  ;;  %v11558_v29 = vld [vmem:[%s16050_s2 + $0xa0] sm:$0xff]   ;;  %v11454_v30 = vld [vmem:[%s16051_s1 + $0x688] ss:$76 sps:$4 sm:$0xff]  }
  0x38   :  { %5475 = vmatprep.subr.bf16.mxu1 %v16056_v0  ;;  %6759 = vmatprep.subr.bf16.mxu0 %v16056_v0 }
  0x3b   :  { %5476 = vmatpush1.bf16.msra.mxu1 %v11379_v31  ;;  %6760 = vmatpush1.bf16.msra.mxu0 %v11380_v32  ;;  %v11455_v31 = vld [vmem:[%s16051_s1 + $0x6a8] ss:$76 sps:$4 sm:$0xff]   ;;  %v11457_v32 = vld [vmem:[%s16051_s1 + $0x724] ss:$76 sps:$4 sm:$0xff]  }
  0x3c   :  { %5477 = vmatprep.subr.bf16.mxu1 %v16056_v0  ;;  %6761 = vmatprep.subr.bf16.mxu0 %v16056_v0 }
  0x3f   :  { %5478 = vmatpush1.bf16.msra.mxu1 %v11381_v33  ;;  %6762 = vmatpush1.bf16.msra.mxu0 %v11382_v34  ;;  %v11459_v33 = vld [vmem:[%s16051_s1 + $0x744] ss:$76 sps:$4 sm:$0xff]   ;;  %v11565_v34 = vld [vmem:[%s16050_s2 + $0x2c8] sm:$0xff]  }
  0x40   :  { %5768 = vmatprep.subr.bf16.mxu1 %v16056_v0  ;;  %7052 = vmatprep.subr.bf16.mxu0 %v16056_v0 }
  0x42   :  { %5480 = vmatmul.mubr.bf16.vlgmr.msra.gmra.mrb[0].mxu1 %v11383_v35  ;;  %6764 = vmatmul.mubr.bf16.vlgmr.msra.gmra.mrb[0].mxu0 %v11386_v36  ;;  %v11461_v35 = vld [vmem:[%s16051_s1 + $0x720] ss:$76 sps:$4 sm:$0xff]  }
  0x43   :  { %5487 = vmatprep.mubr.bf16.mxu1 %v11389_v37  ;;  %6771 = vmatprep.mubr.bf16.mxu0 %v11391_v38  ;;  %v11462_v36 = vld [vmem:[%s16051_s1 + $0x740] ss:$76 sps:$4 sm:$0xff]   ;;  %v11463_v37 = vld [vmem:[%s16051_s1 + $0x7bc] ss:$76 sps:$4 sm:$0xff]  }
  0x44   :  { %7053 = vmatpush1.bf16.msra.mxu0 %v11443_v39  ;;  %5769 = vmatpush1.bf16.msra.mxu1 %v11495_v53  ;;  %v11465_v38 = vld [vmem:[%s16051_s1 + $0x7dc] ss:$76 sps:$4 sm:$0xff]   ;;  %v11572_v39 = vld [vmem:[%s16050_s2 + $0x2d0] sm:$0xff]  }
  0x45   :  { %7054 = vmatprep.subr.bf16.mxu0 %v16056_v0  ;;  %5770 = vmatprep.subr.bf16.mxu1 %v16056_v0  ;;  %v11591_v53 = vld [vmem:[%s16050_s2 + $0xb0] sm:$0xff]  }
  0x48   :  { %7055 = vmatpush1.bf16.msra.mxu0 %v11456_v40  ;;  %5771 = vmatpush1.bf16.msra.mxu1 %v11510_v60  ;;  %v11573_v40 = vld [vmem:[%s16050_s2 + $0xa8] sm:$0xff]  }
  0x49   :  { %7056 = vmatprep.subr.bf16.mxu0 %v16056_v0  ;;  %5772 = vmatprep.subr.bf16.mxu1 %v16056_v0  ;;  %v11487_v60 = vld [vmem:[%s16051_s1 + $0x980] ss:$76 sps:$4 sm:$0xff]  }
  0x4a   :  { %5488 = vmatmul.mubr.bf16.gmra.mrb[4].mxu1 %v11393_v41  ;;  %6772 = vmatmul.mubr.bf16.gmra.mrb[4].mxu0 %v11394_v42  ;;  %v11467_v41 = vld [vmem:[%s16051_s1 + $0x7b8] ss:$76 sps:$4 sm:$0xff]  }
  0x4b   :  { %5495 = vmatprep.mubr.bf16.mxu1 %v11395_v43  ;;  %6779 = vmatprep.mubr.bf16.mxu0 %v11397_v44  ;;  %v11574_v42 = vld [vmem:[%s16050_s2 + $0x2d8] sm:$0xff]   ;;  %v11470_v44 = vld [vmem:[%s16051_s1 + $0x854] ss:$76 sps:$4 sm:$0xff]  }
  0x4c   :  { %7057 = vmatpush1.bf16.msra.mxu0 %v11469_v45  ;;  %5773 = vmatpush1.bf16.msra.mxu1 %v11524_v5  ;;  %v11468_v43 = vld [vmem:[%s16051_s1 + $0x7d8] ss:$76 sps:$4 sm:$0xff]   ;;  %v11472_v45 = vld [vmem:[%s16051_s1 + $0x874] ss:$76 sps:$4 sm:$0xff]  }
  0x4d   :  { %7058 = vmatprep.subr.bf16.mxu0 %v16056_v0  ;;  %5774 = vmatprep.subr.bf16.mxu1 %v16056_v0  ;;  %v11497_v5 = vld [vmem:[%s16051_s1 + $0xab4] ss:$76 sps:$4 sm:$0xff]  }
  0x50   :  { %7059 = vmatpush1.bf16.msra.mxu0 %v11482_v49  ;;  %5775 = vmatpush1.bf16.msra.mxu1 %v11543_v19  ;;  %v11475_v49 = vld [vmem:[%s16051_s1 + $0x870] ss:$76 sps:$4 sm:$0xff]  }
  0x51   :  { %7060 = vmatprep.subr.bf16.mxu0 %v16056_v0  ;;  %5776 = vmatprep.subr.bf16.mxu1 %v16056_v0  ;;  %v11629_v19 = vld [vmem:[%s16050_s2 + $0xf0] sm:$0xff]  }
  0x52   :  { %5496 = vmatmul.mubr.bf16.gmra.mrb[8].mxu1 %v11399_v46  ;;  %6780 = vmatmul.mubr.bf16.gmra.mrb[8].mxu0 %v11400_v47  ;;  %v11581_v46 = vld [vmem:[%s16050_s2 + $0x2e0] sm:$0xff]   ;;  %v11474_v47 = vld [vmem:[%s16051_s1 + $0x850] ss:$76 sps:$4 sm:$0xff]  }
  0x53   :  { %5503 = vmatprep.mubr.bf16.mxu1 %v11401_v48  ;;  %6787 = vmatprep.mubr.bf16.mxu0 %v11403_v50  ;;  %v11582_v48 = vld [vmem:[%s16050_s2 + $0x2e8] sm:$0xff]  }
  0x54   :  { %7061 = vmatpush1.bf16.msra.mxu0 %v11496_v54  ;;  %5777 = vmatpush1.bf16.msra.mxu1 %v11558_v29  ;;  %v11476_v50 = vld [vmem:[%s16051_s1 + $0x8ec] ss:$76 sps:$4 sm:$0xff]   ;;  %v11480_v54 = vld [vmem:[%s16051_s1 + $0x8e8] ss:$76 sps:$4 sm:$0xff]   ;;  %v11529_v29 = vld [vmem:[%s16051_s1 + $0xd10] ss:$76 sps:$4 sm:$0xff]  }
  0x55   :  { %7062 = vmatprep.subr.bf16.mxu0 %v16056_v0  ;;  %5778 = vmatprep.subr.bf16.mxu1 %v16056_v0 }
  0x58   :  { %7063 = vmatpush1.bf16.msra.mxu0 %v11509_v59  ;;  %5779 = vmatpush1.bf16.msra.mxu1 %v11573_v40  ;;  %v11598_v59 = vld [vmem:[%s16050_s2 + $0xb8] sm:$0xff]  }
  0x59   :  { %7064 = vmatprep.subr.bf16.mxu0 %v16056_v0  ;;  %5780 = vmatprep.subr.bf16.mxu1 %v16056_v0  ;;  %v11547_v40 = vld [vmem:[%s16051_s1 + $0xefc] ss:$76 sps:$4 sm:$0xff]  }
  0x5a   :  { %5504 = vmatmul.mubr.bf16.gmra.mrb[12].mxu1 %v11405_v51  ;;  %6788 = vmatmul.mubr.bf16.gmra.mrb[12].mxu0 %v11406_v52  ;;  %v11478_v51 = vld [vmem:[%s16051_s1 + $0x90c] ss:$76 sps:$4 sm:$0xff]   ;;  %v11589_v52 = vld [vmem:[%s16050_s2 + $0x2f0] sm:$0xff]  }
  0x5b   :  { %5511 = vmatprep.mubr.bf16.mxu1 %v11407_v55  ;;  %6795 = vmatprep.mubr.bf16.mxu0 %v11409_v56  ;;  %v11590_v55 = vld [vmem:[%s16050_s2 + $0x2f8] sm:$0xff]   ;;  %v11481_v56 = vld [vmem:[%s16051_s1 + $0x908] ss:$76 sps:$4 sm:$0xff]  }
  0x5c   :  { %7065 = vmatpush1.bf16.msra.mxu0 %v11523_v4  ;;  %5781 = vmatpush1.bf16.msra.mxu1 %v11591_v53  ;;  %v11494_v4 = vld [vmem:[%s16051_s1 + $0xa38] ss:$76 sps:$4 sm:$0xff]   ;;  %v11570_v53 = vld [vmem:[%s16051_s1 + $0x10a0] ss:$76 sps:$4 sm:$0xff]  }
  0x5d   :  { %7066 = vmatprep.subr.bf16.mxu0 %v16056_v0  ;;  %5782 = vmatprep.subr.bf16.mxu1 %v16056_v0 }
  0x60   :  { %7067 = vmatpush1.bf16.msra.mxu0 %v11537_v14  ;;  %5783 = vmatpush1.bf16.msra.mxu1 %v11598_v59  ;;  %v11507_v14 = vld [vmem:[%s16051_s1 + $0xb48] ss:$76 sps:$4 sm:$0xff]  }
  0x61   :  { %7068 = vmatprep.subr.bf16.mxu0 %v16056_v0  ;;  %5784 = vmatprep.subr.bf16.mxu1 %v16056_v0  ;;  %v11583_v59 = vld [vmem:[%s16051_s1 + $0x11d4] ss:$76 sps:$4 sm:$0xff]  }
  0x62   :  { %5512 = vmatmul.mubr.bf16.gmra.mrb[16].mxu1 %v11411_v57  ;;  %6796 = vmatmul.mubr.bf16.gmra.mrb[16].mxu0 %v11412_v58  ;;  %v11483_v57 = vld [vmem:[%s16051_s1 + $0x984] ss:$76 sps:$4 sm:$0xff]  }
  0x63   :  { %5519 = vmatprep.mubr.bf16.mxu1 %v11413_v61  ;;  %6803 = vmatprep.mubr.bf16.mxu0 %v11415_v62  ;;  %v11485_v58 = vld [vmem:[%s16051_s1 + $0x9a4] ss:$76 sps:$4 sm:$0xff]   ;;  %v11488_v61 = vld [vmem:[%s16051_s1 + $0x9a0] ss:$76 sps:$4 sm:$0xff]   ;;  %v11489_v62 = vld [vmem:[%s16051_s1 + $0xa1c] ss:$76 sps:$4 sm:$0xff]  }
  0x64   :  { %7069 = vmatpush1.bf16.msra.mxu0 %v11551_v24  ;;  %v11519_v24 = vld [vmem:[%s16051_s1 + $0xc9c] ss:$76 sps:$4 sm:$0xff]  }
  0x65   :  { %7070 = vmatprep.subr.bf16.mxu0 %v16056_v0 }
  0x68   :  { %7071 = vmatpush1.bf16.msra.mxu0 %v11565_v34  ;;  %v11536_v34 = vld [vmem:[%s16051_s1 + $0xdc8] ss:$76 sps:$4 sm:$0xff]  }
  0x69   :  { %7072 = vmatprep.subr.bf16.mxu0 %v16056_v0 }
  0x6a   :  { %5520 = vmatmul.mubr.bf16.gmra.mrb[20].mxu1 %v11417_v63  ;;  %6804 = vmatmul.mubr.bf16.gmra.mrb[20].mxu0 %v11418_v1  ;;  %v11491_v63 = vld [vmem:[%s16051_s1 + $0xa3c] ss:$76 sps:$4 sm:$0xff]   ;;  %v11605_v1 = vld [vmem:[%s16050_s2 + $0xc0] sm:$0xff]  }
  0x6b   :  { %5527 = vmatprep.mubr.bf16.mxu1 %v11419_v2  ;;  %6811 = vmatprep.mubr.bf16.mxu0 %v11421_v3  ;;  %v11493_v2 = vld [vmem:[%s16051_s1 + $0xa18] ss:$76 sps:$4 sm:$0xff]   ;;  %v11606_v3 = vld [vmem:[%s16050_s2 + $0xc8] sm:$0xff]  }
  0x6c   :  { %7073 = vmatpush1.bf16.msra.mxu0 %v11572_v39  ;;  %5785 = vmatpush1.bf16.msra.mxu1 %v11605_v1  ;;  %v11545_v39 = vld [vmem:[%s16051_s1 + $0xedc] ss:$76 sps:$4 sm:$0xff]   ;;  %v11596_v1 = vld [vmem:[%s16051_s1 + $0x2c] ss:$76 sps:$4 sm:$0xff]  }
  0x6d   :  { %7074 = vmatprep.subr.bf16.mxu0 %v16056_v0  ;;  %5786 = vmatprep.subr.bf16.mxu1 %v16056_v0 }
  0x70   :  { %7075 = vmatpush1.bf16.msra.mxu0 %v11574_v42  ;;  %5787 = vmatpush1.bf16.msra.mxu1 %v11606_v3  ;;  %v11550_v42 = vld [vmem:[%s16051_s1 + $0xef8] ss:$76 sps:$4 sm:$0xff]   ;;  %v11594_v3 = vld [vmem:[%s16051_s1 + $0x28] ss:$76 sps:$4 sm:$0xff]  }
  0x71   :  { %7076 = vmatprep.subr.bf16.mxu0 %v16056_v0  ;;  %5788 = vmatprep.subr.bf16.mxu1 %v16056_v0 }
  0x72   :  { %5528 = vmatmul.mubr.bf16.gmra.mrb[24].mxu1 %v11423_v6  ;;  %6812 = vmatmul.mubr.bf16.gmra.mrb[24].mxu0 %v11424_v7  ;;  %v11499_v6 = vld [vmem:[%s16051_s1 + $0xad4] ss:$76 sps:$4 sm:$0xff]  }
  0x73   :  { %5535 = vmatprep.mubr.bf16.mxu1 %v11425_v8  ;;  %6819 = vmatprep.mubr.bf16.mxu0 %v11427_v9  ;;  %v11613_v7 = vld [vmem:[%s16050_s2 + $0xd0] sm:$0xff]   ;;  %v11614_v9 = vld [vmem:[%s16050_s2 + $0xd8] sm:$0xff]  }
  0x74   :  { %7077 = vmatpush1.bf16.msra.mxu0 %v11581_v46  ;;  %v11501_v8 = vld [vmem:[%s16051_s1 + $0xab0] ss:$76 sps:$4 sm:$0xff]   ;;  %5789 = vmatpush1.bf16.msra.mxu1 %v11613_v7  ;;  %v11603_v7 = vld [vmem:[%s16051_s1 + $0x1300] ss:$76 sps:$4 sm:$0xff]  }
  0x75   :  { %7078 = vmatprep.subr.bf16.mxu0 %v16056_v0  ;;  %5790 = vmatprep.subr.bf16.mxu1 %v16056_v0  ;;  %v11557_v46 = vld [vmem:[%s16051_s1 + $0xf90] ss:$76 sps:$4 sm:$0xff]  }
  0x78   :  { %7079 = vmatpush1.bf16.msra.mxu0 %v11582_v48  ;;  %5791 = vmatpush1.bf16.msra.mxu1 %v11614_v9  ;;  %v11561_v48 = vld [vmem:[%s16051_s1 + $0x102c] ss:$76 sps:$4 sm:$0xff]  }
  0x79   :  { %7080 = vmatprep.subr.bf16.mxu0 %v16056_v0  ;;  %5792 = vmatprep.subr.bf16.mxu1 %v16056_v0  ;;  %v11604_v9 = vld [vmem:[%s16051_s1 + $0xc0] ss:$76 sps:$4 sm:$0xff]  }
  0x7a   :  { %5536 = vmatmul.mubr.bf16.gmra.mrb[28].mxu1 %v11429_v10  ;;  %6820 = vmatmul.mubr.bf16.gmra.mrb[28].mxu0 %v11430_v11  ;;  %v11502_v10 = vld [vmem:[%s16051_s1 + $0xad0] ss:$76 sps:$4 sm:$0xff]   ;;  %v11503_v11 = vld [vmem:[%s16051_s1 + $0xb4c] ss:$76 sps:$4 sm:$0xff]  }
  0x7b   :  { %5543 = vmatprep.mubr.bf16.mxu1 %v11431_v12  ;;  %6827 = vmatprep.mubr.bf16.mxu0 %v11433_v13  ;;  %v11505_v12 = vld [vmem:[%s16051_s1 + $0xb6c] ss:$76 sps:$4 sm:$0xff]   ;;  %v11621_v13 = vld [vmem:[%s16050_s2 + $0xe0] sm:$0xff]  }
  0x7c   :  { %7081 = vmatpush1.bf16.msra.mxu0 %v11589_v52  ;;  %5793 = vmatpush1.bf16.msra.mxu1 %v11621_v13  ;;  %v11568_v52 = vld [vmem:[%s16051_s1 + $0x10c4] ss:$76 sps:$4 sm:$0xff]  }
  0x7d   :  { %7082 = vmatprep.subr.bf16.mxu0 %v16056_v0  ;;  %5794 = vmatprep.subr.bf16.mxu1 %v16056_v0  ;;  %v11611_v13 = vld [vmem:[%s16051_s1 + $0x1398] ss:$76 sps:$4 sm:$0xff]  }
  0x80   :  { %7083 = vmatpush1.bf16.msra.mxu0 %v11590_v55  ;;  %v11575_v55 = vld [vmem:[%s16051_s1 + $0x113c] ss:$76 sps:$4 sm:$0xff]  }
  0x81   :  { %7373 = vmatprep.subr.bf16.mxu0 %v16056_v0 }
  0x82   :  { %5544 = vmatmul.mubr.bf16.gmra.mrb[32].mxu1 %v11435_v15  ;;  %6828 = vmatmul.mubr.bf16.gmra.mrb[32].mxu0 %v11436_v16  ;;  %v11622_v15 = vld [vmem:[%s16050_s2 + $0xe8] sm:$0xff]  }
  0x83   :  { %5551 = vmatprep.mubr.bf16.mxu1 %v11437_v17  ;;  %6835 = vmatprep.mubr.bf16.mxu0 %v11439_v18  ;;  %v11508_v16 = vld [vmem:[%s16051_s1 + $0xb68] ss:$76 sps:$4 sm:$0xff]   ;;  %v11511_v17 = vld [vmem:[%s16051_s1 + $0xbe4] ss:$76 sps:$4 sm:$0xff]  }
  0x84   :  { %v11513_v18 = vld [vmem:[%s16051_s1 + $0xc04] ss:$76 sps:$4 sm:$0xff]   ;;  %5795 = vmatpush1.bf16.msra.mxu1 %v11622_v15 }
  0x85   :  { %5796 = vmatprep.subr.bf16.mxu1 %v16056_v0  ;;  %v11612_v15 = vld [vmem:[%s16051_s1 + $0x158] ss:$76 sps:$4 sm:$0xff]  }
  0x88   :  { %5797 = vmatpush1.bf16.msra.mxu1 %v11629_v19  ;;  %v11619_v19 = vld [vmem:[%s16051_s1 + $0x1430] ss:$76 sps:$4 sm:$0xff]  }
  0x89   :  { %5798 = vmatprep.subr.bf16.mxu1 %v16056_v0 }
  0x8a   :  { %5552 = vmatmul.mubr.bf16.gmra.mrb[36].mxu1 %v11441_v20  ;;  %6836 = vmatmul.mubr.bf16.gmra.mrb[36].mxu0 %v11442_v21  ;;  %v11515_v20 = vld [vmem:[%s16051_s1 + $0xbe0] ss:$76 sps:$4 sm:$0xff]   ;;  %v11630_v21 = vld [vmem:[%s16050_s2 + $0xf8] sm:$0xff]  }
  0x8b   :  { %5559 = vmatprep.mubr.bf16.mxu1 %v11444_v22  ;;  %6843 = vmatprep.mubr.bf16.mxu0 %v11446_v23  ;;  %v11516_v22 = vld [vmem:[%s16051_s1 + $0xc00] ss:$76 sps:$4 sm:$0xff]   ;;  %v11517_v23 = vld [vmem:[%s16051_s1 + $0xc7c] ss:$76 sps:$4 sm:$0xff]  }
  0x8c   :  { %5799 = vmatpush1.bf16.msra.mxu1 %v11630_v21  ;;  %v11623_v21 = vld [vmem:[%s16051_s1 + $0x14cc] ss:$76 sps:$4 sm:$0xff]  }
  0x8d   :  { %6089 = vmatprep.subr.bf16.mxu1 %v16056_v0 }
  0x92   :  { %5560 = vmatmul.mubr.bf16.gmra.mrb[40].mxu1 %v11448_v25  ;;  %6844 = vmatmul.mubr.bf16.gmra.mrb[40].mxu0 %v11449_v26  ;;  %v11521_v25 = vld [vmem:[%s16051_s1 + $0xc78] ss:$76 sps:$4 sm:$0xff]  }
  0x93   :  { %5567 = vmatprep.mubr.bf16.mxu1 %v11450_v27  ;;  %6851 = vmatprep.mubr.bf16.mxu0 %v11452_v28  ;;  %v11522_v26 = vld [vmem:[%s16051_s1 + $0xc98] ss:$76 sps:$4 sm:$0xff]   ;;  %v11525_v27 = vld [vmem:[%s16051_s1 + $0xd14] ss:$76 sps:$4 sm:$0xff]  }
  0x94   :  { %v11527_v28 = vld [vmem:[%s16051_s1 + $0xd34] ss:$76 sps:$4 sm:$0xff]  }
  0x9a   :  { %5568 = vmatmul.mubr.bf16.gmra.mrb[44].mxu1 %v11454_v30  ;;  %6852 = vmatmul.mubr.bf16.gmra.mrb[44].mxu0 %v11455_v31  ;;  %v11530_v30 = vld [vmem:[%s16051_s1 + $0xd30] ss:$76 sps:$4 sm:$0xff]   ;;  %v11531_v31 = vld [vmem:[%s16051_s1 + $0xdac] ss:$76 sps:$4 sm:$0xff]  }
  0x9b   :  { %5575 = vmatprep.mubr.bf16.mxu1 %v11457_v32  ;;  %6859 = vmatprep.mubr.bf16.mxu0 %v11459_v33  ;;  %v11533_v32 = vld [vmem:[%s16051_s1 + $0xdcc] ss:$76 sps:$4 sm:$0xff]   ;;  %v11535_v33 = vld [vmem:[%s16051_s1 + $0xda8] ss:$76 sps:$4 sm:$0xff]  }
  0xa2   :  { %5576 = vmatmul.mubr.bf16.gmra.mrb[48].mxu1 %v11461_v35  ;;  %6860 = vmatmul.mubr.bf16.gmra.mrb[48].mxu0 %v11462_v36  ;;  %v11538_v35 = vld [vmem:[%s16051_s1 + $0xe44] ss:$76 sps:$4 sm:$0xff]  }
  0xa3   :  { %5583 = vmatprep.mubr.bf16.mxu1 %v11463_v37  ;;  %6867 = vmatprep.mubr.bf16.mxu0 %v11465_v38  ;;  %v11540_v36 = vld [vmem:[%s16051_s1 + $0xe64] ss:$76 sps:$4 sm:$0xff]   ;;  %v11542_v37 = vld [vmem:[%s16051_s1 + $0xe40] ss:$76 sps:$4 sm:$0xff]  }
  0xa4   :  { %v11544_v38 = vld [vmem:[%s16051_s1 + $0xe60] ss:$76 sps:$4 sm:$0xff]  }
  0xaa   :  { %5584 = vmatmul.mubr.bf16.gmra.mrb[52].mxu1 %v11467_v41  ;;  %6868 = vmatmul.mubr.bf16.gmra.mrb[52].mxu0 %v11468_v43  ;;  %v11549_v41 = vld [vmem:[%s16051_s1 + $0xed8] ss:$76 sps:$4 sm:$0xff]   ;;  %v11552_v43 = vld [vmem:[%s16051_s1 + $0xf74] ss:$76 sps:$4 sm:$0xff]  }
  0xab   :  { %5591 = vmatprep.mubr.bf16.mxu1 %v11470_v44  ;;  %6875 = vmatprep.mubr.bf16.mxu0 %v11472_v45  ;;  %v11554_v44 = vld [vmem:[%s16051_s1 + $0xf94] ss:$76 sps:$4 sm:$0xff]   ;;  %v11556_v45 = vld [vmem:[%s16051_s1 + $0xf70] ss:$76 sps:$4 sm:$0xff]  }
  0xb2   :  { %5592 = vmatmul.mubr.bf16.gmra.mrb[56].mxu1 %v11474_v47  ;;  %6876 = vmatmul.mubr.bf16.gmra.mrb[56].mxu0 %v11475_v49  ;;  %v11559_v47 = vld [vmem:[%s16051_s1 + $0x100c] ss:$76 sps:$4 sm:$0xff]   ;;  %v11563_v49 = vld [vmem:[%s16051_s1 + $0x1008] ss:$76 sps:$4 sm:$0xff]  }
  0xb3   :  { %5599 = vmatprep.mubr.bf16.mxu1 %v11476_v50  ;;  %6883 = vmatprep.mubr.bf16.mxu0 %v11478_v51  ;;  %v11564_v50 = vld [vmem:[%s16051_s1 + $0x1028] ss:$76 sps:$4 sm:$0xff]   ;;  %v11566_v51 = vld [vmem:[%s16051_s1 + $0x10a4] ss:$76 sps:$4 sm:$0xff]  }
  0xba   :  { %5600 = vmatmul.mubr.bf16.gmra.mrb[60].mxu1 %v11480_v54  ;;  %6884 = vmatmul.mubr.bf16.gmra.mrb[60].mxu0 %v11481_v56  ;;  %v11571_v54 = vld [vmem:[%s16051_s1 + $0x10c0] ss:$76 sps:$4 sm:$0xff]   ;;  %v11577_v56 = vld [vmem:[%s16051_s1 + $0x115c] ss:$76 sps:$4 sm:$0xff]  }
  0xbb   :  { %5607 = vmatprep.mubr.bf16.mxu1 %v11483_v57  ;;  %6891 = vmatprep.mubr.bf16.mxu0 %v11485_v58  ;;  %v11579_v57 = vld [vmem:[%s16051_s1 + $0x1138] ss:$76 sps:$4 sm:$0xff]  }
  0xbc   :  { %v11580_v58 = vld [vmem:[%s16051_s1 + $0x1158] ss:$76 sps:$4 sm:$0xff]  }
  0xc2   :  { %5608 = vmatmul.mubr.bf16.gmra.mrb[64].mxu1 %v11487_v60  ;;  %6892 = vmatmul.mubr.bf16.gmra.mrb[64].mxu0 %v11488_v61  ;;  %v11585_v60 = vld [vmem:[%s16051_s1 + $0x11f4] ss:$76 sps:$4 sm:$0xff]   ;;  %v11587_v61 = vld [vmem:[%s16051_s1 + $0x11d0] ss:$76 sps:$4 sm:$0xff]  }
  0xc3   :  { %5615 = vmatprep.mubr.bf16.mxu1 %v11489_v62  ;;  %6899 = vmatprep.mubr.bf16.mxu0 %v11491_v63  ;;  %v11588_v62 = vld [vmem:[%s16051_s1 + $0x11f0] ss:$76 sps:$4 sm:$0xff]   ;;  %v11592_v63 = vld [vmem:[%s16051_s1 + $0x126c] ss:$76 sps:$4 sm:$0xff]  }
  0xca   :  { %5616 = vmatmul.mubr.bf16.gmra.mrb[68].mxu1 %v11493_v2  ;;  %6900 = vmatmul.mubr.bf16.gmra.mrb[68].mxu0 %v11494_v4  ;;  %v11597_v2 = vld [vmem:[%s16051_s1 + $0x1268] ss:$76 sps:$4 sm:$0xff]   ;;  %v11599_v4 = vld [vmem:[%s16051_s1 + $0x1304] ss:$76 sps:$4 sm:$0xff]  }
  0xcb   :  { %5623 = vmatprep.mubr.bf16.mxu1 %v11497_v5  ;;  %6907 = vmatprep.mubr.bf16.mxu0 %v11499_v6  ;;  %v11601_v5 = vld [vmem:[%s16051_s1 + $0xc4] ss:$76 sps:$4 sm:$0xff]  }
  0xcc   :  { %v11661_v6 = vld [vmem:[%s16050_s2 + $0x300] sm:$0xff]  }
  0xd2   :  { %5624 = vmatmul.mubr.bf16.gmra.mrb[72].mxu1 %v11501_v8  ;;  %6908 = vmatmul.mubr.bf16.gmra.mrb[72].mxu0 %v11502_v10  ;;  %v11678_v8 = vld [vmem:[%s16050_s2 + $0x308] sm:$0xff]  }
  0xd3   :  { %5631 = vmatprep.mubr.bf16.mxu1 %v11503_v11  ;;  %6915 = vmatprep.mubr.bf16.mxu0 %v11505_v12  ;;  %v11607_v10 = vld [vmem:[%s16051_s1 + $0x139c] ss:$76 sps:$4 sm:$0xff]   ;;  %v11693_v12 = vld [vmem:[%s16050_s2 + $0x310] sm:$0xff]  }
  0xd4   :  { %v11609_v11 = vld [vmem:[%s16051_s1 + $0x15c] ss:$76 sps:$4 sm:$0xff]  }
  0xda   :  { %5632 = vmatmul.mubr.bf16.gmra.mrb[76].mxu1 %v11507_v14  ;;  %6916 = vmatmul.mubr.bf16.gmra.mrb[76].mxu0 %v11508_v16  ;;  %v11706_v14 = vld [vmem:[%s16050_s2 + $0x318] sm:$0xff]   ;;  %v11615_v16 = vld [vmem:[%s16051_s1 + $0x1434] ss:$76 sps:$4 sm:$0xff]  }
  0xdb   :  { %5639 = vmatprep.mubr.bf16.mxu1 %v11511_v17  ;;  %6923 = vmatprep.mubr.bf16.mxu0 %v11513_v18  ;;  %v11617_v17 = vld [vmem:[%s16051_s1 + $0x1f4] ss:$76 sps:$4 sm:$0xff]  }
  0xdc   :  { %v11719_v18 = vld [vmem:[%s16050_s2 + $0x320] sm:$0xff]  }
  0xe2   :  { %5640 = vmatmul.mubr.bf16.gmra.mrb[80].mxu1 %v11515_v20  ;;  %6924 = vmatmul.mubr.bf16.gmra.mrb[80].mxu0 %v11516_v22  ;;  %v11620_v20 = vld [vmem:[%s16051_s1 + $0x1f0] ss:$76 sps:$4 sm:$0xff]   ;;  %v11625_v22 = vld [vmem:[%s16051_s1 + $0x28c] ss:$76 sps:$4 sm:$0xff]  }
  0xe3   :  { %5647 = vmatprep.mubr.bf16.mxu1 %v11517_v23  ;;  %6931 = vmatprep.mubr.bf16.mxu0 %v11519_v24  ;;  %v11627_v23 = vld [vmem:[%s16051_s1 + $0x14c8] ss:$76 sps:$4 sm:$0xff]  }
  0xe4   :  { %v11628_v24 = vld [vmem:[%s16051_s1 + $0x288] ss:$76 sps:$4 sm:$0xff]  }
  0xea   :  { %5648 = vmatmul.mubr.bf16.gmra.mrb[84].mxu1 %v11521_v25  ;;  %6932 = vmatmul.mubr.bf16.gmra.mrb[84].mxu0 %v11522_v26  ;;  %v11633_v25 = vld [vmem:[%s16051_s1 + $0xc] ss:$76 sps:$4 sm:$0xff]   ;;  %v11634_v26 = vld [vmem:[%s16051_s1 + $0x324] ss:$76 sps:$4 sm:$0xff]  }
  0xeb   :  { %5655 = vmatprep.mubr.bf16.mxu1 %v11525_v27  ;;  %6939 = vmatprep.mubr.bf16.mxu0 %v11527_v28  ;;  %v11631_v27 = vld [vmem:[%s16051_s1 + $0x8] ss:$76 sps:$4 sm:$0xff]  }
  0xec   :  { %v11736_v28 = vld [vmem:[%s16050_s2 + $0x328] sm:$0xff]  }
  0xf2   :  { %5656 = vmatmul.mubr.bf16.gmra.mrb[88].mxu1 %v11529_v29  ;;  %6940 = vmatmul.mubr.bf16.gmra.mrb[88].mxu0 %v11530_v30  ;;  %v11636_v29 = vld [vmem:[%s16051_s1 + $0x320] ss:$76 sps:$4 sm:$0xff]   ;;  %v11637_v30 = vld [vmem:[%s16051_s1 + $0xa4] ss:$76 sps:$4 sm:$0xff]  }
  0xf3   :  { %5663 = vmatprep.mubr.bf16.mxu1 %v11531_v31  ;;  %6947 = vmatprep.mubr.bf16.mxu0 %v11533_v32  ;;  %v11639_v31 = vld [vmem:[%s16051_s1 + $0x3bc] ss:$76 sps:$4 sm:$0xff]   ;;  %v11641_v32 = vld [vmem:[%s16051_s1 + $0xa0] ss:$76 sps:$4 sm:$0xff]  }
  0xfa   :  { %5664 = vmatmul.mubr.bf16.gmra.mrb[92].mxu1 %v11535_v33  ;;  %6948 = vmatmul.mubr.bf16.gmra.mrb[92].mxu0 %v11536_v34  ;;  %v11642_v33 = vld [vmem:[%s16051_s1 + $0x3b8] ss:$76 sps:$4 sm:$0xff]   ;;  %v11643_v34 = vld [vmem:[%s16051_s1 + $0x13c] ss:$76 sps:$4 sm:$0xff]  }
  0xfb   :  { %5671 = vmatprep.mubr.bf16.mxu1 %v11538_v35  ;;  %6955 = vmatprep.mubr.bf16.mxu0 %v11540_v36  ;;  %v11645_v35 = vld [vmem:[%s16051_s1 + $0x454] ss:$76 sps:$4 sm:$0xff]  }
  0xfc   :  { %v11745_v36 = vld [vmem:[%s16050_s2 + $0x100] sm:$0xff]  }
 0x102   :  { %5672 = vmatmul.mubr.bf16.gmra.mrb[96].mxu1 %v11542_v37  ;;  %6956 = vmatmul.mubr.bf16.gmra.mrb[96].mxu0 %v11544_v38  ;;  %v11647_v37 = vld [vmem:[%s16051_s1 + $0x138] ss:$76 sps:$4 sm:$0xff]   ;;  %v11648_v38 = vld [vmem:[%s16051_s1 + $0x450] ss:$76 sps:$4 sm:$0xff]  }
 0x103   :  { %5679 = vmatprep.mubr.bf16.mxu1 %v11545_v39  ;;  %6963 = vmatprep.mubr.bf16.mxu0 %v11547_v40  ;;  %v11649_v39 = vld [vmem:[%s16051_s1 + $0x1d4] ss:$76 sps:$4 sm:$0xff]   ;;  %v11651_v40 = vld [vmem:[%s16051_s1 + $0x4ec] ss:$76 sps:$4 sm:$0xff]  }
 0x10a   :  { %5680 = vmatmul.mubr.bf16.gmra.mrb[100].mxu1 %v11549_v41  ;;  %6964 = vmatmul.mubr.bf16.gmra.mrb[100].mxu0 %v11550_v42  ;;  %v11752_v41 = vld [vmem:[%s16050_s2 + $0x330] sm:$0xff]  }
 0x10b   :  { %5687 = vmatprep.mubr.bf16.mxu1 %v11552_v43  ;;  %6971 = vmatprep.mubr.bf16.mxu0 %v11554_v44  ;;  %v11653_v42 = vld [vmem:[%s16051_s1 + $0x1d0] ss:$76 sps:$4 sm:$0xff]   ;;  %v11654_v43 = vld [vmem:[%s16051_s1 + $0x4e8] ss:$76 sps:$4 sm:$0xff]   ;;  %v11655_v44 = vld [vmem:[%s16051_s1 + $0x26c] ss:$76 sps:$4 sm:$0xff]  }
 0x112   :  { %5688 = vmatmul.mubr.bf16.gmra.mrb[104].mxu1 %v11556_v45  ;;  %6972 = vmatmul.mubr.bf16.gmra.mrb[104].mxu0 %v11557_v46  ;;  %v11657_v45 = vld [vmem:[%s16051_s1 + $0x584] ss:$76 sps:$4 sm:$0xff]   ;;  %v11759_v46 = vld [vmem:[%s16050_s2 + $0x108] sm:$0xff]  }
 0x113   :  { %5695 = vmatprep.mubr.bf16.mxu1 %v11559_v47  ;;  %6979 = vmatprep.mubr.bf16.mxu0 %v11561_v48  ;;  %v11659_v47 = vld [vmem:[%s16051_s1 + $0x268] ss:$76 sps:$4 sm:$0xff]   ;;  %v11660_v48 = vld [vmem:[%s16051_s1 + $0x580] ss:$76 sps:$4 sm:$0xff]  }
 0x11a   :  { %5696 = vmatmul.mubr.bf16.gmra.mrb[108].mxu1 %v11563_v49  ;;  %6980 = vmatmul.mubr.bf16.gmra.mrb[108].mxu0 %v11564_v50  ;;  %v11662_v49 = vld [vmem:[%s16051_s1 + $0x304] ss:$76 sps:$4 sm:$0xff]   ;;  %v11664_v50 = vld [vmem:[%s16051_s1 + $0x61c] ss:$76 sps:$4 sm:$0xff]  }
 0x11b   :  { %5703 = vmatprep.mubr.bf16.mxu1 %v11566_v51  ;;  %6987 = vmatprep.mubr.bf16.mxu0 %v11568_v52  ;;  %v11766_v51 = vld [vmem:[%s16050_s2 + $0x338] sm:$0xff]   ;;  %v11666_v52 = vld [vmem:[%s16051_s1 + $0x300] ss:$76 sps:$4 sm:$0xff]  }
 0x122   :  { %5704 = vmatmul.mubr.bf16.gmra.mrb[112].mxu1 %v11570_v53  ;;  %6988 = vmatmul.mubr.bf16.gmra.mrb[112].mxu0 %v11571_v54  ;;  %v11667_v53 = vld [vmem:[%s16051_s1 + $0x618] ss:$76 sps:$4 sm:$0xff]   ;;  %v11668_v54 = vld [vmem:[%s16051_s1 + $0x39c] ss:$76 sps:$4 sm:$0xff]  }
 0x123   :  { %5711 = vmatprep.mubr.bf16.mxu1 %v11575_v55  ;;  %6995 = vmatprep.mubr.bf16.mxu0 %v11577_v56  ;;  %v11670_v55 = vld [vmem:[%s16051_s1 + $0x6b4] ss:$76 sps:$4 sm:$0xff]  }
 0x124   :  { %v11773_v56 = vld [vmem:[%s16050_s2 + $0x110] sm:$0xff]  }
 0x12a   :  { %5712 = vmatmul.mubr.bf16.gmra.mrb[116].mxu1 %v11579_v57  ;;  %6996 = vmatmul.mubr.bf16.gmra.mrb[116].mxu0 %v11580_v58  ;;  %v11672_v57 = vld [vmem:[%s16051_s1 + $0x398] ss:$76 sps:$4 sm:$0xff]   ;;  %v11673_v58 = vld [vmem:[%s16051_s1 + $0x6b0] ss:$76 sps:$4 sm:$0xff]  }
 0x12b   :  { %5719 = vmatprep.mubr.bf16.mxu1 %v11583_v59  ;;  %7003 = vmatprep.mubr.bf16.mxu0 %v11585_v60  ;;  %v11674_v59 = vld [vmem:[%s16051_s1 + $0x434] ss:$76 sps:$4 sm:$0xff]   ;;  %v11676_v60 = vld [vmem:[%s16051_s1 + $0x74c] ss:$76 sps:$4 sm:$0xff]  }
 0x132   :  { %5720 = vmatmul.mubr.bf16.gmra.mrb[120].mxu1 %v11587_v61  ;;  %7004 = vmatmul.mubr.bf16.gmra.mrb[120].mxu0 %v11588_v62  ;;  %v11780_v61 = vld [vmem:[%s16050_s2 + $0x340] sm:$0xff]   ;;  %v11679_v62 = vld [vmem:[%s16051_s1 + $0x430] ss:$76 sps:$4 sm:$0xff]  }
 0x133   :  { %5727 = vmatprep.mubr.bf16.mxu1 %v11592_v63  ;;  %7084 = vmatprep.mubr.bf16.mxu0 %v11596_v1  ;;  %v11680_v63 = vld [vmem:[%s16051_s1 + $0x748] ss:$76 sps:$4 sm:$0xff]   ;;  %v11681_v1 = vld [vmem:[%s16051_s1 + $0x4cc] ss:$76 sps:$4 sm:$0xff]  }
 0x13a   :  { %5728 = vmatmul.mubr.bf16.gmra.mrb[124].mxu1 %v11597_v2  ;;  %7085 = vmatmul.mubr.bf16.vlgmr.msra.gmra.mrb[0].mxu0 %v11594_v3  ;;  %v11683_v2 = vld [vmem:[%s16051_s1 + $0x7e4] ss:$76 sps:$4 sm:$0xff]   ;;  %v11685_v3 = vld [vmem:[%s16051_s1 + $0x4c8] ss:$76 sps:$4 sm:$0xff]  }
 0x13b   :  { %5735 = vmatprep.mubr.bf16.mxu1 %v11599_v4  ;;  %7092 = vmatprep.mubr.bf16.mxu0 %v11601_v5  ;;  %v11686_v4 = vld [vmem:[%s16051_s1 + $0x7e0] ss:$76 sps:$4 sm:$0xff]   ;;  %v11687_v5 = vld [vmem:[%s16051_s1 + $0x564] ss:$76 sps:$4 sm:$0xff]  }
 0x13c   :  { %7374 = vmatpush1.bf16.msra.mxu0 %v11661_v6  ;;  %v11689_v6 = vld [vmem:[%s16051_s1 + $0x87c] ss:$76 sps:$4 sm:$0xff]  }
 0x13d   :  { %7375 = vmatprep.subr.bf16.mxu0 %v16056_v0 }
 0x140   :  { %7376 = vmatpush1.bf16.msra.mxu0 %v11678_v8  ;;  %v11691_v8 = vld [vmem:[%s16051_s1 + $0x560] ss:$76 sps:$4 sm:$0xff]  }
 0x141   :  { %7377 = vmatprep.subr.bf16.mxu0 %v16056_v0 }
 0x142   :  { %5736 = vmatmul.mubr.bf16.gmra.mrb[128].mxu1 %v11603_v7  ;;  %7093 = vmatmul.mubr.bf16.gmra.mrb[4].mxu0 %v11604_v9  ;;  %v11792_v7 = vld [vmem:[%s16050_s2 + $0x118] sm:$0xff]   ;;  %v11798_v9 = vld [vmem:[%s16050_s2 + $0x348] sm:$0xff]  }
 0x143   :  { %5743 = vmatprep.mubr.bf16.mxu1 %v11607_v10  ;;  %7100 = vmatprep.mubr.bf16.mxu0 %v11609_v11  ;;  %v11692_v10 = vld [vmem:[%s16051_s1 + $0x878] ss:$76 sps:$4 sm:$0xff]   ;;  %v11694_v11 = vld [vmem:[%s16051_s1 + $0x5fc] ss:$76 sps:$4 sm:$0xff]  }
 0x144   :  { %7378 = vmatpush1.bf16.msra.mxu0 %v11693_v12  ;;  %v11696_v12 = vld [vmem:[%s16051_s1 + $0x914] ss:$76 sps:$4 sm:$0xff]  }
 0x145   :  { %7379 = vmatprep.subr.bf16.mxu0 %v16056_v0 }
 0x148   :  { %7380 = vmatpush1.bf16.msra.mxu0 %v11706_v14  ;;  %v11699_v14 = vld [vmem:[%s16051_s1 + $0x910] ss:$76 sps:$4 sm:$0xff]  }
 0x149   :  { %7381 = vmatprep.subr.bf16.mxu0 %v16056_v0 }
 0x14a   :  { %5744 = vmatmul.mubr.bf16.gmra.mrb[132].mxu1 %v11611_v13  ;;  %7101 = vmatmul.mubr.bf16.gmra.mrb[8].mxu0 %v11612_v15  ;;  %v11698_v13 = vld [vmem:[%s16051_s1 + $0x5f8] ss:$76 sps:$4 sm:$0xff]   ;;  %v11700_v15 = vld [vmem:[%s16051_s1 + $0x694] ss:$76 sps:$4 sm:$0xff]  }
 0x14b   :  { %5751 = vmatprep.mubr.bf16.mxu1 %v11615_v16  ;;  %7108 = vmatprep.mubr.bf16.mxu0 %v11617_v17  ;;  %v11702_v16 = vld [vmem:[%s16051_s1 + $0x9ac] ss:$76 sps:$4 sm:$0xff]   ;;  %v11807_v17 = vld [vmem:[%s16050_s2 + $0x120] sm:$0xff]  }
 0x14c   :  { %7382 = vmatpush1.bf16.msra.mxu0 %v11719_v18  ;;  %v11704_v18 = vld [vmem:[%s16051_s1 + $0x690] ss:$76 sps:$4 sm:$0xff]  }
 0x14d   :  { %7383 = vmatprep.subr.bf16.mxu0 %v16056_v0 }
 0x150   :  { %7384 = vmatpush1.bf16.msra.mxu0 %v11736_v28  ;;  %v11822_v28 = vld [vmem:[%s16050_s2 + $0x358] sm:$0xff]  }
 0x151   :  { %7385 = vmatprep.subr.bf16.mxu0 %v16056_v0 }
 0x152   :  { %5752 = vmatmul.mubr.bf16.gmra.mrb[136].mxu1 %v11619_v19  ;;  %7109 = vmatmul.mubr.bf16.gmra.mrb[12].mxu0 %v11620_v20  ;;  %v11705_v19 = vld [vmem:[%s16051_s1 + $0x9a8] ss:$76 sps:$4 sm:$0xff]   ;;  %v11707_v20 = vld [vmem:[%s16051_s1 + $0x72c] ss:$76 sps:$4 sm:$0xff]  }
 0x153   :  { %5759 = vmatprep.mubr.bf16.mxu1 %v11623_v21  ;;  %7116 = vmatprep.mubr.bf16.mxu0 %v11625_v22  ;;  %v11709_v21 = vld [vmem:[%s16051_s1 + $0xa44] ss:$76 sps:$4 sm:$0xff]  }
 0x154   :  { %7386 = vmatpush1.bf16.msra.mxu0 %v11752_v41  ;;  %v11814_v22 = vld [vmem:[%s16050_s2 + $0x350] sm:$0xff]   ;;  %v11838_v41 = vld [vmem:[%s16050_s2 + $0x378] sm:$0xff]  }
 0x155   :  { %7387 = vmatprep.subr.bf16.mxu0 %v16056_v0 }
 0x158   :  { %7388 = vmatpush1.bf16.msra.mxu0 %v11766_v51  ;;  %v11853_v51 = vld [vmem:[%s16050_s2 + $0x140] sm:$0xff]  }
 0x159   :  { %7389 = vmatprep.subr.bf16.mxu0 %v16056_v0 }
 0x15a   :  { %5760 = vmatmul.mubr.bf16.gmra.mrb[140].mxu1 %v11627_v23  ;;  %7117 = vmatmul.mubr.bf16.gmra.mrb[16].mxu0 %v11628_v24  ;;  %v11711_v23 = vld [vmem:[%s16051_s1 + $0x728] ss:$76 sps:$4 sm:$0xff]   ;;  %v11712_v24 = vld [vmem:[%s16051_s1 + $0xa40] ss:$76 sps:$4 sm:$0xff]  }
 0x15b   :  { %5800 = vmatprep.mubr.bf16.mxu1 %v11633_v25  ;;  %7124 = vmatprep.mubr.bf16.mxu0 %v11634_v26  ;;  %v11713_v25 = vld [vmem:[%s16051_s1 + $0x7c4] ss:$76 sps:$4 sm:$0xff]   ;;  %v11715_v26 = vld [vmem:[%s16051_s1 + $0xadc] ss:$76 sps:$4 sm:$0xff]  }
 0x15c   :  { %7390 = vmatpush1.bf16.msra.mxu0 %v11780_v61  ;;  %v11753_v61 = vld [vmem:[%s16051_s1 + $0xb54] ss:$76 sps:$4 sm:$0xff]  }
 0x15d   :  { %7391 = vmatprep.subr.bf16.mxu0 %v16056_v0 }
 0x160   :  { %7392 = vmatpush1.bf16.msra.mxu0 %v11798_v9  ;;  %v11765_v9 = vld [vmem:[%s16051_s1 + $0xf00] ss:$76 sps:$4 sm:$0xff]  }
 0x161   :  { %7393 = vmatprep.subr.bf16.mxu0 %v16056_v0 }
 0x162   :  { %5801 = vmatmul.mubr.bf16.vlgmr.msra.gmra.mrb[0].mxu1 %v11631_v27  ;;  %7125 = vmatmul.mubr.bf16.gmra.mrb[20].mxu0 %v11636_v29  ;;  %v11821_v27 = vld [vmem:[%s16050_s2 + $0x128] sm:$0xff]  }
 0x163   :  { %5808 = vmatprep.mubr.bf16.mxu1 %v11637_v30  ;;  %7132 = vmatprep.mubr.bf16.mxu0 %v11639_v31  ;;  %v11717_v29 = vld [vmem:[%s16051_s1 + $0x7c0] ss:$76 sps:$4 sm:$0xff]   ;;  %v11718_v30 = vld [vmem:[%s16051_s1 + $0xad8] ss:$76 sps:$4 sm:$0xff]   ;;  %v11720_v31 = vld [vmem:[%s16051_s1 + $0x85c] ss:$76 sps:$4 sm:$0xff]  }
 0x164   :  { %6090 = vmatpush1.bf16.msra.mxu1 %v11745_v36  ;;  %7394 = vmatpush1.bf16.msra.mxu0 %v11814_v22  ;;  %v11725_v36 = vld [vmem:[%s16051_s1 + $0xb70] ss:$76 sps:$4 sm:$0xff]   ;;  %v11787_v22 = vld [vmem:[%s16051_s1 + $0xe4c] ss:$76 sps:$4 sm:$0xff]  }
 0x165   :  { %6091 = vmatprep.subr.bf16.mxu1 %v16056_v0  ;;  %7395 = vmatprep.subr.bf16.mxu0 %v16056_v0 }
 0x168   :  { %6092 = vmatpush1.bf16.msra.mxu1 %v11759_v46  ;;  %7396 = vmatpush1.bf16.msra.mxu0 %v11822_v28  ;;  %v11846_v46 = vld [vmem:[%s16050_s2 + $0x138] sm:$0xff]   ;;  %v11799_v28 = vld [vmem:[%s16051_s1 + $0xee0] ss:$76 sps:$4 sm:$0xff]  }
 0x169   :  { %6093 = vmatprep.subr.bf16.mxu1 %v16056_v0  ;;  %7397 = vmatprep.subr.bf16.mxu0 %v16056_v0 }
 0x16a   :  { %5809 = vmatmul.mubr.bf16.gmra.mrb[4].mxu1 %v11641_v32  ;;  %7133 = vmatmul.mubr.bf16.gmra.mrb[24].mxu0 %v11642_v33  ;;  %v11722_v32 = vld [vmem:[%s16051_s1 + $0xb74] ss:$76 sps:$4 sm:$0xff]  }
 0x16b   :  { %5816 = vmatprep.mubr.bf16.mxu1 %v11643_v34  ;;  %7140 = vmatprep.mubr.bf16.mxu0 %v11645_v35  ;;  %v11829_v33 = vld [vmem:[%s16050_s2 + $0x360] sm:$0xff]   ;;  %v11830_v34 = vld [vmem:[%s16050_s2 + $0x368] sm:$0xff]  }
 0x16c   :  { %6094 = vmatpush1.bf16.msra.mxu1 %v11773_v56  ;;  %7398 = vmatpush1.bf16.msra.mxu0 %v11829_v33  ;;  %v11724_v35 = vld [vmem:[%s16051_s1 + $0x858] ss:$76 sps:$4 sm:$0xff]   ;;  %v11748_v56 = vld [vmem:[%s16051_s1 + $0xdd4] ss:$76 sps:$4 sm:$0xff]   ;;  %v11806_v33 = vld [vmem:[%s16051_s1 + $0x1290] ss:$76 sps:$4 sm:$0xff]  }
 0x16d   :  { %6095 = vmatprep.subr.bf16.mxu1 %v16056_v0  ;;  %7399 = vmatprep.subr.bf16.mxu0 %v16056_v0 }
 0x170   :  { %6096 = vmatpush1.bf16.msra.mxu1 %v11792_v7  ;;  %7400 = vmatpush1.bf16.msra.mxu0 %v11830_v34  ;;  %v11878_v7 = vld [vmem:[%s16050_s2 + $0x178] sm:$0xff]   ;;  %v11808_v34 = vld [vmem:[%s16051_s1 + $0x1014] ss:$76 sps:$4 sm:$0xff]  }
 0x171   :  { %6097 = vmatprep.subr.bf16.mxu1 %v16056_v0  ;;  %7401 = vmatprep.subr.bf16.mxu0 %v16056_v0 }
 0x172   :  { %5817 = vmatmul.mubr.bf16.gmra.mrb[8].mxu1 %v11647_v37  ;;  %7141 = vmatmul.mubr.bf16.gmra.mrb[28].mxu0 %v11648_v38  ;;  %v11726_v37 = vld [vmem:[%s16051_s1 + $0x8f4] ss:$76 sps:$4 sm:$0xff]   ;;  %v11728_v38 = vld [vmem:[%s16051_s1 + $0xc0c] ss:$76 sps:$4 sm:$0xff]  }
 0x173   :  { %5824 = vmatprep.mubr.bf16.mxu1 %v11649_v39  ;;  %7148 = vmatprep.mubr.bf16.mxu0 %v11651_v40  ;;  %v11837_v39 = vld [vmem:[%s16050_s2 + $0x370] sm:$0xff]  }
 0x174   :  { %6098 = vmatpush1.bf16.msra.mxu1 %v11807_v17  ;;  %v11839_v40 = vld [vmem:[%s16050_s2 + $0x130] sm:$0xff]   ;;  %7402 = vmatpush1.bf16.msra.mxu0 %v11837_v39 }
 0x175   :  { %6099 = vmatprep.subr.bf16.mxu1 %v16056_v0  ;;  %7403 = vmatprep.subr.bf16.mxu0 %v16056_v0  ;;  %v11779_v17 = vld [vmem:[%s16051_s1 + $0x1030] ss:$76 sps:$4 sm:$0xff]  }
 0x176   :  { %v11817_v39 = vld [vmem:[%s16051_s1 + $0x13c4] ss:$76 sps:$4 sm:$0xff]  }
 0x178   :  { %6100 = vmatpush1.bf16.msra.mxu1 %v11821_v27  ;;  %7404 = vmatpush1.bf16.msra.mxu0 %v11838_v41  ;;  %v11796_v27 = vld [vmem:[%s16051_s1 + $0x11fc] ss:$76 sps:$4 sm:$0xff]   ;;  %v11820_v41 = vld [vmem:[%s16051_s1 + $0x13c0] ss:$76 sps:$4 sm:$0xff]  }
 0x179   :  { %6101 = vmatprep.subr.bf16.mxu1 %v16056_v0  ;;  %7694 = vmatprep.subr.bf16.mxu0 %v16056_v0 }
 0x17a   :  { %5825 = vmatmul.mubr.bf16.gmra.mrb[12].mxu1 %v11653_v42  ;;  %7149 = vmatmul.mubr.bf16.gmra.mrb[32].mxu0 %v11654_v43  ;;  %v11730_v42 = vld [vmem:[%s16051_s1 + $0x8f0] ss:$76 sps:$4 sm:$0xff]   ;;  %v11731_v43 = vld [vmem:[%s16051_s1 + $0xc08] ss:$76 sps:$4 sm:$0xff]  }
 0x17b   :  { %5832 = vmatprep.mubr.bf16.mxu1 %v11655_v44  ;;  %7156 = vmatprep.mubr.bf16.mxu0 %v11657_v45  ;;  %v11732_v44 = vld [vmem:[%s16051_s1 + $0x98c] ss:$76 sps:$4 sm:$0xff]   ;;  %v11734_v45 = vld [vmem:[%s16051_s1 + $0xca4] ss:$76 sps:$4 sm:$0xff]  }
 0x17c   :  { %6102 = vmatpush1.bf16.msra.mxu1 %v11839_v40  ;;  %v11819_v40 = vld [vmem:[%s16051_s1 + $0x10a8] ss:$76 sps:$4 sm:$0xff]  }
 0x17d   :  { %6103 = vmatprep.subr.bf16.mxu1 %v16056_v0 }
 0x180   :  { %6104 = vmatpush1.bf16.msra.mxu1 %v11846_v46  ;;  %v11831_v46 = vld [vmem:[%s16051_s1 + $0x11dc] ss:$76 sps:$4 sm:$0xff]  }
 0x181   :  { %6105 = vmatprep.subr.bf16.mxu1 %v16056_v0 }
 0x182   :  { %5833 = vmatmul.mubr.bf16.gmra.mrb[16].mxu1 %v11659_v47  ;;  %7157 = vmatmul.mubr.bf16.gmra.mrb[36].mxu0 %v11660_v48  ;;  %v11737_v47 = vld [vmem:[%s16051_s1 + $0x988] ss:$76 sps:$4 sm:$0xff]   ;;  %v11738_v48 = vld [vmem:[%s16051_s1 + $0xca0] ss:$76 sps:$4 sm:$0xff]  }
 0x183   :  { %5840 = vmatprep.mubr.bf16.mxu1 %v11662_v49  ;;  %7164 = vmatprep.mubr.bf16.mxu0 %v11664_v50  ;;  %v11739_v49 = vld [vmem:[%s16051_s1 + $0xa24] ss:$76 sps:$4 sm:$0xff]   ;;  %v11741_v50 = vld [vmem:[%s16051_s1 + $0xd3c] ss:$76 sps:$4 sm:$0xff]  }
 0x184   :  { %6106 = vmatpush1.bf16.msra.mxu1 %v11853_v51  ;;  %v11844_v51 = vld [vmem:[%s16051_s1 + $0x34] ss:$76 sps:$4 sm:$0xff]  }
 0x185   :  { %6107 = vmatprep.subr.bf16.mxu1 %v16056_v0 }
 0x18a   :  { %5841 = vmatmul.mubr.bf16.gmra.mrb[20].mxu1 %v11666_v52  ;;  %7165 = vmatmul.mubr.bf16.gmra.mrb[40].mxu0 %v11667_v53  ;;  %v11854_v52 = vld [vmem:[%s16050_s2 + $0x148] sm:$0xff]  }
 0x18b   :  { %5848 = vmatprep.mubr.bf16.mxu1 %v11668_v54  ;;  %7172 = vmatprep.mubr.bf16.mxu0 %v11670_v55  ;;  %v11743_v53 = vld [vmem:[%s16051_s1 + $0xa20] ss:$76 sps:$4 sm:$0xff]   ;;  %v11744_v54 = vld [vmem:[%s16051_s1 + $0xd38] ss:$76 sps:$4 sm:$0xff]   ;;  %v11746_v55 = vld [vmem:[%s16051_s1 + $0xabc] ss:$76 sps:$4 sm:$0xff]  }
 0x18c   :  { %6108 = vmatpush1.bf16.msra.mxu1 %v11854_v52  ;;  %v11845_v52 = vld [vmem:[%s16051_s1 + $0x1270] ss:$76 sps:$4 sm:$0xff]  }
 0x18d   :  { %6109 = vmatprep.subr.bf16.mxu1 %v16056_v0 }
 0x192   :  { %5849 = vmatmul.mubr.bf16.gmra.mrb[24].mxu1 %v11672_v57  ;;  %7173 = vmatmul.mubr.bf16.gmra.mrb[44].mxu0 %v11673_v58  ;;  %v11861_v57 = vld [vmem:[%s16050_s2 + $0x150] sm:$0xff]   ;;  %v11862_v58 = vld [vmem:[%s16050_s2 + $0x158] sm:$0xff]  }
 0x193   :  { %5856 = vmatprep.mubr.bf16.mxu1 %v11674_v59  ;;  %7180 = vmatprep.mubr.bf16.mxu0 %v11676_v60  ;;  %v11750_v59 = vld [vmem:[%s16051_s1 + $0xab8] ss:$76 sps:$4 sm:$0xff]   ;;  %v11751_v60 = vld [vmem:[%s16051_s1 + $0xdd0] ss:$76 sps:$4 sm:$0xff]  }
 0x194   :  { %6110 = vmatpush1.bf16.msra.mxu1 %v11861_v57  ;;  %v11926_v57 = vld [vmem:[%s16050_s2 + $0x388] sm:$0xff]  }
 0x195   :  { %6111 = vmatprep.subr.bf16.mxu1 %v16056_v0 }
 0x198   :  { %6112 = vmatpush1.bf16.msra.mxu1 %v11862_v58  ;;  %v11851_v58 = vld [vmem:[%s16051_s1 + $0x1308] ss:$76 sps:$4 sm:$0xff]  }
 0x199   :  { %6113 = vmatprep.subr.bf16.mxu1 %v16056_v0 }
 0x19a   :  { %5857 = vmatmul.mubr.bf16.gmra.mrb[28].mxu1 %v11679_v62  ;;  %7181 = vmatmul.mubr.bf16.gmra.mrb[48].mxu0 %v11680_v63  ;;  %v11755_v62 = vld [vmem:[%s16051_s1 + $0xe6c] ss:$76 sps:$4 sm:$0xff]   ;;  %v11869_v63 = vld [vmem:[%s16050_s2 + $0x160] sm:$0xff]  }
 0x19b   :  { %5864 = vmatprep.mubr.bf16.mxu1 %v11681_v1  ;;  %7188 = vmatprep.mubr.bf16.mxu0 %v11683_v2  ;;  %v11870_v1 = vld [vmem:[%s16050_s2 + $0x168] sm:$0xff]   ;;  %v11757_v2 = vld [vmem:[%s16051_s1 + $0xb50] ss:$76 sps:$4 sm:$0xff]  }
 0x19c   :  { %6114 = vmatpush1.bf16.msra.mxu1 %v11869_v63  ;;  %v11954_v63 = vld [vmem:[%s16050_s2 + $0x398] sm:$0xff]  }
 0x19d   :  { %6115 = vmatprep.subr.bf16.mxu1 %v16056_v0 }
 0x1a0   :  { %6116 = vmatpush1.bf16.msra.mxu1 %v11870_v1  ;;  %v11859_v1 = vld [vmem:[%s16051_s1 + $0x13a0] ss:$76 sps:$4 sm:$0xff]  }
 0x1a1   :  { %6117 = vmatprep.subr.bf16.mxu1 %v16056_v0 }
 0x1a2   :  { %5865 = vmatmul.mubr.bf16.gmra.mrb[32].mxu1 %v11685_v3  ;;  %7189 = vmatmul.mubr.bf16.gmra.mrb[52].mxu0 %v11686_v4  ;;  %v11758_v3 = vld [vmem:[%s16051_s1 + $0xe68] ss:$76 sps:$4 sm:$0xff]   ;;  %v11760_v4 = vld [vmem:[%s16051_s1 + $0xbec] ss:$76 sps:$4 sm:$0xff]  }
 0x1a3   :  { %5872 = vmatprep.mubr.bf16.mxu1 %v11687_v5  ;;  %7196 = vmatprep.mubr.bf16.mxu0 %v11689_v6  ;;  %v11762_v5 = vld [vmem:[%s16051_s1 + $0xf04] ss:$76 sps:$4 sm:$0xff]  }
 0x1a4   :  { %v11877_v6 = vld [vmem:[%s16050_s2 + $0x170] sm:$0xff]  }
 0x1a5   :  { %6118 = vmatpush1.bf16.msra.mxu1 %v11877_v6  ;;  %v11867_v6 = vld [vmem:[%s16051_s1 + $0x1438] ss:$76 sps:$4 sm:$0xff]  }
 0x1a6   :  { %6119 = vmatprep.subr.bf16.mxu1 %v16056_v0 }
 0x1a9   :  { %6120 = vmatpush1.bf16.msra.mxu1 %v11878_v7  ;;  %v11868_v7 = vld [vmem:[%s16051_s1 + $0x1f8] ss:$76 sps:$4 sm:$0xff]  }
 0x1aa   :  { %5873 = vmatmul.mubr.bf16.gmra.mrb[36].mxu1 %v11691_v8  ;;  %7197 = vmatmul.mubr.bf16.gmra.mrb[56].mxu0 %v11692_v10  ;;  %v11764_v8 = vld [vmem:[%s16051_s1 + $0xbe8] ss:$76 sps:$4 sm:$0xff]   ;;  %v11767_v10 = vld [vmem:[%s16051_s1 + $0xc84] ss:$76 sps:$4 sm:$0xff]  }
 0x1ab   :  { %5880 = vmatprep.mubr.bf16.mxu1 %v11694_v11  ;;  %7204 = vmatprep.mubr.bf16.mxu0 %v11696_v12  ;;  %v11769_v11 = vld [vmem:[%s16051_s1 + $0xf9c] ss:$76 sps:$4 sm:$0xff]   ;;  %v11771_v12 = vld [vmem:[%s16051_s1 + $0xc80] ss:$76 sps:$4 sm:$0xff]  }
 0x1ac   :  { %6410 = vmatprep.subr.bf16.mxu1 %v16056_v0 }
 0x1b2   :  { %5881 = vmatmul.mubr.bf16.gmra.mrb[40].mxu1 %v11698_v13  ;;  %7205 = vmatmul.mubr.bf16.gmra.mrb[60].mxu0 %v11699_v14  ;;  %v11772_v13 = vld [vmem:[%s16051_s1 + $0xf98] ss:$76 sps:$4 sm:$0xff]   ;;  %v11774_v14 = vld [vmem:[%s16051_s1 + $0xd1c] ss:$76 sps:$4 sm:$0xff]  }
 0x1b3   :  { %5888 = vmatprep.mubr.bf16.mxu1 %v11700_v15  ;;  %7212 = vmatprep.mubr.bf16.mxu0 %v11702_v16  ;;  %v11776_v15 = vld [vmem:[%s16051_s1 + $0x1034] ss:$76 sps:$4 sm:$0xff]   ;;  %v11778_v16 = vld [vmem:[%s16051_s1 + $0xd18] ss:$76 sps:$4 sm:$0xff]  }
 0x1ba   :  { %5889 = vmatmul.mubr.bf16.gmra.mrb[44].mxu1 %v11704_v18  ;;  %7213 = vmatmul.mubr.bf16.gmra.mrb[64].mxu0 %v11705_v19  ;;  %v11781_v18 = vld [vmem:[%s16051_s1 + $0xdb4] ss:$76 sps:$4 sm:$0xff]   ;;  %v11783_v19 = vld [vmem:[%s16051_s1 + $0x10cc] ss:$76 sps:$4 sm:$0xff]  }
 0x1bb   :  { %5896 = vmatprep.mubr.bf16.mxu1 %v11707_v20  ;;  %7220 = vmatprep.mubr.bf16.mxu0 %v11709_v21  ;;  %v11785_v20 = vld [vmem:[%s16051_s1 + $0xdb0] ss:$76 sps:$4 sm:$0xff]   ;;  %v11786_v21 = vld [vmem:[%s16051_s1 + $0x10c8] ss:$76 sps:$4 sm:$0xff]  }
 0x1c2   :  { %5897 = vmatmul.mubr.bf16.gmra.mrb[48].mxu1 %v11711_v23  ;;  %7221 = vmatmul.mubr.bf16.gmra.mrb[68].mxu0 %v11712_v24  ;;  %v11789_v23 = vld [vmem:[%s16051_s1 + $0x1164] ss:$76 sps:$4 sm:$0xff]   ;;  %v11791_v24 = vld [vmem:[%s16051_s1 + $0xe48] ss:$76 sps:$4 sm:$0xff]  }
 0x1c3   :  { %5904 = vmatprep.mubr.bf16.mxu1 %v11713_v25  ;;  %7228 = vmatprep.mubr.bf16.mxu0 %v11715_v26  ;;  %v11793_v25 = vld [vmem:[%s16051_s1 + $0x1160] ss:$76 sps:$4 sm:$0xff]   ;;  %v11794_v26 = vld [vmem:[%s16051_s1 + $0xee4] ss:$76 sps:$4 sm:$0xff]  }
 0x1ca   :  { %5905 = vmatmul.mubr.bf16.gmra.mrb[52].mxu1 %v11717_v29  ;;  %7229 = vmatmul.mubr.bf16.gmra.mrb[72].mxu0 %v11718_v30  ;;  %v11800_v29 = vld [vmem:[%s16051_s1 + $0x11f8] ss:$76 sps:$4 sm:$0xff]   ;;  %v11801_v30 = vld [vmem:[%s16051_s1 + $0xf7c] ss:$76 sps:$4 sm:$0xff]  }
 0x1cb   :  { %5912 = vmatprep.mubr.bf16.mxu1 %v11720_v31  ;;  %7236 = vmatprep.mubr.bf16.mxu0 %v11722_v32  ;;  %v11803_v31 = vld [vmem:[%s16051_s1 + $0x1294] ss:$76 sps:$4 sm:$0xff]   ;;  %v11805_v32 = vld [vmem:[%s16051_s1 + $0xf78] ss:$76 sps:$4 sm:$0xff]  }
 0x1d2   :  { %5913 = vmatmul.mubr.bf16.gmra.mrb[56].mxu1 %v11724_v35  ;;  %7237 = vmatmul.mubr.bf16.gmra.mrb[76].mxu0 %v11725_v36  ;;  %v11810_v35 = vld [vmem:[%s16051_s1 + $0x132c] ss:$76 sps:$4 sm:$0xff]   ;;  %v11812_v36 = vld [vmem:[%s16051_s1 + $0x1010] ss:$76 sps:$4 sm:$0xff]  }
 0x1d3   :  { %5920 = vmatprep.mubr.bf16.mxu1 %v11726_v37  ;;  %7244 = vmatprep.mubr.bf16.mxu0 %v11728_v38  ;;  %v11813_v37 = vld [vmem:[%s16051_s1 + $0x1328] ss:$76 sps:$4 sm:$0xff]   ;;  %v11815_v38 = vld [vmem:[%s16051_s1 + $0x10ac] ss:$76 sps:$4 sm:$0xff]  }
 0x1da   :  { %5921 = vmatmul.mubr.bf16.gmra.mrb[60].mxu1 %v11730_v42  ;;  %7245 = vmatmul.mubr.bf16.gmra.mrb[80].mxu0 %v11731_v43  ;;  %v11823_v42 = vld [vmem:[%s16051_s1 + $0x1144] ss:$76 sps:$4 sm:$0xff]   ;;  %v11825_v43 = vld [vmem:[%s16051_s1 + $0x145c] ss:$76 sps:$4 sm:$0xff]  }
 0x1db   :  { %5928 = vmatprep.mubr.bf16.mxu1 %v11732_v44  ;;  %7252 = vmatprep.mubr.bf16.mxu0 %v11734_v45  ;;  %v11827_v44 = vld [vmem:[%s16051_s1 + $0x1140] ss:$76 sps:$4 sm:$0xff]   ;;  %v11828_v45 = vld [vmem:[%s16051_s1 + $0x1458] ss:$76 sps:$4 sm:$0xff]  }
 0x1e2   :  { %5929 = vmatmul.mubr.bf16.gmra.mrb[64].mxu1 %v11737_v47  ;;  %7253 = vmatmul.mubr.bf16.gmra.mrb[84].mxu0 %v11738_v48  ;;  %v11833_v47 = vld [vmem:[%s16051_s1 + $0x14f4] ss:$76 sps:$4 sm:$0xff]   ;;  %v11835_v48 = vld [vmem:[%s16051_s1 + $0x11d8] ss:$76 sps:$4 sm:$0xff]  }
 0x1e3   :  { %5936 = vmatprep.mubr.bf16.mxu1 %v11739_v49  ;;  %7260 = vmatprep.mubr.bf16.mxu0 %v11741_v50  ;;  %v11836_v49 = vld [vmem:[%s16051_s1 + $0x14f0] ss:$76 sps:$4 sm:$0xff]   ;;  %v11840_v50 = vld [vmem:[%s16051_s1 + $0x1274] ss:$76 sps:$4 sm:$0xff]  }
 0x1ea   :  { %5937 = vmatmul.mubr.bf16.gmra.mrb[68].mxu1 %v11743_v53  ;;  %7261 = vmatmul.mubr.bf16.gmra.mrb[88].mxu0 %v11744_v54  ;;  %v11842_v53 = vld [vmem:[%s16051_s1 + $0x30] ss:$76 sps:$4 sm:$0xff]   ;;  %v11847_v54 = vld [vmem:[%s16051_s1 + $0x130c] ss:$76 sps:$4 sm:$0xff]  }
 0x1eb   :  { %5944 = vmatprep.mubr.bf16.mxu1 %v11746_v55  ;;  %7268 = vmatprep.mubr.bf16.mxu0 %v11748_v56  ;;  %v11849_v55 = vld [vmem:[%s16051_s1 + $0xcc] ss:$76 sps:$4 sm:$0xff]   ;;  %v11909_v56 = vld [vmem:[%s16050_s2 + $0x380] sm:$0xff]  }
 0x1f2   :  { %5945 = vmatmul.mubr.bf16.gmra.mrb[72].mxu1 %v11750_v59  ;;  %7269 = vmatmul.mubr.bf16.gmra.mrb[92].mxu0 %v11751_v60  ;;  %v11852_v59 = vld [vmem:[%s16051_s1 + $0xc8] ss:$76 sps:$4 sm:$0xff]   ;;  %v11855_v60 = vld [vmem:[%s16051_s1 + $0x13a4] ss:$76 sps:$4 sm:$0xff]  }
 0x1f3   :  { %5952 = vmatprep.mubr.bf16.mxu1 %v11753_v61  ;;  %7276 = vmatprep.mubr.bf16.mxu0 %v11755_v62  ;;  %v11857_v61 = vld [vmem:[%s16051_s1 + $0x164] ss:$76 sps:$4 sm:$0xff]  }
 0x1f4   :  { %v11941_v62 = vld [vmem:[%s16050_s2 + $0x390] sm:$0xff]  }
 0x1fa   :  { %5953 = vmatmul.mubr.bf16.gmra.mrb[76].mxu1 %v11757_v2  ;;  %7277 = vmatmul.mubr.bf16.gmra.mrb[96].mxu0 %v11758_v3  ;;  %v11860_v2 = vld [vmem:[%s16051_s1 + $0x160] ss:$76 sps:$4 sm:$0xff]   ;;  %v11863_v3 = vld [vmem:[%s16051_s1 + $0x143c] ss:$76 sps:$4 sm:$0xff]  }
 0x1fb   :  { %5960 = vmatprep.mubr.bf16.mxu1 %v11760_v4  ;;  %7284 = vmatprep.mubr.bf16.mxu0 %v11762_v5  ;;  %v11865_v4 = vld [vmem:[%s16051_s1 + $0x1fc] ss:$76 sps:$4 sm:$0xff]   ;;  %v11967_v5 = vld [vmem:[%s16050_s2 + $0x3a0] sm:$0xff]  }
 0x202   :  { %5961 = vmatmul.mubr.bf16.gmra.mrb[80].mxu1 %v11764_v8  ;;  %7285 = vmatmul.mubr.bf16.gmra.mrb[100].mxu0 %v11765_v9  ;;  %v11871_v8 = vld [vmem:[%s16051_s1 + $0x14d4] ss:$76 sps:$4 sm:$0xff]  }
 0x203   :  { %5968 = vmatprep.mubr.bf16.mxu1 %v11767_v10  ;;  %7292 = vmatprep.mubr.bf16.mxu0 %v11769_v11  ;;  %v11873_v9 = vld [vmem:[%s16051_s1 + $0x294] ss:$76 sps:$4 sm:$0xff]   ;;  %v11875_v10 = vld [vmem:[%s16051_s1 + $0x14d0] ss:$76 sps:$4 sm:$0xff]  }
 0x204   :  { %v11876_v11 = vld [vmem:[%s16051_s1 + $0x290] ss:$76 sps:$4 sm:$0xff]  }
 0x20a   :  { %5969 = vmatmul.mubr.bf16.gmra.mrb[84].mxu1 %v11771_v12  ;;  %7293 = vmatmul.mubr.bf16.gmra.mrb[104].mxu0 %v11772_v13  ;;  %v11881_v12 = vld [vmem:[%s16051_s1 + $0x14] ss:$76 sps:$4 sm:$0xff]   ;;  %v11882_v13 = vld [vmem:[%s16051_s1 + $0x32c] ss:$76 sps:$4 sm:$0xff]  }
 0x20b   :  { %5976 = vmatprep.mubr.bf16.mxu1 %v11774_v14  ;;  %7300 = vmatprep.mubr.bf16.mxu0 %v11776_v15  ;;  %v11984_v14 = vld [vmem:[%s16050_s2 + $0x3a8] sm:$0xff]   ;;  %v11879_v15 = vld [vmem:[%s16051_s1 + $0x10] ss:$76 sps:$4 sm:$0xff]  }
 0x212   :  { %5977 = vmatmul.mubr.bf16.gmra.mrb[88].mxu1 %v11778_v16  ;;  %7301 = vmatmul.mubr.bf16.gmra.mrb[108].mxu0 %v11779_v17  ;;  %v11884_v16 = vld [vmem:[%s16051_s1 + $0x328] ss:$76 sps:$4 sm:$0xff]   ;;  %v11885_v17 = vld [vmem:[%s16051_s1 + $0xac] ss:$76 sps:$4 sm:$0xff]  }
 0x213   :  { %5984 = vmatprep.mubr.bf16.mxu1 %v11781_v18  ;;  %7308 = vmatprep.mubr.bf16.mxu0 %v11783_v19  ;;  %v11887_v18 = vld [vmem:[%s16051_s1 + $0x3c4] ss:$76 sps:$4 sm:$0xff]   ;;  %v11889_v19 = vld [vmem:[%s16051_s1 + $0xa8] ss:$76 sps:$4 sm:$0xff]  }
 0x21a   :  { %5985 = vmatmul.mubr.bf16.gmra.mrb[92].mxu1 %v11785_v20  ;;  %7309 = vmatmul.mubr.bf16.gmra.mrb[112].mxu0 %v11786_v21  ;;  %v11890_v20 = vld [vmem:[%s16051_s1 + $0x3c0] ss:$76 sps:$4 sm:$0xff]   ;;  %v11891_v21 = vld [vmem:[%s16051_s1 + $0x144] ss:$76 sps:$4 sm:$0xff]  }
 0x21b   :  { %5992 = vmatprep.mubr.bf16.mxu1 %v11787_v22  ;;  %7316 = vmatprep.mubr.bf16.mxu0 %v11789_v23  ;;  %v11893_v22 = vld [vmem:[%s16051_s1 + $0x45c] ss:$76 sps:$4 sm:$0xff]   ;;  %v11993_v23 = vld [vmem:[%s16050_s2 + $0x180] sm:$0xff]  }
 0x222   :  { %5993 = vmatmul.mubr.bf16.gmra.mrb[96].mxu1 %v11791_v24  ;;  %7317 = vmatmul.mubr.bf16.gmra.mrb[116].mxu0 %v11793_v25  ;;  %v11895_v24 = vld [vmem:[%s16051_s1 + $0x140] ss:$76 sps:$4 sm:$0xff]   ;;  %v11896_v25 = vld [vmem:[%s16051_s1 + $0x458] ss:$76 sps:$4 sm:$0xff]  }
 0x223   :  { %6000 = vmatprep.mubr.bf16.mxu1 %v11794_v26  ;;  %7324 = vmatprep.mubr.bf16.mxu0 %v11796_v27  ;;  %v11897_v26 = vld [vmem:[%s16051_s1 + $0x1dc] ss:$76 sps:$4 sm:$0xff]   ;;  %v11899_v27 = vld [vmem:[%s16051_s1 + $0x4f4] ss:$76 sps:$4 sm:$0xff]  }
 0x22a   :  { %6001 = vmatmul.mubr.bf16.gmra.mrb[100].mxu1 %v11799_v28  ;;  %7325 = vmatmul.mubr.bf16.gmra.mrb[120].mxu0 %v11800_v29  ;;  %v12000_v28 = vld [vmem:[%s16050_s2 + $0x3b0] sm:$0xff]   ;;  %v11901_v29 = vld [vmem:[%s16051_s1 + $0x1d8] ss:$76 sps:$4 sm:$0xff]  }
 0x22b   :  { %6008 = vmatprep.mubr.bf16.mxu1 %v11801_v30  ;;  %7332 = vmatprep.mubr.bf16.mxu0 %v11803_v31  ;;  %v11902_v30 = vld [vmem:[%s16051_s1 + $0x4f0] ss:$76 sps:$4 sm:$0xff]   ;;  %v11903_v31 = vld [vmem:[%s16051_s1 + $0x274] ss:$76 sps:$4 sm:$0xff]  }
 0x232   :  { %6009 = vmatmul.mubr.bf16.gmra.mrb[104].mxu1 %v11805_v32  ;;  %7333 = vmatmul.mubr.bf16.gmra.mrb[124].mxu0 %v11806_v33  ;;  %v11905_v32 = vld [vmem:[%s16051_s1 + $0x58c] ss:$76 sps:$4 sm:$0xff]  }
 0x233   :  { %6016 = vmatprep.mubr.bf16.mxu1 %v11808_v34  ;;  %7340 = vmatprep.mubr.bf16.mxu0 %v11810_v35  ;;  %v12007_v33 = vld [vmem:[%s16050_s2 + $0x188] sm:$0xff]   ;;  %v11907_v34 = vld [vmem:[%s16051_s1 + $0x270] ss:$76 sps:$4 sm:$0xff]  }
 0x234   :  { %v11908_v35 = vld [vmem:[%s16051_s1 + $0x588] ss:$76 sps:$4 sm:$0xff]  }
 0x23a   :  { %6017 = vmatmul.mubr.bf16.gmra.mrb[108].mxu1 %v11812_v36  ;;  %7341 = vmatmul.mubr.bf16.gmra.mrb[128].mxu0 %v11813_v37  ;;  %v11910_v36 = vld [vmem:[%s16051_s1 + $0x30c] ss:$76 sps:$4 sm:$0xff]   ;;  %v11912_v37 = vld [vmem:[%s16051_s1 + $0x624] ss:$76 sps:$4 sm:$0xff]  }
 0x23b   :  { %6024 = vmatprep.mubr.bf16.mxu1 %v11815_v38  ;;  %7348 = vmatprep.mubr.bf16.mxu0 %v11817_v39  ;;  %v12014_v38 = vld [vmem:[%s16050_s2 + $0x3b8] sm:$0xff]   ;;  %v11914_v39 = vld [vmem:[%s16051_s1 + $0x308] ss:$76 sps:$4 sm:$0xff]  }
 0x242   :  { %6025 = vmatmul.mubr.bf16.gmra.mrb[112].mxu1 %v11819_v40  ;;  %7349 = vmatmul.mubr.bf16.gmra.mrb[132].mxu0 %v11820_v41  ;;  %v11915_v40 = vld [vmem:[%s16051_s1 + $0x620] ss:$76 sps:$4 sm:$0xff]   ;;  %v11916_v41 = vld [vmem:[%s16051_s1 + $0x3a4] ss:$76 sps:$4 sm:$0xff]  }
 0x243   :  { %6032 = vmatprep.mubr.bf16.mxu1 %v11823_v42  ;;  %7356 = vmatprep.mubr.bf16.mxu0 %v11825_v43  ;;  %v11918_v42 = vld [vmem:[%s16051_s1 + $0x6bc] ss:$76 sps:$4 sm:$0xff]   ;;  %v12021_v43 = vld [vmem:[%s16050_s2 + $0x190] sm:$0xff]  }
 0x24a   :  { %6033 = vmatmul.mubr.bf16.gmra.mrb[116].mxu1 %v11827_v44  ;;  %7357 = vmatmul.mubr.bf16.gmra.mrb[136].mxu0 %v11828_v45  ;;  %v11920_v44 = vld [vmem:[%s16051_s1 + $0x3a0] ss:$76 sps:$4 sm:$0xff]   ;;  %v11921_v45 = vld [vmem:[%s16051_s1 + $0x6b8] ss:$76 sps:$4 sm:$0xff]  }
 0x24b   :  { %6040 = vmatprep.mubr.bf16.mxu1 %v11831_v46  ;;  %7364 = vmatprep.mubr.bf16.mxu0 %v11833_v47  ;;  %v11922_v46 = vld [vmem:[%s16051_s1 + $0x43c] ss:$76 sps:$4 sm:$0xff]   ;;  %v11924_v47 = vld [vmem:[%s16051_s1 + $0x754] ss:$76 sps:$4 sm:$0xff]  }
 0x252   :  { %6041 = vmatmul.mubr.bf16.gmra.mrb[120].mxu1 %v11835_v48  ;;  %7365 = vmatmul.mubr.bf16.gmra.mrb[140].mxu0 %v11836_v49  ;;  %v12028_v48 = vld [vmem:[%s16050_s2 + $0x3c0] sm:$0xff]  }
 0x253   :  { %6048 = vmatprep.mubr.bf16.mxu1 %v11840_v50  ;;  %7405 = vmatprep.mubr.bf16.mxu0 %v11844_v51  ;;  %v11927_v49 = vld [vmem:[%s16051_s1 + $0x438] ss:$76 sps:$4 sm:$0xff]   ;;  %v11928_v50 = vld [vmem:[%s16051_s1 + $0x750] ss:$76 sps:$4 sm:$0xff]   ;;  %v11929_v51 = vld [vmem:[%s16051_s1 + $0x4d4] ss:$76 sps:$4 sm:$0xff]  }
 0x25a   :  { %6049 = vmatmul.mubr.bf16.gmra.mrb[124].mxu1 %v11845_v52  ;;  %7406 = vmatmul.mubr.bf16.vlgmr.msra.gmra.mrb[0].mxu0 %v11842_v53  ;;  %v11931_v52 = vld [vmem:[%s16051_s1 + $0x7ec] ss:$76 sps:$4 sm:$0xff]   ;;  %v11933_v53 = vld [vmem:[%s16051_s1 + $0x4d0] ss:$76 sps:$4 sm:$0xff]  }
 0x25b   :  { %6056 = vmatprep.mubr.bf16.mxu1 %v11847_v54  ;;  %7413 = vmatprep.mubr.bf16.mxu0 %v11849_v55  ;;  %v11934_v54 = vld [vmem:[%s16051_s1 + $0x7e8] ss:$76 sps:$4 sm:$0xff]   ;;  %v11935_v55 = vld [vmem:[%s16051_s1 + $0x56c] ss:$76 sps:$4 sm:$0xff]  }
 0x25c   :  { %7695 = vmatpush1.bf16.msra.mxu0 %v11909_v56  ;;  %v11937_v56 = vld [vmem:[%s16051_s1 + $0x884] ss:$76 sps:$4 sm:$0xff]  }
 0x25d   :  { %7696 = vmatprep.subr.bf16.mxu0 %v16056_v0 }
 0x260   :  { %7697 = vmatpush1.bf16.msra.mxu0 %v11926_v57  ;;  %v12040_v57 = vld [vmem:[%s16050_s2 + $0x198] sm:$0xff]  }
 0x261   :  { %7698 = vmatprep.subr.bf16.mxu0 %v16056_v0 }
 0x262   :  { %6057 = vmatmul.mubr.bf16.gmra.mrb[128].mxu1 %v11851_v58  ;;  %7414 = vmatmul.mubr.bf16.gmra.mrb[4].mxu0 %v11852_v59  ;;  %v12046_v58 = vld [vmem:[%s16050_s2 + $0x3c8] sm:$0xff]  }
 0x263   :  { %6064 = vmatprep.mubr.bf16.mxu1 %v11855_v60  ;;  %7421 = vmatprep.mubr.bf16.mxu0 %v11857_v61  ;;  %v11939_v59 = vld [vmem:[%s16051_s1 + $0x568] ss:$76 sps:$4 sm:$0xff]   ;;  %v11940_v60 = vld [vmem:[%s16051_s1 + $0x880] ss:$76 sps:$4 sm:$0xff]   ;;  %v11942_v61 = vld [vmem:[%s16051_s1 + $0x604] ss:$76 sps:$4 sm:$0xff]  }
 0x264   :  { %7699 = vmatpush1.bf16.msra.mxu0 %v11941_v62  ;;  %v11944_v62 = vld [vmem:[%s16051_s1 + $0x91c] ss:$76 sps:$4 sm:$0xff]  }
 0x265   :  { %7700 = vmatprep.subr.bf16.mxu0 %v16056_v0 }
 0x268   :  { %7701 = vmatpush1.bf16.msra.mxu0 %v11954_v63  ;;  %v11946_v63 = vld [vmem:[%s16051_s1 + $0x600] ss:$76 sps:$4 sm:$0xff]  }
 0x269   :  { %7702 = vmatprep.subr.bf16.mxu0 %v16056_v0 }
 0x26a   :  { %6065 = vmatmul.mubr.bf16.gmra.mrb[132].mxu1 %v11859_v1  ;;  %7422 = vmatmul.mubr.bf16.gmra.mrb[8].mxu0 %v11860_v2  ;;  %v11947_v1 = vld [vmem:[%s16051_s1 + $0x918] ss:$76 sps:$4 sm:$0xff]   ;;  %v11948_v2 = vld [vmem:[%s16051_s1 + $0x69c] ss:$76 sps:$4 sm:$0xff]  }
 0x26b   :  { %6072 = vmatprep.mubr.bf16.mxu1 %v11863_v3  ;;  %7429 = vmatprep.mubr.bf16.mxu0 %v11865_v4  ;;  %v11950_v3 = vld [vmem:[%s16051_s1 + $0x9b4] ss:$76 sps:$4 sm:$0xff]  }
 0x26c   :  { %7703 = vmatpush1.bf16.msra.mxu0 %v11967_v5  ;;  %v12055_v4 = vld [vmem:[%s16050_s2 + $0x1a0] sm:$0xff]  }
 0x26d   :  { %7704 = vmatprep.subr.bf16.mxu0 %v16056_v0  ;;  %v11952_v5 = vld [vmem:[%s16051_s1 + $0x698] ss:$76 sps:$4 sm:$0xff]  }
 0x270   :  { %7705 = vmatpush1.bf16.msra.mxu0 %v11984_v14  ;;  %v12069_v14 = vld [vmem:[%s16050_s2 + $0x1a8] sm:$0xff]  }
 0x271   :  { %7706 = vmatprep.subr.bf16.mxu0 %v16056_v0 }
 0x272   :  { %6073 = vmatmul.mubr.bf16.gmra.mrb[136].mxu1 %v11867_v6  ;;  %7430 = vmatmul.mubr.bf16.gmra.mrb[12].mxu0 %v11868_v7  ;;  %v11953_v6 = vld [vmem:[%s16051_s1 + $0x9b0] ss:$76 sps:$4 sm:$0xff]   ;;  %v11955_v7 = vld [vmem:[%s16051_s1 + $0x734] ss:$76 sps:$4 sm:$0xff]  }
 0x273   :  { %6080 = vmatprep.mubr.bf16.mxu1 %v11871_v8  ;;  %7437 = vmatprep.mubr.bf16.mxu0 %v11873_v9  ;;  %v11957_v8 = vld [vmem:[%s16051_s1 + $0xa4c] ss:$76 sps:$4 sm:$0xff]   ;;  %v12062_v9 = vld [vmem:[%s16050_s2 + $0x3d0] sm:$0xff]  }
 0x274   :  { %7707 = vmatpush1.bf16.msra.mxu0 %v12000_v28  ;;  %v12086_v28 = vld [vmem:[%s16050_s2 + $0x3f8] sm:$0xff]  }
 0x275   :  { %7708 = vmatprep.subr.bf16.mxu0 %v16056_v0 }
 0x278   :  { %7709 = vmatpush1.bf16.msra.mxu0 %v12014_v38  ;;  %v12101_v38 = vld [vmem:[%s16050_s2 + $0x1c0] sm:$0xff]  }
 0x279   :  { %7710 = vmatprep.subr.bf16.mxu0 %v16056_v0 }
 0x27a   :  { %6081 = vmatmul.mubr.bf16.gmra.mrb[140].mxu1 %v11875_v10  ;;  %7438 = vmatmul.mubr.bf16.gmra.mrb[16].mxu0 %v11876_v11  ;;  %v11959_v10 = vld [vmem:[%s16051_s1 + $0x730] ss:$76 sps:$4 sm:$0xff]   ;;  %v11960_v11 = vld [vmem:[%s16051_s1 + $0xa48] ss:$76 sps:$4 sm:$0xff]  }
 0x27b   :  { %6121 = vmatprep.mubr.bf16.mxu1 %v11881_v12  ;;  %7445 = vmatprep.mubr.bf16.mxu0 %v11882_v13  ;;  %v11961_v12 = vld [vmem:[%s16051_s1 + $0x7cc] ss:$76 sps:$4 sm:$0xff]   ;;  %v11963_v13 = vld [vmem:[%s16051_s1 + $0xae4] ss:$76 sps:$4 sm:$0xff]  }
 0x27c   :  { %7711 = vmatpush1.bf16.msra.mxu0 %v12028_v48  ;;  %v12001_v48 = vld [vmem:[%s16051_s1 + $0xb5c] ss:$76 sps:$4 sm:$0xff]  }
 0x27d   :  { %7712 = vmatprep.subr.bf16.mxu0 %v16056_v0 }
 0x280   :  { %7713 = vmatpush1.bf16.msra.mxu0 %v12046_v58  ;;  %v12012_v58 = vld [vmem:[%s16051_s1 + $0xbf0] ss:$76 sps:$4 sm:$0xff]  }
 0x281   :  { %7714 = vmatprep.subr.bf16.mxu0 %v16056_v0 }
 0x282   :  { %6122 = vmatmul.mubr.bf16.vlgmr.msra.gmra.mrb[0].mxu1 %v11879_v15  ;;  %7446 = vmatmul.mubr.bf16.gmra.mrb[20].mxu0 %v11884_v16  ;;  %v12070_v15 = vld [vmem:[%s16050_s2 + $0x3d8] sm:$0xff]   ;;  %v11965_v16 = vld [vmem:[%s16051_s1 + $0x7c8] ss:$76 sps:$4 sm:$0xff]  }
 0x283   :  { %6129 = vmatprep.mubr.bf16.mxu1 %v11885_v17  ;;  %7453 = vmatprep.mubr.bf16.mxu0 %v11887_v18  ;;  %v11966_v17 = vld [vmem:[%s16051_s1 + $0xae0] ss:$76 sps:$4 sm:$0xff]   ;;  %v11968_v18 = vld [vmem:[%s16051_s1 + $0x864] ss:$76 sps:$4 sm:$0xff]  }
 0x284   :  { %6411 = vmatpush1.bf16.msra.mxu1 %v11993_v23  ;;  %7715 = vmatpush1.bf16.msra.mxu0 %v12062_v9  ;;  %v11973_v23 = vld [vmem:[%s16051_s1 + $0xb78] ss:$76 sps:$4 sm:$0xff]   ;;  %v12035_v9 = vld [vmem:[%s16051_s1 + $0xe54] ss:$76 sps:$4 sm:$0xff]  }
 0x285   :  { %6412 = vmatprep.subr.bf16.mxu1 %v16056_v0  ;;  %7716 = vmatprep.subr.bf16.mxu0 %v16056_v0 }
 0x288   :  { %6413 = vmatpush1.bf16.msra.mxu1 %v12007_v33  ;;  %7717 = vmatpush1.bf16.msra.mxu0 %v12070_v15  ;;  %v12094_v33 = vld [vmem:[%s16050_s2 + $0x1b8] sm:$0xff]   ;;  %v12047_v15 = vld [vmem:[%s16051_s1 + $0xee8] ss:$76 sps:$4 sm:$0xff]  }
 0x289   :  { %6414 = vmatprep.subr.bf16.mxu1 %v16056_v0  ;;  %7718 = vmatprep.subr.bf16.mxu0 %v16056_v0 }
 0x28a   :  { %6130 = vmatmul.mubr.bf16.gmra.mrb[4].mxu1 %v11889_v19  ;;  %7454 = vmatmul.mubr.bf16.gmra.mrb[24].mxu0 %v11890_v20  ;;  %v11970_v19 = vld [vmem:[%s16051_s1 + $0xb7c] ss:$76 sps:$4 sm:$0xff]   ;;  %v12077_v20 = vld [vmem:[%s16050_s2 + $0x3e0] sm:$0xff]  }
 0x28b   :  { %6137 = vmatprep.mubr.bf16.mxu1 %v11891_v21  ;;  %7461 = vmatprep.mubr.bf16.mxu0 %v11893_v22  ;;  %v12078_v21 = vld [vmem:[%s16050_s2 + $0x3e8] sm:$0xff]  }
 0x28c   :  { %6415 = vmatpush1.bf16.msra.mxu1 %v12021_v43  ;;  %7719 = vmatpush1.bf16.msra.mxu0 %v12077_v20  ;;  %v11972_v22 = vld [vmem:[%s16051_s1 + $0x860] ss:$76 sps:$4 sm:$0xff]   ;;  %v11996_v43 = vld [vmem:[%s16051_s1 + $0xddc] ss:$76 sps:$4 sm:$0xff]   ;;  %v12054_v20 = vld [vmem:[%s16051_s1 + $0x1298] ss:$76 sps:$4 sm:$0xff]  }
 0x28d   :  { %6416 = vmatprep.subr.bf16.mxu1 %v16056_v0  ;;  %7720 = vmatprep.subr.bf16.mxu0 %v16056_v0 }
 0x290   :  { %6417 = vmatpush1.bf16.msra.mxu1 %v12040_v57  ;;  %7721 = vmatpush1.bf16.msra.mxu0 %v12078_v21  ;;  %v12126_v57 = vld [vmem:[%s16050_s2 + $0x1f8] sm:$0xff]  }
 0x291   :  { %6418 = vmatprep.subr.bf16.mxu1 %v16056_v0  ;;  %7722 = vmatprep.subr.bf16.mxu0 %v16056_v0  ;;  %v12056_v21 = vld [vmem:[%s16051_s1 + $0x101c] ss:$76 sps:$4 sm:$0xff]  }
 0x292   :  { %6138 = vmatmul.mubr.bf16.gmra.mrb[8].mxu1 %v11895_v24  ;;  %7462 = vmatmul.mubr.bf16.gmra.mrb[28].mxu0 %v11896_v25  ;;  %v11974_v24 = vld [vmem:[%s16051_s1 + $0x8fc] ss:$76 sps:$4 sm:$0xff]   ;;  %v11976_v25 = vld [vmem:[%s16051_s1 + $0xc14] ss:$76 sps:$4 sm:$0xff]  }
 0x293   :  { %6145 = vmatprep.mubr.bf16.mxu1 %v11897_v26  ;;  %7469 = vmatprep.mubr.bf16.mxu0 %v11899_v27  ;;  %v12085_v26 = vld [vmem:[%s16050_s2 + $0x3f0] sm:$0xff]  }
 0x294   :  { %6419 = vmatpush1.bf16.msra.mxu1 %v12055_v4  ;;  %v12087_v27 = vld [vmem:[%s16050_s2 + $0x1b0] sm:$0xff]   ;;  %7723 = vmatpush1.bf16.msra.mxu0 %v12085_v26  ;;  %v12027_v4 = vld [vmem:[%s16051_s1 + $0x1038] ss:$76 sps:$4 sm:$0xff]  }
 0x295   :  { %6420 = vmatprep.subr.bf16.mxu1 %v16056_v0  ;;  %7724 = vmatprep.subr.bf16.mxu0 %v16056_v0  ;;  %v12065_v26 = vld [vmem:[%s16051_s1 + $0x13cc] ss:$76 sps:$4 sm:$0xff]  }
 0x298   :  { %6421 = vmatpush1.bf16.msra.mxu1 %v12069_v14  ;;  %7725 = vmatpush1.bf16.msra.mxu0 %v12086_v28  ;;  %v12044_v14 = vld [vmem:[%s16051_s1 + $0x1204] ss:$76 sps:$4 sm:$0xff]   ;;  %v12068_v28 = vld [vmem:[%s16051_s1 + $0x13c8] ss:$76 sps:$4 sm:$0xff]  }
 0x299   :  { %6422 = vmatprep.subr.bf16.mxu1 %v16056_v0  ;;  %8015 = vmatprep.subr.bf16.mxu0 %v16056_v0 }
 0x29a   :  { %6146 = vmatmul.mubr.bf16.gmra.mrb[12].mxu1 %v11901_v29  ;;  %7470 = vmatmul.mubr.bf16.gmra.mrb[32].mxu0 %v11902_v30  ;;  %v11978_v29 = vld [vmem:[%s16051_s1 + $0x8f8] ss:$76 sps:$4 sm:$0xff]   ;;  %v11979_v30 = vld [vmem:[%s16051_s1 + $0xc10] ss:$76 sps:$4 sm:$0xff]  }
 0x29b   :  { %6153 = vmatprep.mubr.bf16.mxu1 %v11903_v31  ;;  %7477 = vmatprep.mubr.bf16.mxu0 %v11905_v32  ;;  %v11980_v31 = vld [vmem:[%s16051_s1 + $0x994] ss:$76 sps:$4 sm:$0xff]   ;;  %v11982_v32 = vld [vmem:[%s16051_s1 + $0xcac] ss:$76 sps:$4 sm:$0xff]  }
 0x29c   :  { %6423 = vmatpush1.bf16.msra.mxu1 %v12087_v27  ;;  %v12067_v27 = vld [vmem:[%s16051_s1 + $0x10b0] ss:$76 sps:$4 sm:$0xff]  }
 0x29d   :  { %6424 = vmatprep.subr.bf16.mxu1 %v16056_v0 }
 0x2a0   :  { %6425 = vmatpush1.bf16.msra.mxu1 %v12094_v33  ;;  %v12079_v33 = vld [vmem:[%s16051_s1 + $0x11e4] ss:$76 sps:$4 sm:$0xff]  }
 0x2a1   :  { %6426 = vmatprep.subr.bf16.mxu1 %v16056_v0 }
 0x2a2   :  { %6154 = vmatmul.mubr.bf16.gmra.mrb[16].mxu1 %v11907_v34  ;;  %7478 = vmatmul.mubr.bf16.gmra.mrb[36].mxu0 %v11908_v35  ;;  %v11985_v34 = vld [vmem:[%s16051_s1 + $0x990] ss:$76 sps:$4 sm:$0xff]   ;;  %v11986_v35 = vld [vmem:[%s16051_s1 + $0xca8] ss:$76 sps:$4 sm:$0xff]  }
 0x2a3   :  { %6161 = vmatprep.mubr.bf16.mxu1 %v11910_v36  ;;  %7485 = vmatprep.mubr.bf16.mxu0 %v11912_v37  ;;  %v11987_v36 = vld [vmem:[%s16051_s1 + $0xa2c] ss:$76 sps:$4 sm:$0xff]   ;;  %v11989_v37 = vld [vmem:[%s16051_s1 + $0xd44] ss:$76 sps:$4 sm:$0xff]  }
 0x2a4   :  { %6427 = vmatpush1.bf16.msra.mxu1 %v12101_v38  ;;  %v12092_v38 = vld [vmem:[%s16051_s1 + $0x3c] ss:$76 sps:$4 sm:$0xff]  }
 0x2a5   :  { %6428 = vmatprep.subr.bf16.mxu1 %v16056_v0 }
 0x2aa   :  { %6162 = vmatmul.mubr.bf16.gmra.mrb[20].mxu1 %v11914_v39  ;;  %7486 = vmatmul.mubr.bf16.gmra.mrb[40].mxu0 %v11915_v40  ;;  %v12102_v39 = vld [vmem:[%s16050_s2 + $0x1c8] sm:$0xff]  }
 0x2ab   :  { %6169 = vmatprep.mubr.bf16.mxu1 %v11916_v41  ;;  %7493 = vmatprep.mubr.bf16.mxu0 %v11918_v42  ;;  %v11991_v40 = vld [vmem:[%s16051_s1 + $0xa28] ss:$76 sps:$4 sm:$0xff]   ;;  %v11992_v41 = vld [vmem:[%s16051_s1 + $0xd40] ss:$76 sps:$4 sm:$0xff]   ;;  %v11994_v42 = vld [vmem:[%s16051_s1 + $0xac4] ss:$76 sps:$4 sm:$0xff]  }
 0x2ac   :  { %6429 = vmatpush1.bf16.msra.mxu1 %v12102_v39  ;;  %v12093_v39 = vld [vmem:[%s16051_s1 + $0x1278] ss:$76 sps:$4 sm:$0xff]  }
 0x2ad   :  { %6430 = vmatprep.subr.bf16.mxu1 %v16056_v0 }
 0x2b2   :  { %6170 = vmatmul.mubr.bf16.gmra.mrb[24].mxu1 %v11920_v44  ;;  %7494 = vmatmul.mubr.bf16.gmra.mrb[44].mxu0 %v11921_v45  ;;  %v12109_v44 = vld [vmem:[%s16050_s2 + $0x1d0] sm:$0xff]   ;;  %v12110_v45 = vld [vmem:[%s16050_s2 + $0x1d8] sm:$0xff]  }
 0x2b3   :  { %6177 = vmatprep.mubr.bf16.mxu1 %v11922_v46  ;;  %7501 = vmatprep.mubr.bf16.mxu0 %v11924_v47  ;;  %v11998_v46 = vld [vmem:[%s16051_s1 + $0xac0] ss:$76 sps:$4 sm:$0xff]   ;;  %v11999_v47 = vld [vmem:[%s16051_s1 + $0xdd8] ss:$76 sps:$4 sm:$0xff]  }
 0x2b4   :  { %6431 = vmatpush1.bf16.msra.mxu1 %v12109_v44  ;;  %v12174_v44 = vld [vmem:[%s16050_s2 + $0x408] sm:$0xff]  }
 0x2b5   :  { %6432 = vmatprep.subr.bf16.mxu1 %v16056_v0 }
 0x2b8   :  { %6433 = vmatpush1.bf16.msra.mxu1 %v12110_v45  ;;  %v12099_v45 = vld [vmem:[%s16051_s1 + $0x1310] ss:$76 sps:$4 sm:$0xff]  }
 0x2b9   :  { %6434 = vmatprep.subr.bf16.mxu1 %v16056_v0 }
 0x2ba   :  { %6178 = vmatmul.mubr.bf16.gmra.mrb[28].mxu1 %v11927_v49  ;;  %7502 = vmatmul.mubr.bf16.gmra.mrb[48].mxu0 %v11928_v50  ;;  %v12003_v49 = vld [vmem:[%s16051_s1 + $0xe74] ss:$76 sps:$4 sm:$0xff]  }
 0x2bb   :  { %6185 = vmatprep.mubr.bf16.mxu1 %v11929_v51  ;;  %7509 = vmatprep.mubr.bf16.mxu0 %v11931_v52  ;;  %v12117_v50 = vld [vmem:[%s16050_s2 + $0x1e0] sm:$0xff]   ;;  %v12118_v51 = vld [vmem:[%s16050_s2 + $0x1e8] sm:$0xff]  }
 0x2bc   :  { %6435 = vmatpush1.bf16.msra.mxu1 %v12117_v50  ;;  %v12005_v52 = vld [vmem:[%s16051_s1 + $0xb58] ss:$76 sps:$4 sm:$0xff]  }
 0x2bd   :  { %6436 = vmatprep.subr.bf16.mxu1 %v16056_v0  ;;  %v12202_v50 = vld [vmem:[%s16050_s2 + $0x418] sm:$0xff]  }
 0x2c0   :  { %6437 = vmatpush1.bf16.msra.mxu1 %v12118_v51  ;;  %v12107_v51 = vld [vmem:[%s16051_s1 + $0x13a8] ss:$76 sps:$4 sm:$0xff]  }
 0x2c1   :  { %6438 = vmatprep.subr.bf16.mxu1 %v16056_v0 }
 0x2c2   :  { %6186 = vmatmul.mubr.bf16.gmra.mrb[32].mxu1 %v11933_v53  ;;  %7510 = vmatmul.mubr.bf16.gmra.mrb[52].mxu0 %v11934_v54  ;;  %v12006_v53 = vld [vmem:[%s16051_s1 + $0xe70] ss:$76 sps:$4 sm:$0xff]   ;;  %v12008_v54 = vld [vmem:[%s16051_s1 + $0xbf4] ss:$76 sps:$4 sm:$0xff]  }
 0x2c3   :  { %6193 = vmatprep.mubr.bf16.mxu1 %v11935_v55  ;;  %7517 = vmatprep.mubr.bf16.mxu0 %v11937_v56  ;;  %v12010_v55 = vld [vmem:[%s16051_s1 + $0xf0c] ss:$76 sps:$4 sm:$0xff]   ;;  %v12125_v56 = vld [vmem:[%s16050_s2 + $0x1f0] sm:$0xff]  }
 0x2c4   :  { %6439 = vmatpush1.bf16.msra.mxu1 %v12125_v56  ;;  %v12115_v56 = vld [vmem:[%s16051_s1 + $0x1440] ss:$76 sps:$4 sm:$0xff]  }
 0x2c5   :  { %6440 = vmatprep.subr.bf16.mxu1 %v16056_v0 }
 0x2c8   :  { %6441 = vmatpush1.bf16.msra.mxu1 %v12126_v57  ;;  %v12116_v57 = vld [vmem:[%s16051_s1 + $0x200] ss:$76 sps:$4 sm:$0xff]  }
 0x2c9   :  { %10236 = vmatprep.subr.bf16.mxu1 %v16056_v0 }
 0x2ca   :  { %6194 = vmatmul.mubr.bf16.gmra.mrb[36].mxu1 %v11939_v59  ;;  %7518 = vmatmul.mubr.bf16.gmra.mrb[56].mxu0 %v11940_v60  ;;  %v12013_v59 = vld [vmem:[%s16051_s1 + $0xf08] ss:$76 sps:$4 sm:$0xff]   ;;  %v12015_v60 = vld [vmem:[%s16051_s1 + $0xc8c] ss:$76 sps:$4 sm:$0xff]  }
 0x2cb   :  { %6201 = vmatprep.mubr.bf16.mxu1 %v11942_v61  ;;  %7525 = vmatprep.mubr.bf16.mxu0 %v11944_v62  ;;  %v12017_v61 = vld [vmem:[%s16051_s1 + $0xfa4] ss:$76 sps:$4 sm:$0xff]   ;;  %v12019_v62 = vld [vmem:[%s16051_s1 + $0xc88] ss:$76 sps:$4 sm:$0xff]  }
 0x2d2   :  { %6202 = vmatmul.mubr.bf16.gmra.mrb[40].mxu1 %v11946_v63  ;;  %7526 = vmatmul.mubr.bf16.gmra.mrb[60].mxu0 %v11947_v1  ;;  %v12020_v63 = vld [vmem:[%s16051_s1 + $0xfa0] ss:$76 sps:$4 sm:$0xff]   ;;  %v12022_v1 = vld [vmem:[%s16051_s1 + $0xd24] ss:$76 sps:$4 sm:$0xff]  }
 0x2d3   :  { %6209 = vmatprep.mubr.bf16.mxu1 %v11948_v2  ;;  %7533 = vmatprep.mubr.bf16.mxu0 %v11950_v3  ;;  %v12024_v2 = vld [vmem:[%s16051_s1 + $0x103c] ss:$76 sps:$4 sm:$0xff]   ;;  %v12026_v3 = vld [vmem:[%s16051_s1 + $0xd20] ss:$76 sps:$4 sm:$0xff]  }
 0x2da   :  { %6210 = vmatmul.mubr.bf16.gmra.mrb[44].mxu1 %v11952_v5  ;;  %7534 = vmatmul.mubr.bf16.gmra.mrb[64].mxu0 %v11953_v6  ;;  %v12029_v5 = vld [vmem:[%s16051_s1 + $0xdbc] ss:$76 sps:$4 sm:$0xff]   ;;  %v12031_v6 = vld [vmem:[%s16051_s1 + $0x10d4] ss:$76 sps:$4 sm:$0xff]  }
 0x2db   :  { %6217 = vmatprep.mubr.bf16.mxu1 %v11955_v7  ;;  %7541 = vmatprep.mubr.bf16.mxu0 %v11957_v8  ;;  %v12033_v7 = vld [vmem:[%s16051_s1 + $0xdb8] ss:$76 sps:$4 sm:$0xff]   ;;  %v12034_v8 = vld [vmem:[%s16051_s1 + $0x10d0] ss:$76 sps:$4 sm:$0xff]  }
 0x2e2   :  { %6218 = vmatmul.mubr.bf16.gmra.mrb[48].mxu1 %v11959_v10  ;;  %7542 = vmatmul.mubr.bf16.gmra.mrb[68].mxu0 %v11960_v11  ;;  %v12037_v10 = vld [vmem:[%s16051_s1 + $0x116c] ss:$76 sps:$4 sm:$0xff]   ;;  %v12039_v11 = vld [vmem:[%s16051_s1 + $0xe50] ss:$76 sps:$4 sm:$0xff]  }
 0x2e3   :  { %6225 = vmatprep.mubr.bf16.mxu1 %v11961_v12  ;;  %7549 = vmatprep.mubr.bf16.mxu0 %v11963_v13  ;;  %v12041_v12 = vld [vmem:[%s16051_s1 + $0x1168] ss:$76 sps:$4 sm:$0xff]   ;;  %v12042_v13 = vld [vmem:[%s16051_s1 + $0xeec] ss:$76 sps:$4 sm:$0xff]  }
 0x2ea   :  { %6226 = vmatmul.mubr.bf16.gmra.mrb[52].mxu1 %v11965_v16  ;;  %7550 = vmatmul.mubr.bf16.gmra.mrb[72].mxu0 %v11966_v17  ;;  %v12048_v16 = vld [vmem:[%s16051_s1 + $0x1200] ss:$76 sps:$4 sm:$0xff]   ;;  %v12049_v17 = vld [vmem:[%s16051_s1 + $0xf84] ss:$76 sps:$4 sm:$0xff]  }
 0x2eb   :  { %6233 = vmatprep.mubr.bf16.mxu1 %v11968_v18  ;;  %7557 = vmatprep.mubr.bf16.mxu0 %v11970_v19  ;;  %v12051_v18 = vld [vmem:[%s16051_s1 + $0x129c] ss:$76 sps:$4 sm:$0xff]   ;;  %v12053_v19 = vld [vmem:[%s16051_s1 + $0xf80] ss:$76 sps:$4 sm:$0xff]  }
 0x2f2   :  { %6234 = vmatmul.mubr.bf16.gmra.mrb[56].mxu1 %v11972_v22  ;;  %7558 = vmatmul.mubr.bf16.gmra.mrb[76].mxu0 %v11973_v23  ;;  %v12058_v22 = vld [vmem:[%s16051_s1 + $0x1334] ss:$76 sps:$4 sm:$0xff]   ;;  %v12060_v23 = vld [vmem:[%s16051_s1 + $0x1018] ss:$76 sps:$4 sm:$0xff]  }
 0x2f3   :  { %6241 = vmatprep.mubr.bf16.mxu1 %v11974_v24  ;;  %7565 = vmatprep.mubr.bf16.mxu0 %v11976_v25  ;;  %v12061_v24 = vld [vmem:[%s16051_s1 + $0x1330] ss:$76 sps:$4 sm:$0xff]   ;;  %v12063_v25 = vld [vmem:[%s16051_s1 + $0x10b4] ss:$76 sps:$4 sm:$0xff]  }
 0x2fa   :  { %6242 = vmatmul.mubr.bf16.gmra.mrb[60].mxu1 %v11978_v29  ;;  %7566 = vmatmul.mubr.bf16.gmra.mrb[80].mxu0 %v11979_v30  ;;  %v12071_v29 = vld [vmem:[%s16051_s1 + $0x114c] ss:$76 sps:$4 sm:$0xff]   ;;  %v12073_v30 = vld [vmem:[%s16051_s1 + $0x1464] ss:$76 sps:$4 sm:$0xff]  }
 0x2fb   :  { %6249 = vmatprep.mubr.bf16.mxu1 %v11980_v31  ;;  %7573 = vmatprep.mubr.bf16.mxu0 %v11982_v32  ;;  %v12075_v31 = vld [vmem:[%s16051_s1 + $0x1148] ss:$76 sps:$4 sm:$0xff]   ;;  %v12076_v32 = vld [vmem:[%s16051_s1 + $0x1460] ss:$76 sps:$4 sm:$0xff]  }
 0x302   :  { %6250 = vmatmul.mubr.bf16.gmra.mrb[64].mxu1 %v11985_v34  ;;  %7574 = vmatmul.mubr.bf16.gmra.mrb[84].mxu0 %v11986_v35  ;;  %v12081_v34 = vld [vmem:[%s16051_s1 + $0x14fc] ss:$76 sps:$4 sm:$0xff]   ;;  %v12083_v35 = vld [vmem:[%s16051_s1 + $0x11e0] ss:$76 sps:$4 sm:$0xff]  }
 0x303   :  { %6257 = vmatprep.mubr.bf16.mxu1 %v11987_v36  ;;  %7581 = vmatprep.mubr.bf16.mxu0 %v11989_v37  ;;  %v12084_v36 = vld [vmem:[%s16051_s1 + $0x14f8] ss:$76 sps:$4 sm:$0xff]   ;;  %v12088_v37 = vld [vmem:[%s16051_s1 + $0x127c] ss:$76 sps:$4 sm:$0xff]  }
 0x30a   :  { %6258 = vmatmul.mubr.bf16.gmra.mrb[68].mxu1 %v11991_v40  ;;  %7582 = vmatmul.mubr.bf16.gmra.mrb[88].mxu0 %v11992_v41  ;;  %v12090_v40 = vld [vmem:[%s16051_s1 + $0x38] ss:$76 sps:$4 sm:$0xff]   ;;  %v12095_v41 = vld [vmem:[%s16051_s1 + $0x1314] ss:$76 sps:$4 sm:$0xff]  }
 0x30b   :  { %6265 = vmatprep.mubr.bf16.mxu1 %v11994_v42  ;;  %7589 = vmatprep.mubr.bf16.mxu0 %v11996_v43  ;;  %v12097_v42 = vld [vmem:[%s16051_s1 + $0xd4] ss:$76 sps:$4 sm:$0xff]  }
 0x30c   :  { %v12157_v43 = vld [vmem:[%s16050_s2 + $0x400] sm:$0xff]  }
 0x312   :  { %6266 = vmatmul.mubr.bf16.gmra.mrb[72].mxu1 %v11998_v46  ;;  %7590 = vmatmul.mubr.bf16.gmra.mrb[92].mxu0 %v11999_v47  ;;  %v12100_v46 = vld [vmem:[%s16051_s1 + $0xd0] ss:$76 sps:$4 sm:$0xff]   ;;  %v12103_v47 = vld [vmem:[%s16051_s1 + $0x13ac] ss:$76 sps:$4 sm:$0xff]  }
 0x313   :  { %6273 = vmatprep.mubr.bf16.mxu1 %v12001_v48  ;;  %7597 = vmatprep.mubr.bf16.mxu0 %v12003_v49  ;;  %v12105_v48 = vld [vmem:[%s16051_s1 + $0x16c] ss:$76 sps:$4 sm:$0xff]   ;;  %v12189_v49 = vld [vmem:[%s16050_s2 + $0x410] sm:$0xff]  }
 0x31a   :  { %6274 = vmatmul.mubr.bf16.gmra.mrb[76].mxu1 %v12005_v52  ;;  %7598 = vmatmul.mubr.bf16.gmra.mrb[96].mxu0 %v12006_v53  ;;  %v12108_v52 = vld [vmem:[%s16051_s1 + $0x168] ss:$76 sps:$4 sm:$0xff]   ;;  %v12111_v53 = vld [vmem:[%s16051_s1 + $0x1444] ss:$76 sps:$4 sm:$0xff]  }
 0x31b   :  { %6281 = vmatprep.mubr.bf16.mxu1 %v12008_v54  ;;  %7605 = vmatprep.mubr.bf16.mxu0 %v12010_v55  ;;  %v12113_v54 = vld [vmem:[%s16051_s1 + $0x204] ss:$76 sps:$4 sm:$0xff]  }
 0x31c   :  { %v12215_v55 = vld [vmem:[%s16050_s2 + $0x420] sm:$0xff]  }
 0x322   :  { %6282 = vmatmul.mubr.bf16.gmra.mrb[80].mxu1 %v12012_v58  ;;  %7606 = vmatmul.mubr.bf16.gmra.mrb[100].mxu0 %v12013_v59  ;;  %v12119_v58 = vld [vmem:[%s16051_s1 + $0x14dc] ss:$76 sps:$4 sm:$0xff]  }
 0x323   :  { %6289 = vmatprep.mubr.bf16.mxu1 %v12015_v60  ;;  %7613 = vmatprep.mubr.bf16.mxu0 %v12017_v61  ;;  %v12121_v59 = vld [vmem:[%s16051_s1 + $0x29c] ss:$76 sps:$4 sm:$0xff]   ;;  %v12123_v60 = vld [vmem:[%s16051_s1 + $0x14d8] ss:$76 sps:$4 sm:$0xff]  }
 0x324   :  { %v12124_v61 = vld [vmem:[%s16051_s1 + $0x298] ss:$76 sps:$4 sm:$0xff]  }
 0x32a   :  { %6290 = vmatmul.mubr.bf16.gmra.mrb[84].mxu1 %v12019_v62  ;;  %7614 = vmatmul.mubr.bf16.gmra.mrb[104].mxu0 %v12020_v63  ;;  %v12129_v62 = vld [vmem:[%s16051_s1 + $0x1c] ss:$76 sps:$4 sm:$0xff]   ;;  %v12130_v63 = vld [vmem:[%s16051_s1 + $0x334] ss:$76 sps:$4 sm:$0xff]  }
 0x32b   :  { %6297 = vmatprep.mubr.bf16.mxu1 %v12022_v1  ;;  %7621 = vmatprep.mubr.bf16.mxu0 %v12024_v2  ;;  %v12232_v1 = vld [vmem:[%s16050_s2 + $0x428] sm:$0xff]   ;;  %v12127_v2 = vld [vmem:[%s16051_s1 + $0x18] ss:$76 sps:$4 sm:$0xff]  }
 0x332   :  { %6298 = vmatmul.mubr.bf16.gmra.mrb[88].mxu1 %v12026_v3  ;;  %7622 = vmatmul.mubr.bf16.gmra.mrb[108].mxu0 %v12027_v4  ;;  %v12132_v3 = vld [vmem:[%s16051_s1 + $0x330] ss:$76 sps:$4 sm:$0xff]   ;;  %v12133_v4 = vld [vmem:[%s16051_s1 + $0xb4] ss:$76 sps:$4 sm:$0xff]  }
 0x333   :  { %6305 = vmatprep.mubr.bf16.mxu1 %v12029_v5  ;;  %7629 = vmatprep.mubr.bf16.mxu0 %v12031_v6  ;;  %v12135_v5 = vld [vmem:[%s16051_s1 + $0x3cc] ss:$76 sps:$4 sm:$0xff]   ;;  %v12530_v6 = vld [vmem:[%s16050_s2 + $0x200] sm:$0xff]  }
 0x33a   :  { %6306 = vmatmul.mubr.bf16.gmra.mrb[92].mxu1 %v12033_v7  ;;  %7630 = vmatmul.mubr.bf16.gmra.mrb[112].mxu0 %v12034_v8  ;;  %v12137_v7 = vld [vmem:[%s16051_s1 + $0xb0] ss:$76 sps:$4 sm:$0xff]   ;;  %v12138_v8 = vld [vmem:[%s16051_s1 + $0x3c8] ss:$76 sps:$4 sm:$0xff]  }
 0x33b   :  { %6313 = vmatprep.mubr.bf16.mxu1 %v12035_v9  ;;  %7637 = vmatprep.mubr.bf16.mxu0 %v12037_v10  ;;  %v12139_v9 = vld [vmem:[%s16051_s1 + $0x14c] ss:$76 sps:$4 sm:$0xff]   ;;  %v12141_v10 = vld [vmem:[%s16051_s1 + $0x464] ss:$76 sps:$4 sm:$0xff]  }
 0x342   :  { %6314 = vmatmul.mubr.bf16.gmra.mrb[96].mxu1 %v12039_v11  ;;  %7638 = vmatmul.mubr.bf16.gmra.mrb[116].mxu0 %v12041_v12  ;;  %v12531_v11 = vld [vmem:[%s16050_s2 + $0x208] sm:$0xff]   ;;  %v12532_v12 = vld [vmem:[%s16050_s2 + $0x210] sm:$0xff]  }
 0x343   :  { %6321 = vmatprep.mubr.bf16.mxu1 %v12042_v13  ;;  %7645 = vmatprep.mubr.bf16.mxu0 %v12044_v14  ;;  %v12143_v13 = vld [vmem:[%s16051_s1 + $0x148] ss:$76 sps:$4 sm:$0xff]   ;;  %v12144_v14 = vld [vmem:[%s16051_s1 + $0x460] ss:$76 sps:$4 sm:$0xff]  }
 0x34a   :  { %6322 = vmatmul.mubr.bf16.gmra.mrb[100].mxu1 %v12047_v15  ;;  %7646 = vmatmul.mubr.bf16.gmra.mrb[120].mxu0 %v12048_v16  ;;  %v12145_v15 = vld [vmem:[%s16051_s1 + $0x1e4] ss:$76 sps:$4 sm:$0xff]   ;;  %v12147_v16 = vld [vmem:[%s16051_s1 + $0x4fc] ss:$76 sps:$4 sm:$0xff]  }
 0x34b   :  { %6329 = vmatprep.mubr.bf16.mxu1 %v12049_v17  ;;  %7653 = vmatprep.mubr.bf16.mxu0 %v12051_v18  ;;  %v12533_v17 = vld [vmem:[%s16050_s2 + $0x218] sm:$0xff]   ;;  %v12247_v18 = vld [vmem:[%s16050_s2 + $0x430] sm:$0xff]  }
 0x352   :  { %6330 = vmatmul.mubr.bf16.gmra.mrb[104].mxu1 %v12053_v19  ;;  %7654 = vmatmul.mubr.bf16.gmra.mrb[124].mxu0 %v12054_v20  ;;  %v12534_v19 = vld [vmem:[%s16050_s2 + $0x220] sm:$0xff]  }
 0x353   :  { %6337 = vmatprep.mubr.bf16.mxu1 %v12056_v21  ;;  %7661 = vmatprep.mubr.bf16.mxu0 %v12058_v22  ;;  %v12149_v20 = vld [vmem:[%s16051_s1 + $0x1e0] ss:$76 sps:$4 sm:$0xff]   ;;  %v12150_v21 = vld [vmem:[%s16051_s1 + $0x4f8] ss:$76 sps:$4 sm:$0xff]   ;;  %v12151_v22 = vld [vmem:[%s16051_s1 + $0x27c] ss:$76 sps:$4 sm:$0xff]  }
 0x35a   :  { %6338 = vmatmul.mubr.bf16.gmra.mrb[108].mxu1 %v12060_v23  ;;  %7662 = vmatmul.mubr.bf16.gmra.mrb[128].mxu0 %v12061_v24  ;;  %v12153_v23 = vld [vmem:[%s16051_s1 + $0x594] ss:$76 sps:$4 sm:$0xff]   ;;  %v12535_v24 = vld [vmem:[%s16050_s2 + $0x228] sm:$0xff]  }
 0x35b   :  { %6345 = vmatprep.mubr.bf16.mxu1 %v12063_v25  ;;  %7669 = vmatprep.mubr.bf16.mxu0 %v12065_v26  ;;  %v12536_v25 = vld [vmem:[%s16050_s2 + $0x230] sm:$0xff]   ;;  %v12155_v26 = vld [vmem:[%s16051_s1 + $0x278] ss:$76 sps:$4 sm:$0xff]  }
 0x362   :  { %6346 = vmatmul.mubr.bf16.gmra.mrb[112].mxu1 %v12067_v27  ;;  %7670 = vmatmul.mubr.bf16.gmra.mrb[132].mxu0 %v12068_v28  ;;  %v12156_v27 = vld [vmem:[%s16051_s1 + $0x590] ss:$76 sps:$4 sm:$0xff]   ;;  %v12158_v28 = vld [vmem:[%s16051_s1 + $0x314] ss:$76 sps:$4 sm:$0xff]  }
 0x363   :  { %6353 = vmatprep.mubr.bf16.mxu1 %v12071_v29  ;;  %7677 = vmatprep.mubr.bf16.mxu0 %v12073_v30  ;;  %v12160_v29 = vld [vmem:[%s16051_s1 + $0x62c] ss:$76 sps:$4 sm:$0xff]  }
 0x364   :  { %v12537_v30 = vld [vmem:[%s16050_s2 + $0x238] sm:$0xff]  }
 0x36a   :  { %6354 = vmatmul.mubr.bf16.gmra.mrb[116].mxu1 %v12075_v31  ;;  %7678 = vmatmul.mubr.bf16.gmra.mrb[136].mxu0 %v12076_v32  ;;  %v12260_v31 = vld [vmem:[%s16050_s2 + $0x438] sm:$0xff]   ;;  %v12538_v32 = vld [vmem:[%s16050_s2 + $0x240] sm:$0xff]  }
 0x36b   :  { %6361 = vmatprep.mubr.bf16.mxu1 %v12079_v33  ;;  %7685 = vmatprep.mubr.bf16.mxu0 %v12081_v34  ;;  %v12162_v33 = vld [vmem:[%s16051_s1 + $0x310] ss:$76 sps:$4 sm:$0xff]   ;;  %v12163_v34 = vld [vmem:[%s16051_s1 + $0x628] ss:$76 sps:$4 sm:$0xff]  }
 0x372   :  { %6362 = vmatmul.mubr.bf16.gmra.mrb[120].mxu1 %v12083_v35  ;;  %7686 = vmatmul.mubr.bf16.gmra.mrb[140].mxu0 %v12084_v36  ;;  %v12164_v35 = vld [vmem:[%s16051_s1 + $0x3ac] ss:$76 sps:$4 sm:$0xff]   ;;  %v12166_v36 = vld [vmem:[%s16051_s1 + $0x6c4] ss:$76 sps:$4 sm:$0xff]  }
 0x373   :  { %6369 = vmatprep.mubr.bf16.mxu1 %v12088_v37  ;;  %7726 = vmatprep.mubr.bf16.mxu0 %v12092_v38  ;;  %v12539_v37 = vld [vmem:[%s16050_s2 + $0x248] sm:$0xff]   ;;  %v12540_v38 = vld [vmem:[%s16050_s2 + $0x250] sm:$0xff]  }
 0x37a   :  { %6370 = vmatmul.mubr.bf16.gmra.mrb[124].mxu1 %v12093_v39  ;;  %7727 = vmatmul.mubr.bf16.vlgmr.msra.gmra.mrb[0].mxu0 %v12090_v40  ;;  %v12168_v39 = vld [vmem:[%s16051_s1 + $0x3a8] ss:$76 sps:$4 sm:$0xff]   ;;  %v12169_v40 = vld [vmem:[%s16051_s1 + $0x6c0] ss:$76 sps:$4 sm:$0xff]  }
 0x37b   :  { %6377 = vmatprep.mubr.bf16.mxu1 %v12095_v41  ;;  %7734 = vmatprep.mubr.bf16.mxu0 %v12097_v42  ;;  %v12170_v41 = vld [vmem:[%s16051_s1 + $0x444] ss:$76 sps:$4 sm:$0xff]   ;;  %v12172_v42 = vld [vmem:[%s16051_s1 + $0x75c] ss:$76 sps:$4 sm:$0xff]  }
 0x37c   :  { %8016 = vmatpush1.bf16.msra.mxu0 %v12157_v43  ;;  %v12541_v43 = vld [vmem:[%s16050_s2 + $0x258] sm:$0xff]  }
 0x37d   :  { %8017 = vmatprep.subr.bf16.mxu0 %v16056_v0 }
 0x380   :  { %8018 = vmatpush1.bf16.msra.mxu0 %v12174_v44  ;;  %v12273_v44 = vld [vmem:[%s16050_s2 + $0x440] sm:$0xff]  }
 0x381   :  { %8019 = vmatprep.subr.bf16.mxu0 %v16056_v0 }
 0x382   :  { %6378 = vmatmul.mubr.bf16.gmra.mrb[128].mxu1 %v12099_v45  ;;  %7735 = vmatmul.mubr.bf16.gmra.mrb[4].mxu0 %v12100_v46  ;;  %v12542_v45 = vld [vmem:[%s16050_s2 + $0x260] sm:$0xff]  }
 0x383   :  { %6385 = vmatprep.mubr.bf16.mxu1 %v12103_v47  ;;  %7742 = vmatprep.mubr.bf16.mxu0 %v12105_v48  ;;  %v12175_v46 = vld [vmem:[%s16051_s1 + $0x440] ss:$76 sps:$4 sm:$0xff]   ;;  %v12176_v47 = vld [vmem:[%s16051_s1 + $0x758] ss:$76 sps:$4 sm:$0xff]   ;;  %v12177_v48 = vld [vmem:[%s16051_s1 + $0x4dc] ss:$76 sps:$4 sm:$0xff]  }
 0x384   :  { %8020 = vmatpush1.bf16.msra.mxu0 %v12189_v49  ;;  %v12179_v49 = vld [vmem:[%s16051_s1 + $0x7f4] ss:$76 sps:$4 sm:$0xff]  }
 0x385   :  { %8021 = vmatprep.subr.bf16.mxu0 %v16056_v0 }
 0x388   :  { %8022 = vmatpush1.bf16.msra.mxu0 %v12202_v50  ;;  %v12543_v50 = vld [vmem:[%s16050_s2 + $0x268] sm:$0xff]  }
 0x389   :  { %8023 = vmatprep.subr.bf16.mxu0 %v16056_v0 }
 0x38a   :  { %6386 = vmatmul.mubr.bf16.gmra.mrb[132].mxu1 %v12107_v51  ;;  %7743 = vmatmul.mubr.bf16.gmra.mrb[8].mxu0 %v12108_v52  ;;  %v12544_v51 = vld [vmem:[%s16050_s2 + $0x270] sm:$0xff]   ;;  %v12181_v52 = vld [vmem:[%s16051_s1 + $0x4d8] ss:$76 sps:$4 sm:$0xff]  }
 0x38b   :  { %6393 = vmatprep.mubr.bf16.mxu1 %v12111_v53  ;;  %7750 = vmatprep.mubr.bf16.mxu0 %v12113_v54  ;;  %v12182_v53 = vld [vmem:[%s16051_s1 + $0x7f0] ss:$76 sps:$4 sm:$0xff]   ;;  %v12183_v54 = vld [vmem:[%s16051_s1 + $0x574] ss:$76 sps:$4 sm:$0xff]  }
 0x38c   :  { %8024 = vmatpush1.bf16.msra.mxu0 %v12215_v55  ;;  %v12185_v55 = vld [vmem:[%s16051_s1 + $0x88c] ss:$76 sps:$4 sm:$0xff]  }
 0x38d   :  { %8025 = vmatprep.subr.bf16.mxu0 %v16056_v0 }
 0x390   :  { %8026 = vmatpush1.bf16.msra.mxu0 %v12232_v1  ;;  %v12196_v1 = vld [vmem:[%s16051_s1 + $0x6a4] ss:$76 sps:$4 sm:$0xff]  }
 0x391   :  { %8027 = vmatprep.subr.bf16.mxu0 %v16056_v0 }
 0x392   :  { %6394 = vmatmul.mubr.bf16.gmra.mrb[136].mxu1 %v12115_v56  ;;  %7751 = vmatmul.mubr.bf16.gmra.mrb[12].mxu0 %v12116_v57  ;;  %v12545_v56 = vld [vmem:[%s16050_s2 + $0x278] sm:$0xff]   ;;  %v12290_v57 = vld [vmem:[%s16050_s2 + $0x448] sm:$0xff]  }
 0x393   :  { %6401 = vmatprep.mubr.bf16.mxu1 %v12119_v58  ;;  %7758 = vmatprep.mubr.bf16.mxu0 %v12121_v59  ;;  %v12187_v58 = vld [vmem:[%s16051_s1 + $0x570] ss:$76 sps:$4 sm:$0xff]   ;;  %v12188_v59 = vld [vmem:[%s16051_s1 + $0x888] ss:$76 sps:$4 sm:$0xff]  }
 0x394   :  { %8028 = vmatpush1.bf16.msra.mxu0 %v12247_v18  ;;  %v12220_v18 = vld [vmem:[%s16051_s1 + $0x868] ss:$76 sps:$4 sm:$0xff]  }
 0x395   :  { %8029 = vmatprep.subr.bf16.mxu0 %v16056_v0 }
 0x398   :  { %8030 = vmatpush1.bf16.msra.mxu0 %v12260_v31  ;;  %v12235_v31 = vld [vmem:[%s16051_s1 + $0xa34] ss:$76 sps:$4 sm:$0xff]  }
 0x399   :  { %8031 = vmatprep.subr.bf16.mxu0 %v16056_v0 }
 0x39a   :  { %6402 = vmatmul.mubr.bf16.gmra.mrb[140].mxu1 %v12123_v60  ;;  %7759 = vmatmul.mubr.bf16.gmra.mrb[16].mxu0 %v12124_v61  ;;  %v12190_v60 = vld [vmem:[%s16051_s1 + $0x60c] ss:$76 sps:$4 sm:$0xff]   ;;  %v12192_v61 = vld [vmem:[%s16051_s1 + $0x924] ss:$76 sps:$4 sm:$0xff]  }
 0x39b   :  { %6442 = vmatprep.mubr.bf16.mxu1 %v12129_v62  ;;  %7766 = vmatprep.mubr.bf16.mxu0 %v12130_v63  ;;  %v12194_v62 = vld [vmem:[%s16051_s1 + $0x608] ss:$76 sps:$4 sm:$0xff]   ;;  %v12195_v63 = vld [vmem:[%s16051_s1 + $0x920] ss:$76 sps:$4 sm:$0xff]  }
 0x39c   :  { %8032 = vmatpush1.bf16.msra.mxu0 %v12273_v44  ;;  %v12256_v44 = vld [vmem:[%s16051_s1 + $0xf14] ss:$76 sps:$4 sm:$0xff]  }
 0x39d   :  { %8033 = vmatprep.subr.bf16.mxu0 %v16056_v0 }
 0x3a0   :  { %8034 = vmatpush1.bf16.msra.mxu0 %v12290_v57  ;;  %v12278_v57 = vld [vmem:[%s16051_s1 + $0xdc0] ss:$76 sps:$4 sm:$0xff]  }
 0x3a1   :  { %8035 = vmatprep.subr.bf16.mxu0 %v16056_v0 }
 0x3a2   :  { %6443 = vmatmul.mubr.bf16.vlgmr.msra.gmra.mrb[0].mxu1 %v12127_v2  ;;  %7767 = vmatmul.mubr.bf16.gmra.mrb[20].mxu0 %v12132_v3  ;;  %v12198_v2 = vld [vmem:[%s16051_s1 + $0x9bc] ss:$76 sps:$4 sm:$0xff]   ;;  %v12200_v3 = vld [vmem:[%s16051_s1 + $0x6a0] ss:$76 sps:$4 sm:$0xff]  }
 0x3a3   :  { %6450 = vmatprep.mubr.bf16.mxu1 %v12133_v4  ;;  %7774 = vmatprep.mubr.bf16.mxu0 %v12135_v5  ;;  %v12201_v4 = vld [vmem:[%s16051_s1 + $0x9b8] ss:$76 sps:$4 sm:$0xff]   ;;  %v12203_v5 = vld [vmem:[%s16051_s1 + $0x73c] ss:$76 sps:$4 sm:$0xff]  }
 0x3a4   :  { %10252 = vmatpush1.bf16.msra.mxu1 %v12530_v6  ;;  %v12205_v6 = vld [vmem:[%s16051_s1 + $0xa54] ss:$76 sps:$4 sm:$0xff]  }
 0x3a5   :  { %10237 = vmatprep.subr.bf16.mxu1 %v16056_v0 }
 0x3a8   :  { %10253 = vmatpush1.bf16.msra.mxu1 %v12531_v11  ;;  %v12211_v11 = vld [vmem:[%s16051_s1 + $0xaec] ss:$76 sps:$4 sm:$0xff]  }
 0x3a9   :  { %10238 = vmatprep.subr.bf16.mxu1 %v16056_v0 }
 0x3aa   :  { %6451 = vmatmul.mubr.bf16.gmra.mrb[4].mxu1 %v12137_v7  ;;  %7775 = vmatmul.mubr.bf16.gmra.mrb[24].mxu0 %v12138_v8  ;;  %v12305_v7 = vld [vmem:[%s16050_s2 + $0x450] sm:$0xff]   ;;  %v12207_v8 = vld [vmem:[%s16051_s1 + $0x738] ss:$76 sps:$4 sm:$0xff]  }
 0x3ab   :  { %6458 = vmatprep.mubr.bf16.mxu1 %v12139_v9  ;;  %7782 = vmatprep.mubr.bf16.mxu0 %v12141_v10  ;;  %v12208_v9 = vld [vmem:[%s16051_s1 + $0xa50] ss:$76 sps:$4 sm:$0xff]   ;;  %v12209_v10 = vld [vmem:[%s16051_s1 + $0x7d4] ss:$76 sps:$4 sm:$0xff]  }
 0x3ac   :  { %10254 = vmatpush1.bf16.msra.mxu1 %v12532_v12  ;;  %8036 = vmatpush1.bf16.msra.mxu0 %v12305_v7  ;;  %v12213_v12 = vld [vmem:[%s16051_s1 + $0x7d0] ss:$76 sps:$4 sm:$0xff]   ;;  %v12297_v7 = vld [vmem:[%s16051_s1 + $0xf88] ss:$76 sps:$4 sm:$0xff]  }
 0x3ad   :  { %10239 = vmatprep.subr.bf16.mxu1 %v16056_v0  ;;  %8037 = vmatprep.subr.bf16.mxu0 %v16056_v0 }
 0x3b0   :  { %10255 = vmatpush1.bf16.msra.mxu1 %v12533_v17  ;;  %v12319_v17 = vld [vmem:[%s16050_s2 + $0x460] sm:$0xff]  }
 0x3b1   :  { %10240 = vmatprep.subr.bf16.mxu1 %v16056_v0 }
 0x3b2   :  { %6459 = vmatmul.mubr.bf16.gmra.mrb[8].mxu1 %v12143_v13  ;;  %7783 = vmatmul.mubr.bf16.gmra.mrb[28].mxu0 %v12144_v14  ;;  %v12312_v13 = vld [vmem:[%s16050_s2 + $0x458] sm:$0xff]   ;;  %v12214_v14 = vld [vmem:[%s16051_s1 + $0xae8] ss:$76 sps:$4 sm:$0xff]  }
 0x3b3   :  { %6466 = vmatprep.mubr.bf16.mxu1 %v12145_v15  ;;  %7790 = vmatprep.mubr.bf16.mxu0 %v12147_v16  ;;  %v12216_v15 = vld [vmem:[%s16051_s1 + $0x86c] ss:$76 sps:$4 sm:$0xff]   ;;  %v12218_v16 = vld [vmem:[%s16051_s1 + $0xb84] ss:$76 sps:$4 sm:$0xff]  }
 0x3b4   :  { %10256 = vmatpush1.bf16.msra.mxu1 %v12534_v19  ;;  %8038 = vmatpush1.bf16.msra.mxu0 %v12312_v13  ;;  %v12320_v19 = vld [vmem:[%s16050_s2 + $0x468] sm:$0xff]  }
 0x3b5   :  { %10241 = vmatprep.subr.bf16.mxu1 %v16056_v0  ;;  %8039 = vmatprep.subr.bf16.mxu0 %v16056_v0  ;;  %v12303_v13 = vld [vmem:[%s16051_s1 + $0x1020] ss:$76 sps:$4 sm:$0xff]  }
 0x3b8   :  { %10257 = vmatpush1.bf16.msra.mxu1 %v12535_v24  ;;  %8040 = vmatpush1.bf16.msra.mxu0 %v12319_v17  ;;  %v12226_v24 = vld [vmem:[%s16051_s1 + $0x900] ss:$76 sps:$4 sm:$0xff]  }
 0x3b9   :  { %10242 = vmatprep.subr.bf16.mxu1 %v16056_v0  ;;  %8041 = vmatprep.subr.bf16.mxu0 %v16056_v0 }
 0x3ba   :  { %6467 = vmatmul.mubr.bf16.gmra.mrb[12].mxu1 %v12149_v20  ;;  %7791 = vmatmul.mubr.bf16.gmra.mrb[32].mxu0 %v12150_v21  ;;  %v12221_v20 = vld [vmem:[%s16051_s1 + $0xb80] ss:$76 sps:$4 sm:$0xff]   ;;  %v12222_v21 = vld [vmem:[%s16051_s1 + $0x904] ss:$76 sps:$4 sm:$0xff]  }
 0x3bb   :  { %6474 = vmatprep.mubr.bf16.mxu1 %v12151_v22  ;;  %7798 = vmatprep.mubr.bf16.mxu0 %v12153_v23  ;;  %v12224_v22 = vld [vmem:[%s16051_s1 + $0xc1c] ss:$76 sps:$4 sm:$0xff]   ;;  %v12327_v23 = vld [vmem:[%s16050_s2 + $0x470] sm:$0xff]  }
 0x3bc   :  { %10258 = vmatpush1.bf16.msra.mxu1 %v12536_v25  ;;  %8042 = vmatpush1.bf16.msra.mxu0 %v12320_v19  ;;  %v12328_v25 = vld [vmem:[%s16050_s2 + $0x478] sm:$0xff]  }
 0x3bd   :  { %10243 = vmatprep.subr.bf16.mxu1 %v16056_v0  ;;  %8043 = vmatprep.subr.bf16.mxu0 %v16056_v0 }
 0x3c0   :  { %10259 = vmatpush1.bf16.msra.mxu1 %v12537_v30  ;;  %8044 = vmatpush1.bf16.msra.mxu0 %v12327_v23  ;;  %v12234_v30 = vld [vmem:[%s16051_s1 + $0xcb0] ss:$76 sps:$4 sm:$0xff]  }
 0x3c1   :  { %10244 = vmatprep.subr.bf16.mxu1 %v16056_v0  ;;  %8045 = vmatprep.subr.bf16.mxu0 %v16056_v0  ;;  %v12311_v23 = vld [vmem:[%s16051_s1 + $0x13d0] ss:$76 sps:$4 sm:$0xff]  }
 0x3c2   :  { %6475 = vmatmul.mubr.bf16.gmra.mrb[16].mxu1 %v12155_v26  ;;  %7799 = vmatmul.mubr.bf16.gmra.mrb[36].mxu0 %v12156_v27  ;;  %v12227_v26 = vld [vmem:[%s16051_s1 + $0xc18] ss:$76 sps:$4 sm:$0xff]   ;;  %v12228_v27 = vld [vmem:[%s16051_s1 + $0x99c] ss:$76 sps:$4 sm:$0xff]  }
 0x3c3   :  { %6482 = vmatprep.mubr.bf16.mxu1 %v12158_v28  ;;  %7806 = vmatprep.mubr.bf16.mxu0 %v12160_v29  ;;  %v12230_v28 = vld [vmem:[%s16051_s1 + $0xcb4] ss:$76 sps:$4 sm:$0xff]   ;;  %v12233_v29 = vld [vmem:[%s16051_s1 + $0x998] ss:$76 sps:$4 sm:$0xff]  }
 0x3c4   :  { %10260 = vmatpush1.bf16.msra.mxu1 %v12538_v32  ;;  %8046 = vmatpush1.bf16.msra.mxu0 %v12328_v25  ;;  %v12237_v32 = vld [vmem:[%s16051_s1 + $0xd4c] ss:$76 sps:$4 sm:$0xff]  }
 0x3c5   :  { %10245 = vmatprep.subr.bf16.mxu1 %v16056_v0 }
 0x3c8   :  { %10261 = vmatpush1.bf16.msra.mxu1 %v12539_v37  ;;  %v12245_v37 = vld [vmem:[%s16051_s1 + $0xac8] ss:$76 sps:$4 sm:$0xff]  }
 0x3c9   :  { %10246 = vmatprep.subr.bf16.mxu1 %v16056_v0 }
 0x3ca   :  { %6483 = vmatmul.mubr.bf16.gmra.mrb[20].mxu1 %v12162_v33  ;;  %7807 = vmatmul.mubr.bf16.gmra.mrb[40].mxu0 %v12163_v34  ;;  %v12239_v33 = vld [vmem:[%s16051_s1 + $0xa30] ss:$76 sps:$4 sm:$0xff]   ;;  %v12240_v34 = vld [vmem:[%s16051_s1 + $0xd48] ss:$76 sps:$4 sm:$0xff]  }
 0x3cb   :  { %6490 = vmatprep.mubr.bf16.mxu1 %v12164_v35  ;;  %7814 = vmatprep.mubr.bf16.mxu0 %v12166_v36  ;;  %v12241_v35 = vld [vmem:[%s16051_s1 + $0xacc] ss:$76 sps:$4 sm:$0xff]   ;;  %v12243_v36 = vld [vmem:[%s16051_s1 + $0xde4] ss:$76 sps:$4 sm:$0xff]  }
 0x3cc   :  { %10262 = vmatpush1.bf16.msra.mxu1 %v12540_v38  ;;  %v12246_v38 = vld [vmem:[%s16051_s1 + $0xde0] ss:$76 sps:$4 sm:$0xff]  }
 0x3cd   :  { %10247 = vmatprep.subr.bf16.mxu1 %v16056_v0 }
 0x3d0   :  { %10263 = vmatpush1.bf16.msra.mxu1 %v12541_v43  ;;  %v12254_v43 = vld [vmem:[%s16051_s1 + $0xbfc] ss:$76 sps:$4 sm:$0xff]  }
 0x3d1   :  { %10248 = vmatprep.subr.bf16.mxu1 %v16056_v0 }
 0x3d2   :  { %6491 = vmatmul.mubr.bf16.gmra.mrb[24].mxu1 %v12168_v39  ;;  %7815 = vmatmul.mubr.bf16.gmra.mrb[44].mxu0 %v12169_v40  ;;  %v12248_v39 = vld [vmem:[%s16051_s1 + $0xb64] ss:$76 sps:$4 sm:$0xff]   ;;  %v12250_v40 = vld [vmem:[%s16051_s1 + $0xe7c] ss:$76 sps:$4 sm:$0xff]  }
 0x3d3   :  { %6498 = vmatprep.mubr.bf16.mxu1 %v12170_v41  ;;  %7822 = vmatprep.mubr.bf16.mxu0 %v12172_v42  ;;  %v12252_v41 = vld [vmem:[%s16051_s1 + $0xb60] ss:$76 sps:$4 sm:$0xff]   ;;  %v12253_v42 = vld [vmem:[%s16051_s1 + $0xe78] ss:$76 sps:$4 sm:$0xff]  }
 0x3d4   :  { %10264 = vmatpush1.bf16.msra.mxu1 %v12542_v45  ;;  %v12258_v45 = vld [vmem:[%s16051_s1 + $0xbf8] ss:$76 sps:$4 sm:$0xff]  }
 0x3d5   :  { %10249 = vmatprep.subr.bf16.mxu1 %v16056_v0 }
 0x3d8   :  { %10265 = vmatpush1.bf16.msra.mxu1 %v12543_v50  ;;  %v12266_v50 = vld [vmem:[%s16051_s1 + $0xfa8] ss:$76 sps:$4 sm:$0xff]  }
 0x3d9   :  { %10250 = vmatprep.subr.bf16.mxu1 %v16056_v0 }
 0x3da   :  { %6499 = vmatmul.mubr.bf16.gmra.mrb[28].mxu1 %v12175_v46  ;;  %7823 = vmatmul.mubr.bf16.gmra.mrb[48].mxu0 %v12176_v47  ;;  %v12259_v46 = vld [vmem:[%s16051_s1 + $0xf10] ss:$76 sps:$4 sm:$0xff]   ;;  %v12261_v47 = vld [vmem:[%s16051_s1 + $0xc94] ss:$76 sps:$4 sm:$0xff]  }
 0x3db   :  { %6506 = vmatprep.mubr.bf16.mxu1 %v12177_v48  ;;  %7830 = vmatprep.mubr.bf16.mxu0 %v12179_v49  ;;  %v12263_v48 = vld [vmem:[%s16051_s1 + $0xfac] ss:$76 sps:$4 sm:$0xff]   ;;  %v12265_v49 = vld [vmem:[%s16051_s1 + $0xc90] ss:$76 sps:$4 sm:$0xff]  }
 0x3dc   :  { %10266 = vmatpush1.bf16.msra.mxu1 %v12544_v51  ;;  %v12267_v51 = vld [vmem:[%s16051_s1 + $0xd2c] ss:$76 sps:$4 sm:$0xff]  }
 0x3dd   :  { %10251 = vmatprep.subr.bf16.mxu1 %v16056_v0 }
 0x3e0   :  { %10267 = vmatpush1.bf16.msra.mxu1 %v12545_v56  ;;  %v12276_v56 = vld [vmem:[%s16051_s1 + $0x10dc] ss:$76 sps:$4 sm:$0xff]  }
 0x3e2   :  { %6507 = vmatmul.mubr.bf16.gmra.mrb[32].mxu1 %v12181_v52  ;;  %7831 = vmatmul.mubr.bf16.gmra.mrb[52].mxu0 %v12182_v53  ;;  %v12269_v52 = vld [vmem:[%s16051_s1 + $0x1044] ss:$76 sps:$4 sm:$0xff]   ;;  %v12271_v53 = vld [vmem:[%s16051_s1 + $0xd28] ss:$76 sps:$4 sm:$0xff]  }
 0x3e3   :  { %6514 = vmatprep.mubr.bf16.mxu1 %v12183_v54  ;;  %7838 = vmatprep.mubr.bf16.mxu0 %v12185_v55  ;;  %v12272_v54 = vld [vmem:[%s16051_s1 + $0x1040] ss:$76 sps:$4 sm:$0xff]   ;;  %v12274_v55 = vld [vmem:[%s16051_s1 + $0xdc4] ss:$76 sps:$4 sm:$0xff]  }
 0x3ea   :  { %6515 = vmatmul.mubr.bf16.gmra.mrb[36].mxu1 %v12187_v58  ;;  %7839 = vmatmul.mubr.bf16.gmra.mrb[56].mxu0 %v12188_v59  ;;  %v12279_v58 = vld [vmem:[%s16051_s1 + $0x10d8] ss:$76 sps:$4 sm:$0xff]   ;;  %v12280_v59 = vld [vmem:[%s16051_s1 + $0xe5c] ss:$76 sps:$4 sm:$0xff]  }
 0x3eb   :  { %6522 = vmatprep.mubr.bf16.mxu1 %v12190_v60  ;;  %7846 = vmatprep.mubr.bf16.mxu0 %v12192_v61  ;;  %v12282_v60 = vld [vmem:[%s16051_s1 + $0x1174] ss:$76 sps:$4 sm:$0xff]  }
 0x3ec   :  { %v14812_v61 = vld [vmem:[%s16050_s2 + $0x480] sm:$0xff]  }
 0x3ed   :  { %10158 = vmatprep.subr.bf16.mxu1 %v14812_v61 }
 0x3f2   :  { %6523 = vmatmul.mubr.bf16.gmra.mrb[40].mxu1 %v12194_v62  ;;  %7847 = vmatmul.mubr.bf16.gmra.mrb[60].mxu0 %v12195_v63  ;;  %v12284_v62 = vld [vmem:[%s16051_s1 + $0xe58] ss:$76 sps:$4 sm:$0xff]   ;;  %v12285_v63 = vld [vmem:[%s16051_s1 + $0x1170] ss:$76 sps:$4 sm:$0xff]  }
 0x3f3   :  { %6530 = vmatprep.mubr.bf16.mxu1 %v12196_v1  ;;  %7854 = vmatprep.mubr.bf16.mxu0 %v12198_v2  ;;  %v12286_v1 = vld [vmem:[%s16051_s1 + $0xef4] ss:$76 sps:$4 sm:$0xff]   ;;  %v12288_v2 = vld [vmem:[%s16051_s1 + $0x120c] ss:$76 sps:$4 sm:$0xff]  }
 0x3fa   :  { %6531 = vmatmul.mubr.bf16.gmra.mrb[44].mxu1 %v12200_v3  ;;  %7855 = vmatmul.mubr.bf16.gmra.mrb[64].mxu0 %v12201_v4  ;;  %v12291_v3 = vld [vmem:[%s16051_s1 + $0xef0] ss:$76 sps:$4 sm:$0xff]   ;;  %v12292_v4 = vld [vmem:[%s16051_s1 + $0x1208] ss:$76 sps:$4 sm:$0xff]  }
 0x3fb   :  { %6538 = vmatprep.mubr.bf16.mxu1 %v12203_v5  ;;  %7862 = vmatprep.mubr.bf16.mxu0 %v12205_v6  ;;  %v12293_v5 = vld [vmem:[%s16051_s1 + $0xf8c] ss:$76 sps:$4 sm:$0xff]   ;;  %v12295_v6 = vld [vmem:[%s16051_s1 + $0x12a4] ss:$76 sps:$4 sm:$0xff]  }
 0x402   :  { %6539 = vmatmul.mubr.bf16.gmra.mrb[48].mxu1 %v12207_v8  ;;  %7863 = vmatmul.mubr.bf16.gmra.mrb[68].mxu0 %v12208_v9  ;;  %v12298_v8 = vld [vmem:[%s16051_s1 + $0x12a0] ss:$76 sps:$4 sm:$0xff]   ;;  %v12299_v9 = vld [vmem:[%s16051_s1 + $0x1024] ss:$76 sps:$4 sm:$0xff]  }
 0x403   :  { %6546 = vmatprep.mubr.bf16.mxu1 %v12209_v10  ;;  %7870 = vmatprep.mubr.bf16.mxu0 %v12211_v11  ;;  %v12301_v10 = vld [vmem:[%s16051_s1 + $0x133c] ss:$76 sps:$4 sm:$0xff]  }
 0x40a   :  { %6547 = vmatmul.mubr.bf16.gmra.mrb[52].mxu1 %v12213_v12  ;;  %7871 = vmatmul.mubr.bf16.gmra.mrb[72].mxu0 %v12214_v14 }
 0x40b   :  { %6554 = vmatprep.mubr.bf16.mxu1 %v12216_v15  ;;  %7878 = vmatprep.mubr.bf16.mxu0 %v12218_v16  ;;  %v12304_v15 = vld [vmem:[%s16051_s1 + $0x1338] ss:$76 sps:$4 sm:$0xff]   ;;  %v12306_v16 = vld [vmem:[%s16051_s1 + $0x10bc] ss:$76 sps:$4 sm:$0xff]  }
 0x412   :  { %6555 = vmatmul.mubr.bf16.gmra.mrb[56].mxu1 %v12220_v18  ;;  %7879 = vmatmul.mubr.bf16.gmra.mrb[76].mxu0 %v12221_v20  ;;  %v12308_v18 = vld [vmem:[%s16051_s1 + $0x13d4] ss:$76 sps:$4 sm:$0xff]  }
 0x413   :  { %6562 = vmatprep.mubr.bf16.mxu1 %v12222_v21  ;;  %7886 = vmatprep.mubr.bf16.mxu0 %v12224_v22  ;;  %v12310_v21 = vld [vmem:[%s16051_s1 + $0x10b8] ss:$76 sps:$4 sm:$0xff]  }
 0x41a   :  { %6563 = vmatmul.mubr.bf16.gmra.mrb[60].mxu1 %v12226_v24  ;;  %7887 = vmatmul.mubr.bf16.gmra.mrb[80].mxu0 %v12227_v26  ;;  %v12313_v24 = vld [vmem:[%s16051_s1 + $0x1154] ss:$76 sps:$4 sm:$0xff]   ;;  %v12315_v26 = vld [vmem:[%s16051_s1 + $0x146c] ss:$76 sps:$4 sm:$0xff]  }
 0x41b   :  { %6570 = vmatprep.mubr.bf16.mxu1 %v12228_v27  ;;  %7894 = vmatprep.mubr.bf16.mxu0 %v12230_v28 }
 0x422   :  { %6571 = vmatmul.mubr.bf16.gmra.mrb[64].mxu1 %v12233_v29  ;;  %7895 = vmatmul.mubr.bf16.gmra.mrb[84].mxu0 %v12234_v30  ;;  %v12317_v29 = vld [vmem:[%s16051_s1 + $0x1150] ss:$76 sps:$4 sm:$0xff]  }
 0x423   :  { %6578 = vmatprep.mubr.bf16.mxu1 %v12235_v31  ;;  %7902 = vmatprep.mubr.bf16.mxu0 %v12237_v32  ;;  %v12318_v31 = vld [vmem:[%s16051_s1 + $0x1468] ss:$76 sps:$4 sm:$0xff]   ;;  %v12321_v32 = vld [vmem:[%s16051_s1 + $0x11ec] ss:$76 sps:$4 sm:$0xff]  }
 0x42a   :  { %6579 = vmatmul.mubr.bf16.gmra.mrb[68].mxu1 %v12239_v33  ;;  %7903 = vmatmul.mubr.bf16.gmra.mrb[88].mxu0 %v12240_v34  ;;  %v12323_v34 = vld [vmem:[%s16051_s1 + $0x1504] ss:$76 sps:$4 sm:$0xff]  }
 0x42b   :  { %6586 = vmatprep.mubr.bf16.mxu1 %v12241_v35  ;;  %7910 = vmatprep.mubr.bf16.mxu0 %v12243_v36 }
 0x432   :  { %6587 = vmatmul.mubr.bf16.gmra.mrb[72].mxu1 %v12245_v37  ;;  %7911 = vmatmul.mubr.bf16.gmra.mrb[92].mxu0 %v12246_v38  ;;  %v12325_v37 = vld [vmem:[%s16051_s1 + $0x11e8] ss:$76 sps:$4 sm:$0xff]  }
 0x433   :  { %6594 = vmatprep.mubr.bf16.mxu1 %v12248_v39  ;;  %7918 = vmatprep.mubr.bf16.mxu0 %v12250_v40  ;;  %v12326_v39 = vld [vmem:[%s16051_s1 + $0x1500] ss:$76 sps:$4 sm:$0xff]   ;;  %v12329_v40 = vld [vmem:[%s16051_s1 + $0x1284] ss:$76 sps:$4 sm:$0xff]  }
 0x43a   :  { %6595 = vmatmul.mubr.bf16.gmra.mrb[76].mxu1 %v12252_v41  ;;  %7919 = vmatmul.mubr.bf16.gmra.mrb[96].mxu0 %v12253_v42  ;;  %v12333_v42 = vld [vmem:[%s16051_s1 + $0x44] ss:$76 sps:$4 sm:$0xff]  }
 0x43b   :  { %6602 = vmatprep.mubr.bf16.mxu1 %v12254_v43  ;;  %7926 = vmatprep.mubr.bf16.mxu0 %v12256_v44 }
 0x442   :  { %6603 = vmatmul.mubr.bf16.gmra.mrb[80].mxu1 %v12258_v45  ;;  %7927 = vmatmul.mubr.bf16.gmra.mrb[100].mxu0 %v12259_v46  ;;  %v12334_v45 = vld [vmem:[%s16051_s1 + $0x1280] ss:$76 sps:$4 sm:$0xff]  }
 0x443   :  { %6610 = vmatprep.mubr.bf16.mxu1 %v12261_v47  ;;  %7934 = vmatprep.mubr.bf16.mxu0 %v12263_v48  ;;  %v12331_v47 = vld [vmem:[%s16051_s1 + $0x40] ss:$76 sps:$4 sm:$0xff]   ;;  %v12335_v48 = vld [vmem:[%s16051_s1 + $0x131c] ss:$76 sps:$4 sm:$0xff]  }
 0x44a   :  { %6611 = vmatmul.mubr.bf16.gmra.mrb[84].mxu1 %v12265_v49  ;;  %7935 = vmatmul.mubr.bf16.gmra.mrb[104].mxu0 %v12266_v50  ;;  %v12337_v50 = vld [vmem:[%s16051_s1 + $0xdc] ss:$76 sps:$4 sm:$0xff]  }
 0x44b   :  { %6618 = vmatprep.mubr.bf16.mxu1 %v12267_v51  ;;  %7942 = vmatprep.mubr.bf16.mxu0 %v12269_v52 }
 0x452   :  { %6619 = vmatmul.mubr.bf16.gmra.mrb[88].mxu1 %v12271_v53  ;;  %7943 = vmatmul.mubr.bf16.gmra.mrb[108].mxu0 %v12272_v54  ;;  %v12339_v53 = vld [vmem:[%s16051_s1 + $0x1318] ss:$76 sps:$4 sm:$0xff]  }
 0x453   :  { %6626 = vmatprep.mubr.bf16.mxu1 %v12274_v55  ;;  %7950 = vmatprep.mubr.bf16.mxu0 %v12276_v56  ;;  %v12340_v55 = vld [vmem:[%s16051_s1 + $0xd8] ss:$76 sps:$4 sm:$0xff]   ;;  %v12341_v56 = vld [vmem:[%s16051_s1 + $0x13b4] ss:$76 sps:$4 sm:$0xff]  }
 0x45a   :  { %6627 = vmatmul.mubr.bf16.gmra.mrb[92].mxu1 %v12278_v57  ;;  %7951 = vmatmul.mubr.bf16.gmra.mrb[112].mxu0 %v12279_v58  ;;  %v12343_v58 = vld [vmem:[%s16051_s1 + $0x174] ss:$76 sps:$4 sm:$0xff]  }
 0x45b   :  { %6634 = vmatprep.mubr.bf16.mxu1 %v12280_v59  ;;  %7958 = vmatprep.mubr.bf16.mxu0 %v12282_v60 }
 0x462   :  { %6635 = vmatmul.mubr.bf16.gmra.mrb[96].mxu1 %v12284_v62  ;;  %7959 = vmatmul.mubr.bf16.gmra.mrb[116].mxu0 %v12285_v63  ;;  %v12345_v62 = vld [vmem:[%s16051_s1 + $0x13b0] ss:$76 sps:$4 sm:$0xff]  }
 0x463   :  { %6642 = vmatprep.mubr.bf16.mxu1 %v12286_v1  ;;  %7966 = vmatprep.mubr.bf16.mxu0 %v12288_v2  ;;  %v12346_v1 = vld [vmem:[%s16051_s1 + $0x170] ss:$76 sps:$4 sm:$0xff]   ;;  %v12347_v2 = vld [vmem:[%s16051_s1 + $0x144c] ss:$76 sps:$4 sm:$0xff]  }
 0x46a   :  { %6643 = vmatmul.mubr.bf16.gmra.mrb[100].mxu1 %v12291_v3  ;;  %7967 = vmatmul.mubr.bf16.gmra.mrb[120].mxu0 %v12292_v4  ;;  %v12349_v4 = vld [vmem:[%s16051_s1 + $0x20c] ss:$76 sps:$4 sm:$0xff]  }
 0x46b   :  { %6650 = vmatprep.mubr.bf16.mxu1 %v12293_v5  ;;  %7974 = vmatprep.mubr.bf16.mxu0 %v12295_v6 }
 0x472   :  { %6651 = vmatmul.mubr.bf16.gmra.mrb[104].mxu1 %v12297_v7  ;;  %7975 = vmatmul.mubr.bf16.gmra.mrb[124].mxu0 %v12298_v8  ;;  %v12351_v7 = vld [vmem:[%s16051_s1 + $0x1448] ss:$76 sps:$4 sm:$0xff]  }
 0x473   :  { %6658 = vmatprep.mubr.bf16.mxu1 %v12299_v9  ;;  %7982 = vmatprep.mubr.bf16.mxu0 %v12301_v10  ;;  %v12352_v9 = vld [vmem:[%s16051_s1 + $0x208] ss:$76 sps:$4 sm:$0xff]   ;;  %v12353_v10 = vld [vmem:[%s16051_s1 + $0x14e4] ss:$76 sps:$4 sm:$0xff]  }
 0x475   :  { %v14851_v11 = vpop.f32.mrb[0].mxu1 }
 0x476   :  { %v6446_v12 = vpop.f32.mrb[1].mxu1 }
 0x477   :  { %v14856_v14 = vpop.f32.mrb[2].mxu1 }
 0x478   :  { %v6449_v17 = vpop.f32.mrb[3].mxu1 }
 0x479   :  { %v12357_v17 = vld [vmem:[%s16051_s1 + $0x14e0] ss:$76 sps:$4 sm:$0xff]  }
 0x47a   :  { %6659 = vmatmul.mubr.bf16.gmra.mrb[108].mxu1 %v12303_v13  ;;  %7983 = vmatmul.mubr.bf16.gmra.mrb[128].mxu0 %v12304_v15  ;;  %v12355_v13 = vld [vmem:[%s16051_s1 + $0x2a4] ss:$76 sps:$4 sm:$0xff]  }
 0x47b   :  { %6666 = vmatprep.mubr.bf16.mxu1 %v12306_v16  ;;  %7990 = vmatprep.mubr.bf16.mxu0 %v12308_v18 }
 0x47d   :  { %v14867_v19 = vpop.f32.mrb[4].mxu1 }
 0x47e   :  { %v6454_v20 = vpop.f32.mrb[5].mxu1 }
 0x47f   :  { %v14872_v22 = vpop.f32.mrb[6].mxu1  ;;  %v12358_v20 = vld [vmem:[%s16051_s1 + $0x2a0] ss:$76 sps:$4 sm:$0xff]  }
 0x480   :  { %v6457_v25 = vpop.f32.mrb[7].mxu1 }
 0x482   :  { %6667 = vmatmul.mubr.bf16.gmra.mrb[112].mxu1 %v12310_v21  ;;  %7991 = vmatmul.mubr.bf16.gmra.mrb[132].mxu0 %v12311_v23  ;;  %v12361_v21 = vld [vmem:[%s16051_s1 + $0x128c] ss:$76 sps:$4 sm:$0xff]  }
 0x483   :  { %6674 = vmatprep.mubr.bf16.mxu1 %v12313_v24  ;;  %7998 = vmatprep.mubr.bf16.mxu0 %v12315_v26  ;;  %v12362_v24 = vld [vmem:[%s16051_s1 + $0x33c] ss:$76 sps:$4 sm:$0xff]  }
 0x485   :  { %v14883_v27 = vpop.f32.mrb[8].mxu1 }
 0x486   :  { %v6462_v28 = vpop.f32.mrb[9].mxu1 }
 0x487   :  { %v14888_v30 = vpop.f32.mrb[10].mxu1  ;;  %v12359_v28 = vld [vmem:[%s16051_s1 + $0x1288] ss:$76 sps:$4 sm:$0xff]  }
 0x488   :  { %v6465_v33 = vpop.f32.mrb[11].mxu1 }
 0x48a   :  { %6675 = vmatmul.mubr.bf16.gmra.mrb[116].mxu1 %v12317_v29  ;;  %7999 = vmatmul.mubr.bf16.gmra.mrb[136].mxu0 %v12318_v31  ;;  %v12364_v31 = vld [vmem:[%s16051_s1 + $0x338] ss:$76 sps:$4 sm:$0xff]  }
 0x48b   :  { %6682 = vmatprep.mubr.bf16.mxu1 %v12321_v32  ;;  %8006 = vmatprep.mubr.bf16.mxu0 %v12323_v34  ;;  %v12365_v32 = vld [vmem:[%s16051_s1 + $0x1324] ss:$76 sps:$4 sm:$0xff]   ;;  %v12367_v34 = vld [vmem:[%s16051_s1 + $0x3d4] ss:$76 sps:$4 sm:$0xff]  }
 0x48d   :  { %v14899_v35 = vpop.f32.mrb[12].mxu1 }
 0x48e   :  { %v6470_v36 = vpop.f32.mrb[13].mxu1 }
 0x48f   :  { %v14904_v38 = vpop.f32.mrb[14].mxu1  ;;  %v12390_v36 = vld [vmem:[%s16050_s2 + $0x488] sm:$0xff]  }
 0x490   :  { %v6473_v41 = vpop.f32.mrb[15].mxu1 }
 0x491   :  { %v12369_v41 = vld [vmem:[%s16051_s1 + $0x1320] ss:$76 sps:$4 sm:$0xff]  }
 0x492   :  { %6683 = vmatmul.mubr.bf16.gmra.mrb[120].mxu1 %v12325_v37  ;;  %8007 = vmatmul.mubr.bf16.gmra.mrb[140].mxu0 %v12326_v39  ;;  %v12391_v39 = vld [vmem:[%s16050_s2 + $0x490] sm:$0xff]  }
 0x493   :  { %6690 = vmatprep.mubr.bf16.mxu1 %v12329_v40  ;;  %8047 = vmatprep.mubr.bf16.mxu0 %v12333_v42 }
 0x495   :  { %v14915_v43 = vpop.f32.mrb[16].mxu1 }
 0x496   :  { %v6478_v44 = vpop.f32.mrb[17].mxu1 }
 0x497   :  { %v14920_v46 = vpop.f32.mrb[18].mxu1  ;;  %v12370_v44 = vld [vmem:[%s16051_s1 + $0x3d0] ss:$76 sps:$4 sm:$0xff]  }
 0x498   :  { %v6481_v49 = vpop.f32.mrb[19].mxu1 }
 0x49a   :  { %6691 = vmatmul.mubr.bf16.gmra.mrb[124].mxu1 %v12334_v45  ;;  %8048 = vmatmul.mubr.bf16.vlgmr.msra.gmra.mrb[0].mxu0 %v12331_v47  ;;  %v12373_v47 = vld [vmem:[%s16051_s1 + $0x46c] ss:$76 sps:$4 sm:$0xff]  }
 0x49b   :  { %6698 = vmatprep.mubr.bf16.mxu1 %v12335_v48  ;;  %8055 = vmatprep.mubr.bf16.mxu0 %v12337_v50  ;;  %v12375_v50 = vld [vmem:[%s16051_s1 + $0x13b8] ss:$76 sps:$4 sm:$0xff]  }
 0x49d   :  { %v14931_v51 = vpop.f32.mrb[20].mxu1 }
 0x49e   :  { %v6486_v52 = vpop.f32.mrb[21].mxu1 }
 0x49f   :  { %v14936_v54 = vpop.f32.mrb[22].mxu1 }
 0x4a0   :  { %v6489_v57 = vpop.f32.mrb[23].mxu1 }
 0x4a1   :  { %v12379_v57 = vld [vmem:[%s16051_s1 + $0x504] ss:$76 sps:$4 sm:$0xff]  }
 0x4a2   :  { %6699 = vmatmul.mubr.bf16.gmra.mrb[128].mxu1 %v12339_v53  ;;  %8056 = vmatmul.mubr.bf16.gmra.mrb[4].mxu0 %v12340_v55  ;;  %v12376_v53 = vld [vmem:[%s16051_s1 + $0x468] ss:$76 sps:$4 sm:$0xff]  }
 0x4a3   :  { %6706 = vmatprep.mubr.bf16.mxu1 %v12341_v56  ;;  %8063 = vmatprep.mubr.bf16.mxu0 %v12343_v58  ;;  %v12377_v55 = vld [vmem:[%s16051_s1 + $0x1454] ss:$76 sps:$4 sm:$0xff]  }
 0x4a5   :  { %v14947_v59 = vpop.f32.mrb[24].mxu1 }
 0x4a6   :  { %v6494_v60 = vpop.f32.mrb[25].mxu1 }
 0x4a7   :  { %v14952_v63 = vpop.f32.mrb[26].mxu1 }
 0x4a8   :  { %v6497_v3 = vpop.f32.mrb[27].mxu1 }
 0x4a9   :  { %v12384_v3 = vld [vmem:[%s16051_s1 + $0x14ec] ss:$76 sps:$4 sm:$0xff]  }
 0x4aa   :  { %6707 = vmatmul.mubr.bf16.gmra.mrb[132].mxu1 %v12345_v62  ;;  %8064 = vmatmul.mubr.bf16.gmra.mrb[8].mxu0 %v12346_v1  ;;  %v12381_v62 = vld [vmem:[%s16051_s1 + $0x1450] ss:$76 sps:$4 sm:$0xff]  }
 0x4ab   :  { %6714 = vmatprep.mubr.bf16.mxu1 %v12347_v2  ;;  %8071 = vmatprep.mubr.bf16.mxu0 %v12349_v4  ;;  %v12382_v2 = vld [vmem:[%s16051_s1 + $0x500] ss:$76 sps:$4 sm:$0xff]  }
 0x4ad   :  { %v14963_v5 = vpop.f32.mrb[28].mxu1 }
 0x4ae   :  { %v6502_v6 = vpop.f32.mrb[29].mxu1 }
 0x4af   :  { %v14968_v8 = vpop.f32.mrb[30].mxu1  ;;  %v12386_v6 = vld [vmem:[%s16051_s1 + $0x59c] ss:$76 sps:$4 sm:$0xff]  }
 0x4b0   :  { %v6505_v12 = vpop.f32.mrb[31].mxu1 }
 0x4b2   :  { %6715 = vmatmul.mubr.bf16.gmra.mrb[136].mxu1 %v12351_v7  ;;  %8072 = vmatmul.mubr.bf16.gmra.mrb[12].mxu0 %v12352_v9 }
 0x4b3   :  { %6722 = vmatprep.mubr.bf16.mxu1 %v12353_v10  ;;  %8079 = vmatprep.mubr.bf16.mxu0 %v12355_v13  ;;  %v12388_v10 = vld [vmem:[%s16051_s1 + $0x14e8] ss:$76 sps:$4 sm:$0xff]   ;;  %v12389_v13 = vld [vmem:[%s16051_s1 + $0x598] ss:$76 sps:$4 sm:$0xff]  }
 0x4b5   :  { %v14979_v15 = vpop.f32.mrb[32].mxu1 }
 0x4b6   :  { %v6510_v16 = vpop.f32.mrb[33].mxu1 }
 0x4b7   :  { %v14984_v18 = vpop.f32.mrb[34].mxu1  ;;  %v12394_v16 = vld [vmem:[%s16051_s1 + $0x48] ss:$76 sps:$4 sm:$0xff]  }
 0x4b8   :  { %v6513_v23 = vpop.f32.mrb[35].mxu1 }
 0x4ba   :  { %6723 = vmatmul.mubr.bf16.gmra.mrb[140].mxu1 %v12357_v17  ;;  %8080 = vmatmul.mubr.bf16.gmra.mrb[16].mxu0 %v12358_v20  ;;  %v12392_v20 = vld [vmem:[%s16051_s1 + $0x634] ss:$76 sps:$4 sm:$0xff]  }
 0x4bb   :  { %7011 = vmatprep.mubr.bf16.mxu1 %v12361_v21  ;;  %8087 = vmatprep.mubr.bf16.mxu0 %v12362_v24  ;;  %v12396_v24 = vld [vmem:[%s16051_s1 + $0xe0] ss:$76 sps:$4 sm:$0xff]  }
 0x4bd   :  { %v14995_v25 = vpop.f32.mrb[36].mxu1 }
 0x4be   :  { %v6518_v26 = vpop.f32.mrb[37].mxu1 }
 0x4bf   :  { %v15000_v29 = vpop.f32.mrb[38].mxu1 }
 0x4c0   :  { %v6521_v33 = vpop.f32.mrb[39].mxu1 }
 0x4c1   :  { %v12397_v33 = vld [vmem:[%s16051_s1 + $0x6cc] ss:$76 sps:$4 sm:$0xff]  }
 0x4c2   :  { %7012 = vmatmul.mubr.bf16.vlgmr.msra.gmra.mrb[124].mxu1 %v12359_v28  ;;  %8088 = vmatmul.mubr.bf16.gmra.mrb[20].mxu0 %v12364_v31  ;;  %v12395_v28 = vld [vmem:[%s16051_s1 + $0x630] ss:$76 sps:$4 sm:$0xff]   ;;  %v12399_v31 = vld [vmem:[%s16051_s1 + $0x178] ss:$76 sps:$4 sm:$0xff]  }
 0x4c3   :  { %7019 = vmatprep.mubr.bf16.mxu1 %v12365_v32  ;;  %8095 = vmatprep.mubr.bf16.mxu0 %v12367_v34 }
 0x4c4   :  { %10159 = vmatpush3.bf16.msra.mxu1 %v14812_v61  ;;  %v12371_v61 = vld [vmem:[%s16051_s1 + $0x13bc] ss:$76 sps:$4 sm:$0xff]  }
 0x4c5   :  { %v15015_v37 = vpop.f32.mrb[40].mxu1  ;;  %10160 = vmatprep.subr.bf16.mxu1 %v12390_v36 }
 0x4c6   :  { %v6526_v40 = vpop.f32.mrb[41].mxu1 }
 0x4c7   :  { %v15023_v42 = vpop.f32.mrb[42].mxu1 }
 0x4c8   :  { %v6529_v45 = vpop.f32.mrb[43].mxu1  ;;  %10161 = vmatpush3.bf16.msra.mxu1 %v12390_v36 }
 0x4c9   :  { %10162 = vmatprep.subr.bf16.mxu1 %v12391_v39  ;;  %v12402_v45 = vld [vmem:[%s16051_s1 + $0x764] ss:$76 sps:$4 sm:$0xff]  }
 0x4ca   :  { %7020 = vmatmul.mubr.bf16.gmra.mrb[128].mxu1 %v12369_v41  ;;  %8096 = vmatmul.mubr.bf16.gmra.mrb[24].mxu0 %v12370_v44  ;;  %v12400_v41 = vld [vmem:[%s16051_s1 + $0x6c8] ss:$76 sps:$4 sm:$0xff]  }
 0x4cb   :  { %7027 = vmatprep.mubr.bf16.mxu1 %v12371_v61  ;;  %8103 = vmatprep.mubr.bf16.mxu0 %v12373_v47  ;;  %v12404_v44 = vld [vmem:[%s16051_s1 + $0x2a8] ss:$76 sps:$4 sm:$0xff]  }
 0x4cc   :  { %10163 = vmatpush3.bf16.msra.mxu1 %v12391_v39  ;;  %v12401_v39 = vld [vmem:[%s16051_s1 + $0x210] ss:$76 sps:$4 sm:$0xff]  }
 0x4cd   :  { %v15034_v48 = vpop.f32.mrb[44].mxu1  ;;  %9111 = vmatprep.subr.bf16.mxu1 %v16056_v0  ;;  %v12478_v0 = vld [vmem:[%s16051_s1 + $0x1180] ss:$76 sps:$4 sm:$0xff]  }
 0x4ce   :  { %v6534_v49 = vpop.f32.mrb[45].mxu1 }
 0x4cf   :  { %v15040_v52 = vpop.f32.mrb[46].mxu1 }
 0x4d0   :  { %v6537_v56 = vpop.f32.mrb[47].mxu1 }
 0x4d1   :  { %v12409_v56 = vld [vmem:[%s16051_s1 + $0x3d8] ss:$76 sps:$4 sm:$0xff]  }
 0x4d2   :  { %7028 = vmatmul.mubr.bf16.gmra.mrb[132].mxu1 %v12375_v50  ;;  %8104 = vmatmul.mubr.bf16.gmra.mrb[28].mxu0 %v12376_v53  ;;  %v12406_v50 = vld [vmem:[%s16051_s1 + $0x340] ss:$76 sps:$4 sm:$0xff]  }
 0x4d3   :  { %7035 = vmatprep.mubr.bf16.mxu1 %v12377_v55  ;;  %8111 = vmatprep.mubr.bf16.mxu0 %v12379_v57  ;;  %v12405_v55 = vld [vmem:[%s16051_s1 + $0x760] ss:$76 sps:$4 sm:$0xff]  }
 0x4d5   :  { %v15051_v58 = vpop.f32.mrb[48].mxu1 }
 0x4d6   :  { %v6542_v60 = vpop.f32.mrb[49].mxu1 }
 0x4d7   :  { %v15056_v1 = vpop.f32.mrb[50].mxu1  ;;  %v12407_v60 = vld [vmem:[%s16051_s1 + $0x7fc] ss:$76 sps:$4 sm:$0xff]  }
 0x4d8   :  { %v6545_v4 = vpop.f32.mrb[51].mxu1 }
 0x4da   :  { %7036 = vmatmul.mubr.bf16.gmra.mrb[136].mxu1 %v12381_v62  ;;  %8112 = vmatmul.mubr.bf16.gmra.mrb[32].mxu0 %v12382_v2 }
 0x4db   :  { %7043 = vmatprep.mubr.bf16.mxu1 %v12384_v3  ;;  %8119 = vmatprep.mubr.bf16.mxu0 %v12386_v6  ;;  %v12411_v3 = vld [vmem:[%s16051_s1 + $0x470] ss:$76 sps:$4 sm:$0xff]   ;;  %v12410_v6 = vld [vmem:[%s16051_s1 + $0x7f8] ss:$76 sps:$4 sm:$0xff]  }
 0x4dd   :  { %v15067_v7 = vpop.f32.mrb[52].mxu1 }
 0x4de   :  { %v6550_v9 = vpop.f32.mrb[53].mxu1 }
 0x4df   :  { %v15072_v12 = vpop.f32.mrb[54].mxu1  ;;  %v12414_v9 = vld [vmem:[%s16051_s1 + $0x508] ss:$76 sps:$4 sm:$0xff]  }
 0x4e0   :  { %v6553_v17 = vpop.f32.mrb[55].mxu1 }
 0x4e2   :  { %7044 = vmatmul.mubr.bf16.gmra.mrb[140].mxu1 %v12388_v10  ;;  %8120 = vmatmul.mubr.bf16.gmra.mrb[36].mxu0 %v12389_v13  ;;  %v12412_v13 = vld [vmem:[%s16051_s1 + $0x894] ss:$76 sps:$4 sm:$0xff]  }
 0x4e3   :  { %10164 = vmatprep.mubr.msk.bf16.mxu1 %vm5338_vm0, %v12394_v16  ;;  %8127 = vmatprep.mubr.bf16.mxu0 %v12392_v20  ;;  %v12416_v20 = vld [vmem:[%s16051_s1 + $0x5a0] ss:$76 sps:$4 sm:$0xff]  }
 0x4e5   :  { %v15084_v21 = vpop.f32.mrb[56].mxu1 }
 0x4e6   :  { %v6558_v23 = vpop.f32.mrb[57].mxu1 }
 0x4e7   :  { %v15089_v26 = vpop.f32.mrb[58].mxu1 }
 0x4e8   :  { %v6561_v32 = vpop.f32.mrb[59].mxu1 }
 0x4e9   :  { %v12417_v32 = vld [vmem:[%s16051_s1 + $0x92c] ss:$76 sps:$4 sm:$0xff]  }
 0x4ea   :  { %10165 = vmatmul.mubr.msk.bf16.vlgmr.msra.gmra.mrb[144].mxu1 %vm5338_vm0, %v12396_v24  ;;  %8128 = vmatmul.mubr.bf16.gmra.mrb[40].mxu0 %v12395_v28  ;;  %v12415_v24 = vld [vmem:[%s16051_s1 + $0x890] ss:$76 sps:$4 sm:$0xff]   ;;  %v12419_v28 = vld [vmem:[%s16051_s1 + $0x638] ss:$76 sps:$4 sm:$0xff]  }
 0x4eb   :  { %10168 = vmatprep.mubr.msk.bf16.mxu1 %vm5338_vm0, %v12399_v31  ;;  %8135 = vmatprep.mubr.bf16.mxu0 %v12397_v33 }
 0x4ed   :  { %v15102_v34 = vpop.f32.mrb[60].mxu1 }
 0x4ee   :  { %v6566_v36 = vpop.f32.mrb[61].mxu1 }
 0x4ef   :  { %v15107_v40 = vpop.f32.mrb[62].mxu1 }
 0x4f0   :  { %v6569_v61 = vpop.f32.mrb[63].mxu1 }
 0x4f1   :  { %v12424_v61 = vld [vmem:[%s16051_s1 + $0x768] ss:$76 sps:$4 sm:$0xff]  }
 0x4f2   :  { %10169 = vmatmul.mubr.msk.bf16.gmra.mrb[148].mxu1 %vm5338_vm0, %v12401_v39  ;;  %8136 = vmatmul.mubr.bf16.gmra.mrb[44].mxu0 %v12400_v41  ;;  %v12421_v39 = vld [vmem:[%s16051_s1 + $0x6d0] ss:$76 sps:$4 sm:$0xff]  }
 0x4f3   :  { %10172 = vmatprep.mubr.msk.bf16.mxu1 %vm5338_vm0, %v12404_v44  ;;  %8143 = vmatprep.mubr.bf16.mxu0 %v12402_v45  ;;  %v12420_v44 = vld [vmem:[%s16051_s1 + $0x928] ss:$76 sps:$4 sm:$0xff]  }
 0x4f5   :  { %v15120_v47 = vpop.f32.mrb[64].mxu1 }
 0x4f6   :  { %v6574_v49 = vpop.f32.mrb[65].mxu1 }
 0x4f7   :  { %v15125_v53 = vpop.f32.mrb[66].mxu1  ;;  %v12422_v49 = vld [vmem:[%s16051_s1 + $0x9c4] ss:$76 sps:$4 sm:$0xff]  }
 0x4f8   :  { %v6577_v57 = vpop.f32.mrb[67].mxu1 }
 0x4fa   :  { %10173 = vmatmul.mubr.msk.bf16.gmra.mrb[152].mxu1 %vm5338_vm0, %v12406_v50  ;;  %8144 = vmatmul.mubr.bf16.gmra.mrb[48].mxu0 %v12405_v55 }
 0x4fb   :  { %10176 = vmatprep.mubr.msk.bf16.mxu1 %vm5338_vm0, %v12409_v56  ;;  %8151 = vmatprep.mubr.bf16.mxu0 %v12407_v60  ;;  %v12426_v56 = vld [vmem:[%s16051_s1 + $0x800] ss:$76 sps:$4 sm:$0xff]  }
 0x4fc   :  { %v12425_v60 = vld [vmem:[%s16051_s1 + $0x9c0] ss:$76 sps:$4 sm:$0xff]  }
 0x4fd   :  { %v15138_v62 = vpop.f32.mrb[68].mxu1 }
 0x4fe   :  { %v6582_v2 = vpop.f32.mrb[69].mxu1 }
 0x4ff   :  { %v15143_v4 = vpop.f32.mrb[70].mxu1  ;;  %v12429_v2 = vld [vmem:[%s16051_s1 + $0x898] ss:$76 sps:$4 sm:$0xff]  }
 0x500   :  { %v6585_v10 = vpop.f32.mrb[71].mxu1 }
 0x502   :  { %10177 = vmatmul.mubr.msk.bf16.gmra.mrb[156].mxu1 %vm5338_vm0, %v12411_v3  ;;  %8152 = vmatmul.mubr.bf16.gmra.mrb[52].mxu0 %v12410_v6  ;;  %v12427_v6 = vld [vmem:[%s16051_s1 + $0xa5c] ss:$76 sps:$4 sm:$0xff]  }
 0x503   :  { %10180 = vmatprep.mubr.msk.bf16.mxu1 %vm5338_vm0, %v12414_v9  ;;  %8159 = vmatprep.mubr.bf16.mxu0 %v12412_v13  ;;  %v12431_v13 = vld [vmem:[%s16051_s1 + $0x930] ss:$76 sps:$4 sm:$0xff]  }
 0x505   :  { %v15156_v16 = vpop.f32.mrb[72].mxu1 }
 0x506   :  { %v6590_v17 = vpop.f32.mrb[73].mxu1 }
 0x507   :  { %v15161_v23 = vpop.f32.mrb[74].mxu1 }
 0x508   :  { %v6593_v31 = vpop.f32.mrb[75].mxu1 }
 0x509   :  { %v12432_v31 = vld [vmem:[%s16051_s1 + $0xaf4] ss:$76 sps:$4 sm:$0xff]  }
 0x50a   :  { %10181 = vmatmul.mubr.msk.bf16.gmra.mrb[160].mxu1 %vm5338_vm0, %v12416_v20  ;;  %8160 = vmatmul.mubr.bf16.gmra.mrb[56].mxu0 %v12415_v24  ;;  %v12430_v20 = vld [vmem:[%s16051_s1 + $0xa58] ss:$76 sps:$4 sm:$0xff]   ;;  %v12434_v24 = vld [vmem:[%s16051_s1 + $0x9c8] ss:$76 sps:$4 sm:$0xff]  }
 0x50b   :  { %10184 = vmatprep.mubr.msk.bf16.mxu1 %vm5338_vm0, %v12419_v28  ;;  %8167 = vmatprep.mubr.bf16.mxu0 %v12417_v32 }
 0x50d   :  { %v15174_v33 = vpop.f32.mrb[76].mxu1 }
 0x50e   :  { %v6598_v36 = vpop.f32.mrb[77].mxu1 }
 0x50f   :  { %v15179_v41 = vpop.f32.mrb[78].mxu1 }
 0x510   :  { %v6601_v45 = vpop.f32.mrb[79].mxu1 }
 0x511   :  { %v12439_v45 = vld [vmem:[%s16051_s1 + $0xaf8] ss:$76 sps:$4 sm:$0xff]  }
 0x512   :  { %10185 = vmatmul.mubr.msk.bf16.gmra.mrb[164].mxu1 %vm5338_vm0, %v12421_v39  ;;  %8168 = vmatmul.mubr.bf16.gmra.mrb[60].mxu0 %v12420_v44  ;;  %v12436_v39 = vld [vmem:[%s16051_s1 + $0xa60] ss:$76 sps:$4 sm:$0xff]  }
 0x513   :  { %10188 = vmatprep.mubr.msk.bf16.mxu1 %vm5338_vm0, %v12424_v61  ;;  %8175 = vmatprep.mubr.bf16.mxu0 %v12422_v49  ;;  %v12435_v61 = vld [vmem:[%s16051_s1 + $0xaf0] ss:$76 sps:$4 sm:$0xff]  }
 0x515   :  { %v15192_v50 = vpop.f32.mrb[80].mxu1 }
 0x516   :  { %v6606_v55 = vpop.f32.mrb[81].mxu1 }
 0x517   :  { %v15197_v57 = vpop.f32.mrb[82].mxu1  ;;  %v12437_v55 = vld [vmem:[%s16051_s1 + $0xb8c] ss:$76 sps:$4 sm:$0xff]  }
 0x518   :  { %v6609_v3 = vpop.f32.mrb[83].mxu1 }
 0x51a   :  { %10189 = vmatmul.mubr.msk.bf16.gmra.mrb[168].mxu1 %vm5338_vm0, %v12426_v56  ;;  %8176 = vmatmul.mubr.bf16.gmra.mrb[64].mxu0 %v12425_v60 }
 0x51b   :  { %10192 = vmatprep.mubr.msk.bf16.mxu1 %vm5338_vm0, %v12429_v2  ;;  %8183 = vmatprep.mubr.bf16.mxu0 %v12427_v6  ;;  %v12441_v2 = vld [vmem:[%s16051_s1 + $0xb90] ss:$76 sps:$4 sm:$0xff]   ;;  %v12440_v6 = vld [vmem:[%s16051_s1 + $0xb88] ss:$76 sps:$4 sm:$0xff]  }
 0x51d   :  { %v15210_v9 = vpop.f32.mrb[84].mxu1 }
 0x51e   :  { %v6614_v10 = vpop.f32.mrb[85].mxu1 }
 0x51f   :  { %v15215_v17 = vpop.f32.mrb[86].mxu1  ;;  %v12445_v10 = vld [vmem:[%s16051_s1 + $0xc28] ss:$76 sps:$4 sm:$0xff]  }
 0x520   :  { %v6617_v28 = vpop.f32.mrb[87].mxu1 }
 0x522   :  { %10193 = vmatmul.mubr.msk.bf16.gmra.mrb[172].mxu1 %vm5338_vm0, %v12431_v13  ;;  %8184 = vmatmul.mubr.bf16.gmra.mrb[68].mxu0 %v12430_v20  ;;  %v12442_v20 = vld [vmem:[%s16051_s1 + $0xc24] ss:$76 sps:$4 sm:$0xff]  }
 0x523   :  { %10196 = vmatprep.mubr.msk.bf16.mxu1 %vm5338_vm0, %v12434_v24  ;;  %8191 = vmatprep.mubr.bf16.mxu0 %v12432_v31  ;;  %v12446_v31 = vld [vmem:[%s16051_s1 + $0xcc0] ss:$76 sps:$4 sm:$0xff]  }
 0x525   :  { %v15228_v32 = vpop.f32.mrb[88].mxu1 }
 0x526   :  { %v6622_v36 = vpop.f32.mrb[89].mxu1 }
 0x527   :  { %v15233_v44 = vpop.f32.mrb[90].mxu1 }
 0x528   :  { %v6625_v49 = vpop.f32.mrb[91].mxu1 }
 0x529   :  { %v12447_v49 = vld [vmem:[%s16051_s1 + $0xcbc] ss:$76 sps:$4 sm:$0xff]  }
 0x52a   :  { %10197 = vmatmul.mubr.msk.bf16.gmra.mrb[176].mxu1 %vm5338_vm0, %v12436_v39  ;;  %8192 = vmatmul.mubr.bf16.gmra.mrb[72].mxu0 %v12435_v61  ;;  %v12444_v39 = vld [vmem:[%s16051_s1 + $0xc20] ss:$76 sps:$4 sm:$0xff]   ;;  %v12453_v61 = vld [vmem:[%s16051_s1 + $0xd58] ss:$76 sps:$4 sm:$0xff]  }
 0x52b   :  { %10200 = vmatprep.mubr.msk.bf16.mxu1 %vm5338_vm0, %v12439_v45  ;;  %8199 = vmatprep.mubr.bf16.mxu0 %v12437_v55 }
 0x52d   :  { %v15246_v56 = vpop.f32.mrb[92].mxu1 }
 0x52e   :  { %v6630_v60 = vpop.f32.mrb[93].mxu1 }
 0x52f   :  { %v15251_v3 = vpop.f32.mrb[94].mxu1 }
 0x530   :  { %v6633_v13 = vpop.f32.mrb[95].mxu1 }
 0x531   :  { %v12461_v13 = vld [vmem:[%s16051_s1 + $0xe88] ss:$76 sps:$4 sm:$0xff]  }
 0x532   :  { %10201 = vmatmul.mubr.msk.bf16.gmra.mrb[180].mxu1 %vm5338_vm0, %v12441_v2  ;;  %8200 = vmatmul.mubr.bf16.gmra.mrb[76].mxu0 %v12440_v6  ;;  %v12454_v2 = vld [vmem:[%s16051_s1 + $0xdf0] ss:$76 sps:$4 sm:$0xff]  }
 0x533   :  { %10204 = vmatprep.mubr.msk.bf16.mxu1 %vm5338_vm0, %v12445_v10  ;;  %8207 = vmatprep.mubr.bf16.mxu0 %v12442_v20  ;;  %v12449_v10 = vld [vmem:[%s16051_s1 + $0xcb8] ss:$76 sps:$4 sm:$0xff]  }
 0x535   :  { %v15264_v24 = vpop.f32.mrb[96].mxu1 }
 0x536   :  { %v6638_v28 = vpop.f32.mrb[97].mxu1 }
 0x537   :  { %v15269_v36 = vpop.f32.mrb[98].mxu1  ;;  %v12450_v28 = vld [vmem:[%s16051_s1 + $0xd54] ss:$76 sps:$4 sm:$0xff]  }
 0x538   :  { %v6641_v45 = vpop.f32.mrb[99].mxu1 }
 0x53a   :  { %10205 = vmatmul.mubr.msk.bf16.gmra.mrb[184].mxu1 %vm5338_vm0, %v12446_v31  ;;  %8208 = vmatmul.mubr.bf16.gmra.mrb[80].mxu0 %v12444_v39 }
 0x53b   :  { %10208 = vmatprep.mubr.msk.bf16.mxu1 %vm5338_vm0, %v12453_v61  ;;  %8215 = vmatprep.mubr.bf16.mxu0 %v12447_v49  ;;  %v12462_v61 = vld [vmem:[%s16051_s1 + $0xf20] ss:$76 sps:$4 sm:$0xff]   ;;  %v12452_v49 = vld [vmem:[%s16051_s1 + $0xd50] ss:$76 sps:$4 sm:$0xff]  }
 0x53d   :  { %v15282_v55 = vpop.f32.mrb[100].mxu1 }
 0x53e   :  { %16072 = vst [vmem:[#allocation4_spill] sm:$0xff] %v15282_v55  ;;  %v6646_v60 = vpop.f32.mrb[101].mxu1 }
 0x53f   :  { %v15287_v6 = vpop.f32.mrb[102].mxu1  ;;  %v12469_v60 = vld [vmem:[%s16051_s1 + $0xfb8] ss:$76 sps:$4 sm:$0xff]  }
 0x540   :  { %16073 = vst [vmem:[#allocation5_spill] sm:$0xff] %v15287_v6  ;;  %v6649_v20 = vpop.f32.mrb[103].mxu1 }
 0x542   :  { %10209 = vmatmul.mubr.msk.bf16.gmra.mrb[188].mxu1 %vm5338_vm0, %v12454_v2  ;;  %8216 = vmatmul.mubr.bf16.gmra.mrb[84].mxu0 %v12449_v10  ;;  %v12455_v10 = vld [vmem:[%s16051_s1 + $0xdec] ss:$76 sps:$4 sm:$0xff]  }
 0x543   :  { %10212 = vmatprep.mubr.msk.bf16.mxu1 %vm5338_vm0, %v12461_v13  ;;  %8223 = vmatprep.mubr.bf16.mxu0 %v12450_v28  ;;  %v12470_v28 = vld [vmem:[%s16051_s1 + $0x1050] ss:$76 sps:$4 sm:$0xff]  }
 0x545   :  { %v15300_v31 = vpop.f32.mrb[104].mxu1 }
 0x546   :  { %16074 = vst [vmem:[#allocation6_spill] sm:$0xff] %v15300_v31  ;;  %v6654_v39 = vpop.f32.mrb[105].mxu1  ;;  %v12492_v31 = vld [vmem:[%s16051_s1 + $0x1340] ss:$76 sps:$4 sm:$0xff]  }
 0x547   :  { %v15305_v45 = vpop.f32.mrb[106].mxu1 }
 0x548   :  { %16075 = vst [vmem:[#allocation7_spill] sm:$0xff] %v15305_v45  ;;  %v6657_v2 = vpop.f32.mrb[107].mxu1 }
 0x549   :  { %v12457_v2 = vld [vmem:[%s16051_s1 + $0xde8] ss:$76 sps:$4 sm:$0xff]  }
 0x54a   :  { %10213 = vmatmul.mubr.msk.bf16.gmra.mrb[192].mxu1 %vm5338_vm0, %v12462_v61  ;;  %8224 = vmatmul.mubr.bf16.gmra.mrb[88].mxu0 %v12452_v49  ;;  %v12477_v61 = vld [vmem:[%s16051_s1 + $0x10e8] ss:$76 sps:$4 sm:$0xff]  }
 0x54b   :  { %10216 = vmatprep.mubr.msk.bf16.mxu1 %vm5338_vm0, %v12469_v60  ;;  %8231 = vmatprep.mubr.bf16.mxu0 %v12455_v10  ;;  %v12458_v60 = vld [vmem:[%s16051_s1 + $0xe84] ss:$76 sps:$4 sm:$0xff]  }
 0x54d   :  { %v15318_v13 = vpop.f32.mrb[108].mxu1 }
 0x54e   :  { %16076 = vst [vmem:[#allocation8_spill] sm:$0xff] %v15318_v13  ;;  %v6662_v20 = vpop.f32.mrb[109].mxu1 }
 0x54f   :  { %v15323_v39 = vpop.f32.mrb[110].mxu1 }
 0x550   :  { %16077 = vst [vmem:[#allocation9_spill] sm:$0xff] %v15323_v39  ;;  %v6665_v49 = vpop.f32.mrb[111].mxu1 }
 0x551   :  { %v12460_v49 = vld [vmem:[%s16051_s1 + $0xe80] ss:$76 sps:$4 sm:$0xff]  }
 0x552   :  { %10217 = vmatmul.mubr.msk.bf16.gmra.mrb[196].mxu1 %vm5338_vm0, %v12470_v28  ;;  %8232 = vmatmul.mubr.bf16.gmra.mrb[92].mxu0 %v12457_v2  ;;  %v12485_v28 = vld [vmem:[%s16051_s1 + $0x1218] ss:$76 sps:$4 sm:$0xff]  }
 0x553   :  { %10220 = vmatprep.mubr.msk.bf16.mxu1 %vm5338_vm0, %v12477_v61  ;;  %8239 = vmatprep.mubr.bf16.mxu0 %v12458_v60  ;;  %v12463_v61 = vld [vmem:[%s16051_s1 + $0xf1c] ss:$76 sps:$4 sm:$0xff]  }
 0x555   :  { %v15336_v10 = vpop.f32.mrb[112].mxu1 }
 0x556   :  { %16078 = vst [vmem:[#allocation10_spill] sm:$0xff] %v15336_v10  ;;  %v6670_v20 = vpop.f32.mrb[113].mxu1 }
 0x557   :  { %v15341_v39 = vpop.f32.mrb[114].mxu1 }
 0x558   :  { %16079 = vst [vmem:[#allocation11_spill] sm:$0xff] %v15341_v39  ;;  %v6673_v2 = vpop.f32.mrb[115].mxu1  ;;  %v12486_v39 = vld [vmem:[%s16051_s1 + $0x12b0] ss:$76 sps:$4 sm:$0xff]  }
 0x559   :  { %v12465_v2 = vld [vmem:[%s16051_s1 + $0xf18] ss:$76 sps:$4 sm:$0xff]  }
 0x55a   :  { %10221 = vmatmul.mubr.msk.bf16.gmra.mrb[200].mxu1 %vm5338_vm0, %v12478_v0  ;;  %8240 = vmatmul.mubr.bf16.gmra.mrb[96].mxu0 %v12460_v49  ;;  %v12493_v0 = vld [vmem:[%s16051_s1 + $0x1348] ss:$76 sps:$4 sm:$0xff]  }
 0x55b   :  { %10224 = vmatprep.mubr.msk.bf16.mxu1 %vm5338_vm0, %v12485_v28  ;;  %8247 = vmatprep.mubr.bf16.mxu0 %v12463_v61  ;;  %v12466_v28 = vld [vmem:[%s16051_s1 + $0xfb4] ss:$76 sps:$4 sm:$0xff]  }
 0x55d   :  { %v15354_v60 = vpop.f32.mrb[116].mxu1 }
 0x55e   :  { %16080 = vst [vmem:[#allocation12_spill] sm:$0xff] %v15354_v60  ;;  %v6678_v20 = vpop.f32.mrb[117].mxu1 }
 0x55f   :  { %v15359_v10 = vpop.f32.mrb[118].mxu1 }
 0x560   :  { %16081 = vst [vmem:[#allocation13_spill] sm:$0xff] %v15359_v10  ;;  %v6681_v49 = vpop.f32.mrb[119].mxu1  ;;  %v12494_v10 = vld [vmem:[%s16051_s1 + $0x13e0] ss:$76 sps:$4 sm:$0xff]  }
 0x561   :  { %v12468_v49 = vld [vmem:[%s16051_s1 + $0xfb0] ss:$76 sps:$4 sm:$0xff]  }
 0x562   :  { %10225 = vmatmul.mubr.msk.bf16.gmra.mrb[204].mxu1 %vm5338_vm0, %v12486_v39  ;;  %8248 = vmatmul.mubr.bf16.gmra.mrb[100].mxu0 %v12465_v2  ;;  %v12501_v39 = vld [vmem:[%s16051_s1 + $0x1478] ss:$76 sps:$4 sm:$0xff]  }
 0x563   :  { %10228 = vmatprep.mubr.msk.bf16.mxu1 %vm5338_vm0, %v12493_v0  ;;  %8255 = vmatprep.mubr.bf16.mxu0 %v12466_v28  ;;  %v12471_v0 = vld [vmem:[%s16051_s1 + $0x104c] ss:$76 sps:$4 sm:$0xff]  }
 0x565   :  { %v15372_v61 = vpop.f32.mrb[120].mxu1 }
 0x566   :  { %16082 = vst [vmem:[#allocation14_spill] sm:$0xff] %v15372_v61  ;;  %v6686_v20 = vpop.f32.mrb[121].mxu1 }
 0x567   :  { %v15377_v60 = vpop.f32.mrb[122].mxu1  ;;  %v12502_v20 = vld [vmem:[%s16051_s1 + $0x1510] ss:$76 sps:$4 sm:$0xff]  }
 0x568   :  { %16083 = vst [vmem:[#allocation15_spill] sm:$0xff] %v15377_v60  ;;  %v6689_v2 = vpop.f32.mrb[123].mxu1 }
 0x569   :  { %v12473_v2 = vld [vmem:[%s16051_s1 + $0x1048] ss:$76 sps:$4 sm:$0xff]  }
 0x56a   :  { %10229 = vmatmul.mubr.msk.bf16.gmra.mrb[208].mxu1 %vm5338_vm0, %v12494_v10  ;;  %8256 = vmatmul.mubr.bf16.gmra.mrb[104].mxu0 %v12468_v49  ;;  %v12474_v10 = vld [vmem:[%s16051_s1 + $0x10e4] ss:$76 sps:$4 sm:$0xff]  }
 0x56b   :  { %10232 = vmatprep.mubr.msk.bf16.mxu1 %vm5338_vm0, %v12501_v39  ;;  %8263 = vmatprep.mubr.bf16.mxu0 %v12471_v0 }
 0x56d   :  { %v8049_v28 = vpop.f32.mrb[0].mxu0 }
 0x56e   :  { %v15394_v60 = vadd.f32 %v8049_v28, %v14851_v11  ;;  %v8051_v61 = vpop.f32.mrb[1].mxu0  ;;  %v12476_v28 = vld [vmem:[%s16051_s1 + $0x10e0] ss:$76 sps:$4 sm:$0xff]  }
 0x56f   :  { %v8052_v13 = vpop.f32.mrb[2].mxu0 }
 0x570   :  { %v15403_v49 = vadd.f32 %v8052_v13, %v14856_v14  ;;  %v8054_v39 = vpop.f32.mrb[3].mxu0  ;;  %v12479_v14 = vld [vmem:[%s16051_s1 + $0x117c] ss:$76 sps:$4 sm:$0xff]  }
 0x571   :  { %v12481_v39 = vld [vmem:[%s16051_s1 + $0x1178] ss:$76 sps:$4 sm:$0xff]  }
 0x572   :  { %10233 = vmatmul.mubr.msk.bf16.gmra.mrb[212].mxu1 %vm5338_vm0, %v12502_v20  ;;  %8264 = vmatmul.mubr.bf16.gmra.mrb[108].mxu0 %v12473_v2 }
 0x573   :  { %8271 = vmatprep.mubr.bf16.mxu0 %v12474_v10 }
 0x575   :  { %v8057_v11 = vpop.f32.mrb[4].mxu0 }
 0x576   :  { %v15407_v61 = vadd.f32 %v8057_v11, %v14867_v19  ;;  %v8059_v0 = vpop.f32.mrb[5].mxu0 }
 0x577   :  { %v8060_v45 = vpop.f32.mrb[6].mxu0  ;;  %v12482_v0 = vld [vmem:[%s16051_s1 + $0x1214] ss:$76 sps:$4 sm:$0xff]  }
 0x578   :  { %v15416_v13 = vadd.f32 %v8060_v45, %v14872_v22  ;;  %v8062_v20 = vpop.f32.mrb[7].mxu0 }
 0x579   :  { %v12484_v20 = vld [vmem:[%s16051_s1 + $0x1210] ss:$76 sps:$4 sm:$0xff]  }
 0x57a   :  { %8272 = vmatmul.mubr.bf16.gmra.mrb[112].mxu0 %v12476_v28 }
 0x57b   :  { %8279 = vmatprep.mubr.bf16.mxu0 %v12479_v14 }
 0x57d   :  { %v8065_v2 = vpop.f32.mrb[8].mxu0 }
 0x57e   :  { %v15419_v19 = vadd.f32 %v8065_v2, %v14883_v27  ;;  %v8067_v10 = vpop.f32.mrb[9].mxu0 }
 0x57f   :  { %v8068_v11 = vpop.f32.mrb[10].mxu0  ;;  %v12487_v10 = vld [vmem:[%s16051_s1 + $0x12ac] ss:$76 sps:$4 sm:$0xff]  }
 0x580   :  { %v15428_v22 = vadd.f32 %v8068_v11, %v14888_v30  ;;  %v8070_v45 = vpop.f32.mrb[11].mxu0 }
 0x581   :  { %v12489_v45 = vld [vmem:[%s16051_s1 + $0x12a8] ss:$76 sps:$4 sm:$0xff]  }
 0x582   :  { %8280 = vmatmul.mubr.bf16.gmra.mrb[116].mxu0 %v12481_v39 }
 0x583   :  { %8287 = vmatprep.mubr.bf16.mxu0 %v12482_v0 }
 0x585   :  { %v8073_v28 = vpop.f32.mrb[12].mxu0 }
 0x586   :  { %v15431_v27 = vadd.f32 %v8073_v28, %v14899_v35  ;;  %v8075_v14 = vpop.f32.mrb[13].mxu0 }
 0x587   :  { %v8076_v2 = vpop.f32.mrb[14].mxu0  ;;  %v12490_v14 = vld [vmem:[%s16051_s1 + $0x1344] ss:$76 sps:$4 sm:$0xff]  }
 0x588   :  { %v15440_v30 = vadd.f32 %v8076_v2, %v14904_v38  ;;  %v8078_v11 = vpop.f32.mrb[15].mxu0 }
 0x58a   :  { %8288 = vmatmul.mubr.bf16.gmra.mrb[120].mxu0 %v12484_v20 }
 0x58b   :  { %8295 = vmatprep.mubr.bf16.mxu0 %v12487_v10 }
 0x58d   :  { %v8081_v39 = vpop.f32.mrb[16].mxu0 }
 0x58e   :  { %v15443_v35 = vadd.f32 %v8081_v39, %v14915_v43  ;;  %v8083_v0 = vpop.f32.mrb[17].mxu0 }
 0x58f   :  { %v8084_v28 = vpop.f32.mrb[18].mxu0 }
 0x590   :  { %v15452_v38 = vadd.f32 %v8084_v28, %v14920_v46  ;;  %v8086_v2 = vpop.f32.mrb[19].mxu0 }
 0x592   :  { %8296 = vmatmul.mubr.bf16.gmra.mrb[124].mxu0 %v12489_v45  ;;  %v12495_v45 = vld [vmem:[%s16051_s1 + $0x13dc] ss:$76 sps:$4 sm:$0xff]  }
 0x593   :  { %8303 = vmatprep.mubr.bf16.mxu0 %v12490_v14 }
 0x595   :  { %v15454_v20 = vpop.f32.mrb[124].mxu1  ;;  %v8089_v43 = vpop.f32.mrb[20].mxu0 }
 0x596   :  { %16084 = vst [vmem:[#allocation16_spill] sm:$0xff] %v15454_v20  ;;  %v7015_v10 = vpop.f32.mrb[125].mxu1  ;;  %v15457_v11 = vadd.f32 %v8089_v43, %v14931_v51  ;;  %v8091_v39 = vpop.f32.mrb[21].mxu0 }
 0x597   :  { %v15459_v0 = vpop.f32.mrb[126].mxu1  ;;  %v8092_v6 = vpop.f32.mrb[22].mxu0 }
 0x598   :  { %16085 = vst [vmem:[#allocation17_spill] sm:$0xff] %v15459_v0  ;;  %v7018_v46 = vpop.f32.mrb[127].mxu1  ;;  %v15468_v28 = vadd.f32 %v8092_v6, %v14936_v54  ;;  %v8094_v14 = vpop.f32.mrb[23].mxu0  ;;  %v12498_v6 = vld [vmem:[%s16051_s1 + $0x1474] ss:$76 sps:$4 sm:$0xff]  }
 0x599   :  { %v12497_v46 = vld [vmem:[%s16051_s1 + $0x13d8] ss:$76 sps:$4 sm:$0xff]  }
 0x59a   :  { %8304 = vmatmul.mubr.bf16.gmra.mrb[128].mxu0 %v12492_v31 }
 0x59b   :  { %8311 = vmatprep.mubr.bf16.mxu0 %v12495_v45 }
 0x59d   :  { %v15470_v51 = vpop.f32.mrb[128].mxu1  ;;  %v8097_v2 = vpop.f32.mrb[24].mxu0 }
 0x59e   :  { %16086 = vst [vmem:[#allocation18_spill] sm:$0xff] %v15470_v51  ;;  %v7023_v43 = vpop.f32.mrb[129].mxu1  ;;  %v15473_v10 = vadd.f32 %v8097_v2, %v14947_v59  ;;  %v8099_v39 = vpop.f32.mrb[25].mxu0 }
 0x59f   :  { %v15475_v0 = vpop.f32.mrb[130].mxu1  ;;  %v8100_v20 = vpop.f32.mrb[26].mxu0 }
 0x5a0   :  { %16087 = vst [vmem:[#allocation19_spill] sm:$0xff] %v15475_v0  ;;  %v7026_v54 = vpop.f32.mrb[131].mxu1  ;;  %v15484_v31 = vadd.f32 %v8100_v20, %v14952_v63  ;;  %v8102_v45 = vpop.f32.mrb[27].mxu0  ;;  %v12503_v20 = vld [vmem:[%s16051_s1 + $0x150c] ss:$76 sps:$4 sm:$0xff]  }
 0x5a1   :  { %v12500_v54 = vld [vmem:[%s16051_s1 + $0x1470] ss:$76 sps:$4 sm:$0xff]  }
 0x5a2   :  { %8312 = vmatmul.mubr.bf16.gmra.mrb[132].mxu0 %v12497_v46 }
 0x5a3   :  { %8319 = vmatprep.mubr.bf16.mxu0 %v12498_v6 }
 0x5a5   :  { %v15486_v59 = vpop.f32.mrb[132].mxu1  ;;  %v8105_v14 = vpop.f32.mrb[28].mxu0 }
 0x5a6   :  { %16088 = vst [vmem:[#allocation20_spill] sm:$0xff] %v15486_v59  ;;  %v7031_v2 = vpop.f32.mrb[133].mxu1  ;;  %v15489_v43 = vadd.f32 %v8105_v14, %v14963_v5  ;;  %v8107_v39 = vpop.f32.mrb[29].mxu0 }
 0x5a7   :  { %v15491_v0 = vpop.f32.mrb[134].mxu1  ;;  %v8108_v51 = vpop.f32.mrb[30].mxu0 }
 0x5a8   :  { %16089 = vst [vmem:[#allocation21_spill] sm:$0xff] %v15491_v0  ;;  %v7034_v63 = vpop.f32.mrb[135].mxu1  ;;  %v15500_v46 = vadd.f32 %v8108_v51, %v14968_v8  ;;  %v8110_v6 = vpop.f32.mrb[31].mxu0 }
 0x5a9   :  { %v12505_v63 = vld [vmem:[%s16051_s1 + $0x1508] ss:$76 sps:$4 sm:$0xff]  }
 0x5aa   :  { %8320 = vmatmul.mubr.bf16.gmra.mrb[136].mxu0 %v12500_v54 }
 0x5ab   :  { %8327 = vmatprep.mubr.bf16.mxu0 %v12503_v20 }
 0x5ad   :  { %v15502_v5 = vpop.f32.mrb[136].mxu1  ;;  %v8113_v45 = vpop.f32.mrb[32].mxu0 }
 0x5ae   :  { %16090 = vst [vmem:[#allocation22_spill] sm:$0xff] %v15502_v5  ;;  %v7039_v14 = vpop.f32.mrb[137].mxu1  ;;  %v15505_v2 = vadd.f32 %v8113_v45, %v14979_v15  ;;  %v8115_v39 = vpop.f32.mrb[33].mxu0 }
 0x5af   :  { %v15507_v0 = vpop.f32.mrb[138].mxu1  ;;  %v8116_v59 = vpop.f32.mrb[34].mxu0 }
 0x5b0   :  { %16091 = vst [vmem:[#allocation23_spill] sm:$0xff] %v15507_v0  ;;  %v7042_v8 = vpop.f32.mrb[139].mxu1  ;;  %v15513_v51 = vadd.f32 %v8116_v59, %v14984_v18  ;;  %v8118_v54 = vpop.f32.mrb[35].mxu0 }
 0x5b2   :  { %8328 = vmatmul.mubr.bf16.gmra.mrb[140].mxu0 %v12505_v63 }
 0x5b5   :  { %v15515_v20 = vpop.f32.mrb[140].mxu1  ;;  %v8121_v6 = vpop.f32.mrb[36].mxu0 }
 0x5b6   :  { %16092 = vst [vmem:[#allocation24_spill] sm:$0xff] %v15515_v20  ;;  %v7047_v14 = vpop.f32.mrb[141].mxu1  ;;  %v15518_v15 = vadd.f32 %v8121_v6, %v14995_v25  ;;  %v8123_v45 = vpop.f32.mrb[37].mxu0 }
 0x5b7   :  { %v15520_v39 = vpop.f32.mrb[142].mxu1  ;;  %v8124_v0 = vpop.f32.mrb[38].mxu0 }
 0x5b8   :  { %16093 = vst [vmem:[#allocation25_spill] sm:$0xff] %v15520_v39  ;;  %v7050_v5 = vpop.f32.mrb[143].mxu1  ;;  %v15523_v55 = vadd.f32 %v8124_v0, %v15000_v29  ;;  %v8126_v8 = vpop.f32.mrb[39].mxu0 }
 0x5bd   :  { %v10166_v18 = vpop.f32.mrb[144].mxu1  ;;  %v8129_v59 = vpop.f32.mrb[40].mxu0 }
 0x5be   :  { %v15526_v63 = vadd.f32 %v15407_v61, %v10166_v18  ;;  %v8370_v54 = vpop.f32.mrb[145].mxu1  ;;  %v15529_v14 = vadd.f32 %v8129_v59, %v15015_v37  ;;  %v8131_v25 = vpop.f32.mrb[41].mxu0 }
 0x5bf   :  { %v15532_v6 = vadd.f32 %v15394_v60, %v8370_v54  ;;  %v10167_v45 = vpop.f32.mrb[146].mxu1  ;;  %v8132_v39 = vpop.f32.mrb[42].mxu0 }
 0x5c0   :  { %v15535_v5 = vadd.f32 %v15416_v13, %v10167_v45  ;;  %v8373_v29 = vpop.f32.mrb[147].mxu1  ;;  %v15538_v0 = vadd.f32 %v8132_v39, %v15023_v42  ;;  %v8134_v8 = vpop.f32.mrb[43].mxu0 }
 0x5c1   :  { %v15541_v61 = vadd.f32 %v15403_v49, %v8373_v29 }
 0x5c5   :  { %v10170_v18 = vpop.f32.mrb[148].mxu1  ;;  %v8137_v37 = vpop.f32.mrb[44].mxu0 }
 0x5c6   :  { %v15544_v59 = vadd.f32 %v15431_v27, %v10170_v18  ;;  %v8386_v60 = vpop.f32.mrb[149].mxu1  ;;  %v10290_v54 = vadd.f32 %v8137_v37, %v15034_v48  ;;  %v8139_v25 = vpop.f32.mrb[45].mxu0 }
 0x5c7   :  { %v15548_v13 = vadd.f32 %v15419_v19, %v8386_v60  ;;  %v10171_v45 = vpop.f32.mrb[150].mxu1  ;;  %v8140_v20 = vpop.f32.mrb[46].mxu0 }
 0x5c8   :  { %v15551_v42 = vadd.f32 %v15440_v30, %v10171_v45  ;;  %v8389_v39 = vpop.f32.mrb[151].mxu1  ;;  %v10291_v49 = vadd.f32 %v8140_v20, %v15040_v52  ;;  %v8142_v29 = vpop.f32.mrb[47].mxu0 }
 0x5c9   :  { %v15555_v8 = vadd.f32 %v15428_v22, %v8389_v39 }
 0x5cd   :  { %v10174_v27 = vpop.f32.mrb[152].mxu1  ;;  %v8145_v18 = vpop.f32.mrb[48].mxu0 }
 0x5ce   :  { %v15558_v48 = vadd.f32 %v15457_v11, %v10174_v27  ;;  %v8402_v37 = vpop.f32.mrb[153].mxu1  ;;  %v15561_v19 = vadd.f32 %v8145_v18, %v15051_v58  ;;  %v8147_v60 = vpop.f32.mrb[49].mxu0 }
 0x5cf   :  { %v15564_v30 = vadd.f32 %v15443_v35, %v8402_v37  ;;  %v10175_v25 = vpop.f32.mrb[154].mxu1  ;;  %v8148_v45 = vpop.f32.mrb[50].mxu0 }
 0x5d0   :  { %v15567_v52 = vadd.f32 %v15468_v28, %v10175_v25  ;;  %v8405_v22 = vpop.f32.mrb[155].mxu1  ;;  %v15570_v20 = vadd.f32 %v8148_v45, %v15056_v1  ;;  %v8150_v39 = vpop.f32.mrb[51].mxu0 }
 0x5d1   :  { %v15573_v11 = vadd.f32 %v15452_v38, %v8405_v22 }
 0x5d2   :  { %16094 = vst [vmem:[#allocation26_spill] sm:$0xff] %v15567_v52 }
 0x5d5   :  { %v10178_v29 = vpop.f32.mrb[156].mxu1  ;;  %v8153_v58 = vpop.f32.mrb[52].mxu0 }
 0x5d6   :  { %v15576_v27 = vadd.f32 %v15489_v43, %v10178_v29  ;;  %v8418_v35 = vpop.f32.mrb[157].mxu1  ;;  %v10294_v18 = vadd.f32 %v8153_v58, %v15067_v7  ;;  %v8155_v37 = vpop.f32.mrb[53].mxu0 }
 0x5d7   :  { %v15580_v28 = vadd.f32 %v15473_v10, %v8418_v35  ;;  %v10179_v60 = vpop.f32.mrb[158].mxu1  ;;  %v8156_v25 = vpop.f32.mrb[54].mxu0 }
 0x5d8   :  { %16095 = vst [vmem:[#allocation27_spill] sm:$0xff] %v15576_v27  ;;  %v15583_v1 = vadd.f32 %v15500_v46, %v10179_v60  ;;  %v8421_v45 = vpop.f32.mrb[159].mxu1  ;;  %v10295_v38 = vadd.f32 %v8156_v25, %v15072_v12  ;;  %v8158_v22 = vpop.f32.mrb[55].mxu0 }
 0x5d9   :  { %16096 = vst [vmem:[#allocation28_spill] sm:$0xff] %v15580_v28  ;;  %v15587_v39 = vadd.f32 %v15484_v31, %v8421_v45 }
 0x5da   :  { %16097 = vst [vmem:[#allocation29_spill] sm:$0xff] %v15583_v1 }
 0x5db   :  { %16098 = vst [vmem:[#allocation30_spill] sm:$0xff] %v15587_v39 }
 0x5dd   :  { %v10182_v43 = vpop.f32.mrb[160].mxu1  ;;  %v8161_v29 = vpop.f32.mrb[56].mxu0 }
 0x5de   :  { %v15590_v7 = vadd.f32 %v15518_v15, %v10182_v43  ;;  %v8434_v58 = vpop.f32.mrb[161].mxu1  ;;  %v10296_v10 = vadd.f32 %v8161_v29, %v15084_v21  ;;  %v8163_v35 = vpop.f32.mrb[57].mxu0 }
 0x5df   :  { %v15594_v37 = vadd.f32 %v15505_v2, %v8434_v58  ;;  %v10183_v46 = vpop.f32.mrb[162].mxu1  ;;  %v8164_v60 = vpop.f32.mrb[58].mxu0 }
 0x5e0   :  { %v15599_v31 = vadd.f32 %v15523_v55, %v10183_v46  ;;  %v8437_v25 = vpop.f32.mrb[163].mxu1  ;;  %v10297_v45 = vadd.f32 %v8164_v60, %v15089_v26  ;;  %v8166_v15 = vpop.f32.mrb[59].mxu0 }
 0x5e1   :  { %16099 = vst [vmem:[#allocation31_spill] sm:$0xff] %v15594_v37  ;;  %v15603_v22 = vadd.f32 %v15513_v51, %v8437_v25 }
 0x5e3   :  { %16100 = vst [vmem:[#allocation32_spill] sm:$0xff] %v15603_v22 }
 0x5e5   :  { %v10186_v2 = vpop.f32.mrb[164].mxu1  ;;  %v8169_v43 = vpop.f32.mrb[60].mxu0 }
 0x5e6   :  { %v15607_v29 = vadd.f32 %v10290_v54, %v10186_v2  ;;  %v8450_v58 = vpop.f32.mrb[165].mxu1  ;;  %v10298_v35 = vadd.f32 %v8169_v43, %v15102_v34  ;;  %v8171_v12 = vpop.f32.mrb[61].mxu0 }
 0x5e7   :  { %v15611_v55 = vadd.f32 %v15529_v14, %v8450_v58  ;;  %v10187_v46 = vpop.f32.mrb[166].mxu1  ;;  %v8172_v51 = vpop.f32.mrb[62].mxu0 }
 0x5e8   :  { %v15615_v60 = vadd.f32 %v10291_v49, %v10187_v46  ;;  %v8453_v25 = vpop.f32.mrb[167].mxu1  ;;  %v10299_v54 = vadd.f32 %v8172_v51, %v15107_v40  ;;  %v8174_v2 = vpop.f32.mrb[63].mxu0 }
 0x5e9   :  { %v15621_v34 = vadd.f32 %v15538_v0, %v8453_v25 }
 0x5ed   :  { %v10190_v43 = vpop.f32.mrb[168].mxu1  ;;  %v8177_v58 = vpop.f32.mrb[64].mxu0 }
 0x5ee   :  { %v15627_v49 = vadd.f32 %v10294_v18, %v10190_v43  ;;  %v8466_v46 = vpop.f32.mrb[169].mxu1  ;;  %v10300_v26 = vadd.f32 %v8177_v58, %v15120_v47  ;;  %v8179_v15 = vpop.f32.mrb[65].mxu0 }
 0x5ef   :  { %v15631_v40 = vadd.f32 %v15561_v19, %v8466_v46  ;;  %v10191_v51 = vpop.f32.mrb[170].mxu1  ;;  %v8180_v25 = vpop.f32.mrb[66].mxu0 }
 0x5f0   :  { %v15635_v2 = vadd.f32 %v10295_v38, %v10191_v51  ;;  %v8469_v14 = vpop.f32.mrb[171].mxu1  ;;  %v10301_v18 = vadd.f32 %v8180_v25, %v15125_v53  ;;  %v8182_v43 = vpop.f32.mrb[67].mxu0 }
 0x5f1   :  { %v15641_v47 = vadd.f32 %v15570_v20, %v8469_v14 }
 0x5f5   :  { %v10194_v58 = vpop.f32.mrb[172].mxu1  ;;  %v8185_v46 = vpop.f32.mrb[68].mxu0 }
 0x5f6   :  { %v15647_v38 = vadd.f32 %v10298_v35, %v10194_v58  ;;  %v8482_v51 = vpop.f32.mrb[173].mxu1  ;;  %v10302_v0 = vadd.f32 %v8185_v46, %v15138_v62  ;;  %v8187_v12 = vpop.f32.mrb[69].mxu0 }
 0x5f7   :  { %v15650_v21 = vadd.f32 %v10296_v10, %v8482_v51  ;;  %v10195_v53 = vpop.f32.mrb[174].mxu1  ;;  %v8188_v14 = vpop.f32.mrb[70].mxu0 }
 0x5f8   :  { %16101 = vst [vmem:[#allocation33_spill] sm:$0xff] %v15647_v38  ;;  %v15654_v25 = vadd.f32 %v10299_v54, %v10195_v53  ;;  %v8485_v43 = vpop.f32.mrb[175].mxu1  ;;  %v10303_v35 = vadd.f32 %v8188_v14, %v15143_v4  ;;  %v8190_v58 = vpop.f32.mrb[71].mxu0 }
 0x5f9   :  { %v15659_v15 = vadd.f32 %v10297_v45, %v8485_v43 }
 0x5fa   :  { %16102 = vst [vmem:[#allocation34_spill] sm:$0xff] %v15654_v25 }
 0x5fb   :  { %16103 = vst [vmem:[#allocation35_spill] sm:$0xff] %v15659_v15 }
 0x5fd   :  { %v10198_v12 = vpop.f32.mrb[176].mxu1  ;;  %v8193_v46 = vpop.f32.mrb[72].mxu0 }
 0x5fe   :  { %v15665_v51 = vadd.f32 %v10302_v0, %v10198_v12  ;;  %v8498_v54 = vpop.f32.mrb[177].mxu1  ;;  %v10304_v53 = vadd.f32 %v8193_v46, %v15156_v16  ;;  %v8195_v20 = vpop.f32.mrb[73].mxu0 }
 0x5ff   :  { %v15668_v19 = vadd.f32 %v10300_v26, %v8498_v54  ;;  %v10199_v4 = vpop.f32.mrb[178].mxu1  ;;  %v8196_v14 = vpop.f32.mrb[74].mxu0 }
 0x600   :  { %16104 = vst [vmem:[#allocation36_spill] sm:$0xff] %v15665_v51  ;;  %v15672_v43 = vadd.f32 %v10303_v35, %v10199_v4  ;;  %v8501_v58 = vpop.f32.mrb[179].mxu1  ;;  %v10305_v0 = vadd.f32 %v8196_v14, %v15161_v23  ;;  %v8198_v12 = vpop.f32.mrb[75].mxu0 }
 0x601   :  { %16105 = vst [vmem:[#allocation37_spill] sm:$0xff] %v15668_v19  ;;  %v15677_v10 = vadd.f32 %v10301_v18, %v8501_v58 }
 0x602   :  { %16106 = vst [vmem:[#allocation38_spill] sm:$0xff] %v15672_v43 }
 0x603   :  { %16107 = vst [vmem:[#allocation39_spill] sm:$0xff] %v15677_v10 }
 0x605   :  { %v10202_v20 = vpop.f32.mrb[180].mxu1  ;;  %v8201_v46 = vpop.f32.mrb[76].mxu0 }
 0x606   :  { %v8514_v54 = vpop.f32.mrb[181].mxu1  ;;  %v10306_v35 = vadd.f32 %v8201_v46, %v15174_v33  ;;  %v8203_v4 = vpop.f32.mrb[77].mxu0 }
 0x607   :  { %v15684_v45 = vadd.f32 %v10304_v53, %v8514_v54  ;;  %v10203_v62 = vpop.f32.mrb[182].mxu1  ;;  %v8204_v51 = vpop.f32.mrb[78].mxu0 }
 0x608   :  { %v8517_v23 = vpop.f32.mrb[183].mxu1  ;;  %v15686_v14 = vadd.f32 %v10306_v35, %v10202_v20  ;;  %v10307_v18 = vadd.f32 %v8204_v51, %v15179_v41  ;;  %v8206_v58 = vpop.f32.mrb[79].mxu0 }
 0x609   :  { %v15689_v12 = vadd.f32 %v10305_v0, %v8517_v23 }
 0x60a   :  { %v15691_v16 = vadd.f32 %v10307_v18, %v10203_v62 }
 0x60d   :  { %v10206_v26 = vpop.f32.mrb[184].mxu1  ;;  %v8209_v43 = vpop.f32.mrb[80].mxu0 }
 0x60e   :  { %v8530_v22 = vpop.f32.mrb[185].mxu1  ;;  %v10308_v33 = vadd.f32 %v8209_v43, %v15192_v50  ;;  %v8211_v46 = vpop.f32.mrb[81].mxu0  ;;  %v12508_v43 = vld [vmem:[%s16052_s3 + $0x4] ss:$8 sps:$4 sm:$0xff]  }
 0x60f   :  { %v10207_v53 = vpop.f32.mrb[186].mxu1  ;;  %v8212_v54 = vpop.f32.mrb[82].mxu0  ;;  %10111 = vmatprep.mubr.msk.bf16.mxu1 %vm9086_vm1, %v12508_v43 }
 0x610   :  { %v8533_v4 = vpop.f32.mrb[187].mxu1  ;;  %v10309_v37 = vadd.f32 %v8212_v54, %v15197_v57  ;;  %v15695_v20 = vadd.f32 %v10308_v33, %v8530_v22  ;;  %v8214_v35 = vpop.f32.mrb[83].mxu0 }
 0x612   :  { %v15697_v41 = vadd.f32 %v10309_v37, %v8533_v4 }
 0x615   :  { %v10210_v51 = vpop.f32.mrb[188].mxu1  ;;  %v8217_v0 = vpop.f32.mrb[84].mxu0 }
 0x616   :  { %v8546_v62 = vpop.f32.mrb[189].mxu1  ;;  %v10310_v23 = vadd.f32 %v8217_v0, %v15210_v9  ;;  %v8219_v18 = vpop.f32.mrb[85].mxu0 }
 0x617   :  { %v10211_v58 = vpop.f32.mrb[190].mxu1  ;;  %v8220_v10 = vpop.f32.mrb[86].mxu0 }
 0x618   :  { %v8549_v50 = vpop.f32.mrb[191].mxu1  ;;  %v15703_v57 = vadd.f32 %v10310_v23, %v10206_v26  ;;  %v10311_v22 = vadd.f32 %v8220_v10, %v15215_v17  ;;  %v8222_v37 = vpop.f32.mrb[87].mxu0 }
 0x61a   :  { %v15707_v33 = vadd.f32 %v10311_v22, %v10207_v53 }
 0x61d   :  { %v10214_v46 = vpop.f32.mrb[192].mxu1  ;;  %v8225_v9 = vpop.f32.mrb[88].mxu0 }
 0x61e   :  { %v8562_v54 = vpop.f32.mrb[193].mxu1  ;;  %v10312_v4 = vadd.f32 %v8225_v9, %v15228_v32  ;;  %v8227_v35 = vpop.f32.mrb[89].mxu0 }
 0x61f   :  { %v10215_v0 = vpop.f32.mrb[194].mxu1  ;;  %v8228_v18 = vpop.f32.mrb[90].mxu0 }
 0x620   :  { %v8565_v1 = vpop.f32.mrb[195].mxu1  ;;  %v10313_v19 = vadd.f32 %v8228_v18, %v15233_v44  ;;  %v15711_v26 = vadd.f32 %v10312_v4, %v8546_v62  ;;  %v8230_v23 = vpop.f32.mrb[91].mxu0 }
 0x622   :  { %v15713_v17 = vadd.f32 %v10313_v19, %v8549_v50 }
 0x625   :  { %v10218_v10 = vpop.f32.mrb[196].mxu1  ;;  %v8233_v43 = vpop.f32.mrb[92].mxu0 }
 0x626   :  { %v8578_v53 = vpop.f32.mrb[197].mxu1  ;;  %v10314_v22 = vadd.f32 %v8233_v43, %v15246_v56  ;;  %v8235_v37 = vpop.f32.mrb[93].mxu0 }
 0x627   :  { %v10219_v27 = vpop.f32.mrb[198].mxu1  ;;  %v8236_v25 = vpop.f32.mrb[94].mxu0 }
 0x628   :  { %v8581_v32 = vpop.f32.mrb[199].mxu1  ;;  %v15716_v9 = vadd.f32 %v10314_v22, %v10210_v51  ;;  %v10315_v35 = vadd.f32 %v8236_v25, %v15251_v3  ;;  %v8238_v39 = vpop.f32.mrb[95].mxu0 }
 0x62a   :  { %v15719_v44 = vadd.f32 %v10315_v35, %v10211_v58  ;;  %v16111_v35 = vld [vmem:[#allocation4_spill] sm:$0xff] }
 0x62c   :  { %16108 = vst [vmem:[#allocation40_spill] sm:$0xff] %v15719_v44 }
 0x62d   :  { %v15721_v62 = vpop.f32.mrb[200].mxu1  ;;  %v8241_v19 = vpop.f32.mrb[96].mxu0 }
 0x62e   :  { %v8594_v50 = vpop.f32.mrb[201].mxu1  ;;  %v10316_v4 = vadd.f32 %v8241_v19, %v15264_v24  ;;  %v8243_v18 = vpop.f32.mrb[97].mxu0 }
 0x62f   :  { %v15724_v23 = vpop.f32.mrb[202].mxu1  ;;  %v8244_v56 = vpop.f32.mrb[98].mxu0 }
 0x630   :  { %v8597_v43 = vpop.f32.mrb[203].mxu1  ;;  %v10317_v37 = vadd.f32 %v8244_v56, %v15269_v36  ;;  %v15727_v51 = vadd.f32 %v10316_v4, %v8562_v54  ;;  %v8246_v22 = vpop.f32.mrb[99].mxu0  ;;  %v16113_v36 = vld [vmem:[#allocation5_spill] sm:$0xff] }
 0x632   :  { %16109 = vst [vmem:[#allocation41_spill] sm:$0xff] %v15727_v51  ;;  %v15729_v3 = vadd.f32 %v10317_v37, %v8565_v1 }
 0x634   :  { %16110 = vst [vmem:[#allocation42_spill] sm:$0xff] %v15729_v3  ;;  %v16116_v3 = vld [vmem:[#allocation6_spill] sm:$0xff] }
 0x635   :  { %v15731_v39 = vpop.f32.mrb[204].mxu1  ;;  %v8249_v25 = vpop.f32.mrb[100].mxu0 }
 0x636   :  { %v15733_v58 = vpop.f32.mrb[205].mxu1  ;;  %v10318_v38 = vadd.f32 %v8249_v25, %v16111_v35  ;;  %v8251_v24 = vpop.f32.mrb[101].mxu0 }
 0x637   :  { %v15736_v19 = vpop.f32.mrb[206].mxu1  ;;  %v8252_v18 = vpop.f32.mrb[102].mxu0 }
 0x638   :  { %v15738_v28 = vpop.f32.mrb[207].mxu1  ;;  %v15740_v15 = vadd.f32 %v10318_v38, %v10214_v46  ;;  %v10319_v54 = vadd.f32 %v8252_v18, %v16113_v36  ;;  %v8254_v4 = vpop.f32.mrb[103].mxu0  ;;  %v16118_v38 = vld [vmem:[#allocation7_spill] sm:$0xff] }
 0x63a   :  { %16112 = vst [vmem:[#allocation4_spill] sm:$0xff] %v15740_v15  ;;  %v15743_v1 = vadd.f32 %v10319_v54, %v10215_v0 }
 0x63c   :  { %16114 = vst [vmem:[#allocation5_spill] sm:$0xff] %v15743_v1  ;;  %v16120_v1 = vld [vmem:[#allocation8_spill] sm:$0xff] }
 0x63d   :  { %v15745_v56 = vpop.f32.mrb[208].mxu1  ;;  %v8257_v37 = vpop.f32.mrb[104].mxu0 }
 0x63e   :  { %16115 = vst [vmem:[#allocation43_spill] sm:$0xff] %v15745_v56  ;;  %v15747_v22 = vpop.f32.mrb[209].mxu1  ;;  %v10320_v25 = vadd.f32 %v8257_v37, %v16116_v3  ;;  %v8259_v35 = vpop.f32.mrb[105].mxu0 }
 0x63f   :  { %v15750_v24 = vpop.f32.mrb[210].mxu1  ;;  %v8260_v51 = vpop.f32.mrb[106].mxu0 }
 0x640   :  { %16117 = vst [vmem:[#allocation6_spill] sm:$0xff] %v15750_v24  ;;  %v15752_v52 = vpop.f32.mrb[211].mxu1  ;;  %v10321_v46 = vadd.f32 %v8260_v51, %v16118_v38  ;;  %v15755_v15 = vadd.f32 %v10320_v25, %v8578_v53  ;;  %v8262_v18 = vpop.f32.mrb[107].mxu0  ;;  %v16122_v51 = vld [vmem:[#allocation9_spill] sm:$0xff] }
 0x642   :  { %v15757_v0 = vadd.f32 %v10321_v46, %v8581_v32  ;;  %v15773_v46 = vstv %s16053_s0 }
 0x644   :  { %16119 = vst [vmem:[#allocation7_spill] sm:$0xff] %v15757_v0 }
 0x645   :  { %v15759_v36 = vpop.f32.mrb[212].mxu1  ;;  %v8265_v54 = vpop.f32.mrb[108].mxu0 }
 0x646   :  { %v15761_v4 = vpop.f32.mrb[213].mxu1  ;;  %v10322_v3 = vadd.f32 %v8265_v54, %v16120_v1  ;;  %v8267_v37 = vpop.f32.mrb[109].mxu0  ;;  %v16123_v1 = vmax.f32 %v15532_v6, %v15590_v7 }
 0x647   :  { %v15764_v35 = vpop.f32.mrb[214].mxu1  ;;  %v8268_v24 = vpop.f32.mrb[110].mxu0 }
 0x648   :  { %16121 = vst [vmem:[#allocation8_spill] sm:$0xff] %v15764_v35  ;;  %v15766_v56 = vpop.f32.mrb[215].mxu1  ;;  %v8587_v44 = vadd.f32 %v10322_v3, %v10218_v10  ;;  %v10323_v53 = vadd.f32 %v8268_v24, %v16122_v51  ;;  %v8270_v25 = vpop.f32.mrb[111].mxu0  ;;  %v16124_v24 = vmax.f32 %v15541_v61, %v15599_v31  ;;  %v8918_v61 = vld [vmem:[%s16054_s4] sm:$0xff]  ;;  %v8920_v31 = vld [vmem:[%s16054_s4 + $0x10] sm:$0xff] }
 0x649   :  { %v16126_v25 = vld [vmem:[#allocation11_spill] sm:$0xff]  ;;  %8936 = vperm.xlu0 %11349, %v8918_v61   ;;  %8946 = vperm.xlu1 %11350, %v8920_v31   ;;  %v8924_v31 = vld [vmem:[%s16054_s4 + $0x30] sm:$0xff] }
 0x64a   :  { %v8819_v32 = vmax.f32 %v15684_v45, %v8587_v44  ;;  %v8590_v38 = vadd.f32 %v10323_v53, %v10219_v27  ;;  %v16125_v45 = vld [vmem:[#allocation10_spill] sm:$0xff] }
 0x64c   :  { %v8837_v18 = vmax.f32 %v16123_v1, %v8819_v32  ;;  %v8820_v54 = vmax.f32 %v15689_v12, %v8590_v38  ;;  %v16127_v1 = vmax.f32 %v15526_v63, %v15611_v55  ;;  %v16129_v63 = vld [vmem:[#allocation12_spill] sm:$0xff] }
 0x64d   :  { %v8273_v37 = vpop.f32.mrb[112].mxu0 }
 0x64e   :  { %v8857_v10 = vadd.f32 %v15773_v46, %v8837_v18  ;;  %v8838_v3 = vmax.f32 %v16124_v24, %v8820_v54  ;;  %v10324_v27 = vadd.f32 %v8273_v37, %v16125_v45  ;;  %v8275_v44 = vpop.f32.mrb[113].mxu0  ;;  %v16128_v37 = vmax.f32 %v15535_v5, %v15621_v34  ;;  %v8922_v5 = vld [vmem:[%s16054_s4 + $0x20] sm:$0xff]  ;;  %v8923_v34 = vld [vmem:[%s16054_s4 + $0x28] sm:$0xff] }
 0x64f   :  { %v8276_v51 = vpop.f32.mrb[114].mxu0  ;;  %v16131_v44 = vld [vmem:[#allocation13_spill] sm:$0xff] }
 0x650   :  { %v8858_v53 = vadd.f32 %v15773_v46, %v8838_v3  ;;  %v10325_v0 = vadd.f32 %v8276_v51, %v16126_v25  ;;  %v8595_v35 = vadd.f32 %v10324_v27, %v8594_v50  ;;  %v8278_v6 = vpop.f32.mrb[115].mxu0  ;;  %v8875_v7 = vmax.f32 %v8857_v10, 0.0 }
 0x651   :  { %v16130_v3 = vmov 0  }
 0x652   :  { %v8876_v32 = vmax.f32 %v8858_v53, 0.0  ;;  %v8821_v12 = vmax.f32 %v15686_v14, %v8595_v35  ;;  %v8598_v38 = vadd.f32 %v10325_v0, %v8597_v43  ;;  %v8919_v14 = vld [vmem:[%s16054_s4 + $0x8] sm:$0xff]  ;;  %v8921_v0 = vld [vmem:[%s16054_s4 + $0x18] sm:$0xff] }
 0x653   :  { %8941 = vperm.xlu0 %11349, %v8919_v14   ;;  %8951 = vperm.xlu1 %11350, %v8921_v0  }
 0x654   :  { %v8839_v50 = vmax.f32 %v16127_v1, %v8821_v12  ;;  %v8822_v18 = vmax.f32 %v15691_v16, %v8598_v38  ;;  %v8909_v54 = vpack.c.bf16 %v8876_v32, %v8875_v7 }
 0x655   :  { %v8281_v43 = vpop.f32.mrb[116].mxu0 }
 0x656   :  { %v8859_v35 = vadd.f32 %v15773_v46, %v8839_v50  ;;  %v8840_v10 = vmax.f32 %v16128_v37, %v8822_v18  ;;  %v10326_v55 = vadd.f32 %v8281_v43, %v16129_v63  ;;  %v8283_v24 = vpop.f32.mrb[117].mxu0  ;;  %9112 = vmatpush1.bf16.msra.mxu1 %v8909_v54  ;;  %v16133_v50 = vmax.f32 %v15555_v8, %v15615_v60  ;;  %v16135_v43 = vld [vmem:[#allocation15_spill] sm:$0xff]  ;;  %v8926_v8 = vld [vmem:[%s16054_s4 + $0x40] sm:$0xff]  ;;  %v8927_v60 = vld [vmem:[%s16054_s4 + $0x48] sm:$0xff] }
 0x657   :  { %v8284_v16 = vpop.f32.mrb[118].mxu0  ;;  %9113 = vmatprep.subr.bf16.mxu1 %v16130_v3  ;;  %8956 = vperm.xlu0 %11349, %v8922_v5  }
 0x658   :  { %v8860_v45 = vadd.f32 %v15773_v46, %v8840_v10  ;;  %v8603_v27 = vadd.f32 %v10326_v55, %v15721_v62  ;;  %v10327_v51 = vadd.f32 %v8284_v16, %v16131_v44  ;;  %v8286_v53 = vpop.f32.mrb[119].mxu0  ;;  %v8877_v25 = vmax.f32 %v8859_v35, 0.0  ;;  %8961 = vperm.xlu1 %11350, %v8923_v34   ;;  %v8928_v44 = vld [vmem:[%s16054_s4 + $0x50] sm:$0xff] }
 0x659   :  { %v16132_v62 = vmax.f32 %v15548_v13, %v15607_v29  ;;  %v16134_v29 = vld [vmem:[#allocation14_spill] sm:$0xff]  ;;  %v16137_v53 = vmax.f32 %v15551_v42, %v15641_v47  ;;  %v8930_v42 = vld [vmem:[%s16054_s4 + $0x60] sm:$0xff]  ;;  %v8931_v47 = vld [vmem:[%s16054_s4 + $0x68] sm:$0xff] }
 0x65a   :  { %v8878_v6 = vmax.f32 %v8860_v45, 0.0  ;;  %v8823_v7 = vmax.f32 %v15695_v20, %v8603_v27  ;;  %v8606_v32 = vadd.f32 %v10327_v51, %v15724_v23  ;;  %v8925_v20 = vld [vmem:[%s16054_s4 + $0x38] sm:$0xff] }
 0x65b   :  { %8966 = vperm.xlu0 %11349, %v8924_v31  }
 0x65c   :  { %v8841_v12 = vmax.f32 %v16132_v62, %v8823_v7  ;;  %v8824_v38 = vmax.f32 %v15697_v41, %v8606_v32  ;;  %v8910_v61 = vpack.c.bf16 %v8878_v6, %v8877_v25  ;;  %8971 = vperm.xlu1 %11350, %v8925_v20   ;;  %v16139_v7 = vld [vmem:[#allocation17_spill] sm:$0xff] }
 0x65d   :  { %v8289_v1 = vpop.f32.mrb[120].mxu0 }
 0x65e   :  { %v8861_v23 = vadd.f32 %v15773_v46, %v8841_v12  ;;  %v8842_v13 = vmax.f32 %v16133_v50, %v8824_v38  ;;  %v10328_v18 = vadd.f32 %v8289_v1, %v16134_v29  ;;  %v8291_v41 = vpop.f32.mrb[121].mxu0  ;;  %9114 = vmatpush1.bf16.msra.mxu1 %v8910_v61  ;;  %v8932_v50 = vld [vmem:[%s16054_s4 + $0x70] sm:$0xff]  ;;  %v16141_v29 = vmax.f32 %v15573_v11, %v15635_v2 }
 0x65f   :  { %v8292_v54 = vpop.f32.mrb[122].mxu0  ;;  %9115 = vmatprep.subr.bf16.mxu1 %v16130_v3  ;;  %8976 = vperm.xlu0 %11349, %v8926_v8  }
 0x660   :  { %v8862_v14 = vadd.f32 %v15773_v46, %v8842_v13  ;;  %v10329_v0 = vadd.f32 %v8292_v54, %v16135_v43  ;;  %v8611_v35 = vadd.f32 %v10328_v18, %v15733_v58  ;;  %v8294_v37 = vpop.f32.mrb[123].mxu0  ;;  %v8879_v10 = vmax.f32 %v8861_v23, 0.0  ;;  %8981 = vperm.xlu1 %11350, %v8927_v60  }
 0x661   :  { %v16136_v58 = vmax.f32 %v15544_v59, %v15631_v40  ;;  %v16138_v40 = vld [vmem:[#allocation16_spill] sm:$0xff]  ;;  %v16144_v60 = vmax.f32 %v15558_v48, %v15650_v21 }
 0x662   :  { %v8880_v63 = vmax.f32 %v8862_v14, 0.0  ;;  %v8825_v55 = vmax.f32 %v15703_v57, %v8611_v35  ;;  %v8614_v24 = vadd.f32 %v10329_v0, %v15738_v28  ;;  %v8929_v57 = vld [vmem:[%s16054_s4 + $0x58] sm:$0xff] }
 0x663   :  { %8986 = vperm.xlu0 %11349, %v8928_v44   ;;  %v16143_v14 = vld [vmem:[#allocation19_spill] sm:$0xff] }
 0x664   :  { %v8843_v16 = vmax.f32 %v16136_v58, %v8825_v55  ;;  %v8826_v45 = vmax.f32 %v15707_v33, %v8614_v24  ;;  %v8911_v27 = vpack.c.bf16 %v8880_v63, %v8879_v10  ;;  %8991 = vperm.xlu1 %11350, %v8929_v57   ;;  %v16145_v63 = vld [vmem:[#allocation40_spill] sm:$0xff] }
 0x665   :  { %v8297_v51 = vpop.f32.mrb[124].mxu0 }
 0x666   :  { %v8863_v28 = vadd.f32 %v15773_v46, %v8843_v16  ;;  %v8844_v59 = vmax.f32 %v16137_v53, %v8826_v45  ;;  %v10330_v5 = vadd.f32 %v8297_v51, %v16138_v40  ;;  %v8299_v33 = vpop.f32.mrb[125].mxu0  ;;  %9116 = vmatpush1.bf16.msra.mxu1 %v8911_v27  ;;  %v16146_v45 = vld [vmem:[#allocation26_spill] sm:$0xff]  ;;  %v16149_v51 = vld [vmem:[#allocation20_spill] sm:$0xff]  ;;  %v16151_v53 = vld [vmem:[#allocation21_spill] sm:$0xff] }
 0x667   :  { %v8300_v34 = vpop.f32.mrb[126].mxu0  ;;  %9117 = vmatprep.subr.bf16.mxu1 %v16130_v3  ;;  %8996 = vperm.xlu0 %11349, %v8930_v42  }
 0x668   :  { %v8864_v25 = vadd.f32 %v15773_v46, %v8844_v59  ;;  %v8619_v6 = vadd.f32 %v10330_v5, %v15731_v39  ;;  %v10331_v32 = vadd.f32 %v8300_v34, %v16139_v7  ;;  %v8302_v62 = vpop.f32.mrb[127].mxu0  ;;  %v8881_v12 = vmax.f32 %v8863_v28, 0.0  ;;  %9001 = vperm.xlu1 %11350, %v8931_v47   ;;  %v16152_v34 = vld [vmem:[#allocation41_spill] sm:$0xff] }
 0x669   :  { %v16140_v39 = vmax.f32 %v15564_v30, %v15627_v49  ;;  %v16142_v49 = vld [vmem:[#allocation18_spill] sm:$0xff]  ;;  %v16155_v62 = vld [vmem:[#allocation33_spill] sm:$0xff] }
 0x66a   :  { %v8882_v38 = vmax.f32 %v8864_v25, 0.0  ;;  %v8827_v61 = vmax.f32 %v15711_v26, %v8619_v6  ;;  %v8622_v31 = vadd.f32 %v10331_v32, %v15736_v19  ;;  %v8933_v26 = vld [vmem:[%s16054_s4 + $0x78] sm:$0xff]  ;;  %v16153_v6 = vld [vmem:[#allocation6_spill] sm:$0xff]  ;;  %v16154_v32 = vld [vmem:[#allocation28_spill] sm:$0xff] }
 0x66b   :  { %9006 = vperm.xlu0 %11349, %v8932_v50   ;;  %v16156_v42 = vmax.f32 %v16154_v32, %v16155_v62 }
 0x66c   :  { %v8845_v1 = vmax.f32 %v16140_v39, %v8827_v61  ;;  %v8828_v20 = vmax.f32 %v15713_v17, %v8622_v31  ;;  %v8912_v23 = vpack.c.bf16 %v8882_v38, %v8881_v12  ;;  %9011 = vperm.xlu1 %11350, %v8933_v26   ;;  %v16157_v12 = vld [vmem:[#allocation42_spill] sm:$0xff] }
 0x66d   :  { %v8305_v13 = vpop.f32.mrb[128].mxu0 }
 0x66e   :  { %v8865_v19 = vadd.f32 %v15773_v46, %v8845_v1  ;;  %v8846_v30 = vmax.f32 %v16141_v29, %v8828_v20  ;;  %v10332_v18 = vadd.f32 %v8305_v13, %v16142_v49  ;;  %v8307_v17 = vpop.f32.mrb[129].mxu0  ;;  %9118 = vmatpush1.bf16.msra.mxu1 %v8912_v23  ;;  %v16158_v1 = vld [vmem:[#allocation30_spill] sm:$0xff]  ;;  %v16162_v49 = vld [vmem:[#allocation23_spill] sm:$0xff] }
 0x66f   :  { %v8308_v41 = vpop.f32.mrb[130].mxu0  ;;  %9119 = vmatprep.subr.bf16.mxu1 %v16130_v3  ;;  %v16159_v20 = vld [vmem:[#allocation34_spill] sm:$0xff] }
 0x670   :  { %v8866_v54 = vadd.f32 %v15773_v46, %v8846_v30  ;;  %v10333_v43 = vadd.f32 %v8308_v41, %v16143_v14  ;;  %v8627_v0 = vadd.f32 %v10332_v18, %v15747_v22  ;;  %v8310_v35 = vpop.f32.mrb[131].mxu0  ;;  %v8883_v37 = vmax.f32 %v8865_v19, 0.0  ;;  %v16147_v22 = vld [vmem:[#allocation35_spill] sm:$0xff]  ;;  %v16161_v13 = vld [vmem:[#allocation22_spill] sm:$0xff] }
 0x671   :  { %v16148_v27 = vmax.f32 %v16146_v45, %v16147_v22  ;;  %v16160_v23 = vmax.f32 %v16158_v1, %v16159_v20  ;;  %v16171_v22 = vld [vmem:[#allocation24_spill] sm:$0xff]  ;;  %v12509_v1 = vld [vmem:[%s16052_s3 + $0x14] ss:$8 sps:$4 sm:$0xff]  }
 0x672   :  { %v8884_v8 = vmax.f32 %v8866_v54, 0.0  ;;  %v8829_v11 = vmax.f32 %v15716_v9, %v8627_v0  ;;  %v8630_v2 = vadd.f32 %v10333_v43, %v15752_v52  ;;  %v16150_v52 = vld [vmem:[#allocation43_spill] sm:$0xff]  ;;  %v16163_v43 = vld [vmem:[#allocation4_spill] sm:$0xff] }
 0x673   :  { %v12514_v20 = vld [vmem:[%s16052_s3 + $0x20] ss:$8 sps:$4 sm:$0xff]  }
 0x674   :  { %v8847_v10 = vmax.f32 %v16144_v60, %v8829_v11  ;;  %v8830_v55 = vmax.f32 %v16145_v63, %v8630_v2  ;;  %v8913_v24 = vpack.c.bf16 %v8884_v8, %v8883_v37  ;;  %v16164_v37 = vld [vmem:[#allocation27_spill] sm:$0xff]  ;;  %v16165_v8 = vld [vmem:[#allocation37_spill] sm:$0xff] }
 0x675   :  { %v8313_v58 = vpop.f32.mrb[132].mxu0  ;;  %v16166_v11 = vmax.f32 %v16164_v37, %v16165_v8  ;;  %v16167_v60 = vld [vmem:[#allocation5_spill] sm:$0xff] }
 0x676   :  { %v8867_v16 = vadd.f32 %v15773_v46, %v8847_v10  ;;  %v8848_v44 = vmax.f32 %v16148_v27, %v8830_v55  ;;  %v10334_v57 = vadd.f32 %v8313_v58, %v16149_v51  ;;  %v8315_v28 = vpop.f32.mrb[133].mxu0  ;;  %9120 = vmatpush1.bf16.msra.mxu1 %v8913_v24  ;;  %v16168_v58 = vld [vmem:[#allocation29_spill] sm:$0xff] }
 0x677   :  { %v8316_v9 = vpop.f32.mrb[134].mxu0  ;;  %9121 = vmatprep.subr.bf16.mxu1 %v16130_v3  ;;  %v16172_v28 = vld [vmem:[#allocation25_spill] sm:$0xff] }
 0x678   :  { %v8868_v48 = vadd.f32 %v15773_v46, %v8848_v44  ;;  %v8635_v21 = vadd.f32 %v10334_v57, %v16150_v52  ;;  %v10335_v59 = vadd.f32 %v8316_v9, %v16151_v53  ;;  %v8318_v40 = vpop.f32.mrb[135].mxu0  ;;  %v8885_v5 = vmax.f32 %v8867_v16, 0.0  ;;  %v16169_v16 = vld [vmem:[#allocation39_spill] sm:$0xff] }
 0x67a   :  { %v8886_v33 = vmax.f32 %v8868_v48, 0.0  ;;  %v8831_v25 = vmax.f32 %v16152_v34, %v8635_v21  ;;  %v8638_v7 = vadd.f32 %v10335_v59, %v16153_v6  ;;  %v16173_v59 = vld [vmem:[#allocation8_spill] sm:$0xff]  ;;  %v16177_v6 = vld [vmem:[#allocation7_spill] sm:$0xff] }
 0x67c   :  { %v8849_v47 = vmax.f32 %v16156_v42, %v8831_v25  ;;  %v8832_v38 = vmax.f32 %v16157_v12, %v8638_v7  ;;  %v8914_v61 = vpack.c.bf16 %v8886_v33, %v8885_v5  ;;  %v16174_v5 = vld [vmem:[#allocation31_spill] sm:$0xff]  ;;  %v16175_v33 = vld [vmem:[#allocation36_spill] sm:$0xff] }
 0x67d   :  { %v8321_v31 = vpop.f32.mrb[136].mxu0  ;;  %v16176_v34 = vmax.f32 %v16174_v5, %v16175_v33  ;;  %v16178_v42 = vld [vmem:[#allocation32_spill] sm:$0xff] }
 0x67e   :  { %v8869_v39 = vadd.f32 %v15773_v46, %v8849_v47  ;;  %v8850_v50 = vmax.f32 %v16160_v23, %v8832_v38  ;;  %v10336_v26 = vadd.f32 %v8321_v31, %v16161_v13  ;;  %v8323_v19 = vpop.f32.mrb[137].mxu0  ;;  %9122 = vmatpush1.bf16.msra.mxu1 %v8914_v61  ;;  %v12515_v23 = vld [vmem:[%s16052_s3 + $0x34] ss:$8 sps:$4 sm:$0xff]   ;;  %v12518_v13 = vld [vmem:[%s16052_s3 + $0x44] ss:$8 sps:$4 sm:$0xff]  }
 0x67f   :  { %v8324_v29 = vpop.f32.mrb[138].mxu0  ;;  %9123 = vmatprep.subr.bf16.mxu1 %v16130_v3  ;;  %v12521_v19 = vld [vmem:[%s16052_s3 + $0x54] ss:$8 sps:$4 sm:$0xff]  }
 0x680   :  { %v8870_v30 = vadd.f32 %v15773_v46, %v8850_v50  ;;  %v10337_v18 = vadd.f32 %v8324_v29, %v16162_v49  ;;  %v8643_v17 = vadd.f32 %v10336_v26, %v15761_v4  ;;  %v8326_v41 = vpop.f32.mrb[139].mxu0  ;;  %v8887_v54 = vmax.f32 %v8869_v39, 0.0  ;;  %v12506_v39 = vld [vmem:[%s16052_s3] ss:$8 sps:$4 sm:$0xff]   ;;  %v12517_v50 = vld [vmem:[%s16052_s3 + $0x30] ss:$8 sps:$4 sm:$0xff]  }
 0x681   :  { %v16170_v4 = vmax.f32 %v16168_v58, %v16169_v16  ;;  %v12520_v26 = vld [vmem:[%s16052_s3 + $0x40] ss:$8 sps:$4 sm:$0xff]   ;;  %v12523_v29 = vld [vmem:[%s16052_s3 + $0x50] ss:$8 sps:$4 sm:$0xff]  }
 0x682   :  { %v8888_v14 = vmax.f32 %v8870_v30, 0.0  ;;  %v8833_v0 = vmax.f32 %v16163_v43, %v8643_v17  ;;  %v8646_v35 = vadd.f32 %v10337_v18, %v15766_v56  ;;  %v12524_v30 = vld [vmem:[%s16052_s3 + $0x64] ss:$8 sps:$4 sm:$0xff]   ;;  %v12526_v49 = vld [vmem:[%s16052_s3 + $0x60] ss:$8 sps:$4 sm:$0xff]  }
 0x683   :  { %v12527_v18 = vld [vmem:[%s16052_s3 + $0x74] ss:$8 sps:$4 sm:$0xff]   ;;  %v12529_v17 = vld [vmem:[%s16052_s3 + $0x70] ss:$8 sps:$4 sm:$0xff]  }
 0x684   :  { %v8851_v2 = vmax.f32 %v16166_v11, %v8833_v0  ;;  %v8834_v10 = vmax.f32 %v16167_v60, %v8646_v35  ;;  %v8915_v63 = vpack.c.bf16 %v8888_v14, %v8887_v54 }
 0x685   :  { %v8329_v55 = vpop.f32.mrb[140].mxu0 }
 0x686   :  { %v8871_v24 = vadd.f32 %v15773_v46, %v8851_v2  ;;  %v8852_v45 = vmax.f32 %v16170_v4, %v8834_v10  ;;  %v10338_v27 = vadd.f32 %v8329_v55, %v16171_v22  ;;  %v8331_v44 = vpop.f32.mrb[141].mxu0  ;;  %9124 = vmatpush1.bf16.msra.mxu1 %v8915_v63 }
 0x687   :  { %v8332_v51 = vpop.f32.mrb[142].mxu0  ;;  %9125 = vmatprep.subr.bf16.mxu1 %v16130_v3 }
 0x688   :  { %v8872_v56 = vadd.f32 %v15773_v46, %v8852_v45  ;;  %v8651_v57 = vadd.f32 %v10338_v27, %v15759_v36  ;;  %v10339_v9 = vadd.f32 %v8332_v51, %v16172_v28  ;;  %v8334_v48 = vpop.f32.mrb[143].mxu0  ;;  %v8889_v52 = vmax.f32 %v8871_v24, 0.0  ;;  %v16179_v36 = vld [vmem:[#allocation38_spill] sm:$0xff] }
 0x689   :  { %v16180_v47 = vmax.f32 %v16178_v42, %v16179_v36 }
 0x68a   :  { %v8890_v21 = vmax.f32 %v8872_v56, 0.0  ;;  %v8835_v53 = vmax.f32 %v15755_v15, %v8651_v57  ;;  %v8654_v40 = vadd.f32 %v10339_v9, %v16173_v59 }
 0x68c   :  { %v8853_v25 = vmax.f32 %v16176_v34, %v8835_v53  ;;  %v8836_v7 = vmax.f32 %v16177_v6, %v8654_v40  ;;  %v8916_v32 = vpack.c.bf16 %v8890_v21, %v8889_v52 }
 0x68e   :  { %v8873_v62 = vadd.f32 %v15773_v46, %v8853_v25  ;;  %v8854_v12 = vmax.f32 %v16180_v47, %v8836_v7  ;;  %9126 = vmatpush1.bf16.msra.mxu1 %v8916_v32 }
 0x68f   :  { %9127 = vmatprep.subr.bf16.mxu1 %v16130_v3  ;;  %v12511_v3 = vld [vmem:[%s16052_s3 + $0x10] ss:$8 sps:$4 sm:$0xff]  }
 0x690   :  { %v8874_v15 = vadd.f32 %v15773_v46, %v8854_v12  ;;  %v8891_v38 = vmax.f32 %v8873_v62, 0.0  ;;  %v12512_v46 = vld [vmem:[%s16052_s3 + $0x24] ss:$8 sps:$4 sm:$0xff]  }
 0x692   :  { %v8892_v61 = vmax.f32 %v8874_v15, 0.0 }
 0x694   :  { %v8917_v31 = vpack.c.bf16 %v8892_v61, %v8891_v38 }
 0x696   :  { %9128 = vmatpush1.bf16.msra.mxu1 %v8917_v31 }
 0x699   :  { %9144 = vmatmul.mubr.bf16.vlgmr.msra.gmra.mrb[216].mxu1 %v12506_v39 }
 0x69a   :  { %10112 = vmatprep.mubr.msk.bf16.mxu1 %vm9086_vm1, %v12509_v1 }
 0x6a1   :  { %9152 = vmatmul.mubr.bf16.gmra.mrb[220].mxu1 %v12511_v3 }
 0x6a2   :  { %10113 = vmatprep.mubr.msk.bf16.mxu1 %vm9086_vm1, %v12512_v46 }
 0x6a9   :  { %9160 = vmatmul.mubr.bf16.gmra.mrb[224].mxu1 %v12514_v20 }
 0x6aa   :  { %10114 = vmatprep.mubr.msk.bf16.mxu1 %vm9086_vm1, %v12515_v23 }
 0x6b1   :  { %9168 = vmatmul.mubr.bf16.gmra.mrb[228].mxu1 %v12517_v50 }
 0x6b2   :  { %10115 = vmatprep.mubr.msk.bf16.mxu1 %vm9086_vm1, %v12518_v13 }
 0x6b9   :  { %9176 = vmatmul.mubr.bf16.gmra.mrb[232].mxu1 %v12520_v26 }
 0x6ba   :  { %10116 = vmatprep.mubr.msk.bf16.mxu1 %vm9086_vm1, %v12521_v19 }
 0x6c1   :  { %9184 = vmatmul.mubr.bf16.gmra.mrb[236].mxu1 %v12523_v29 }
 0x6c2   :  { %10117 = vmatprep.mubr.msk.bf16.mxu1 %vm9086_vm1, %v12524_v30 }
 0x6c8   :  { %v8937_v41 = vpop.permute.xlu0 %8936  ;;  %v8947_v11 = vpop.permute.xlu1 %8946 }
 0x6c9   :  { %9192 = vmatmul.mubr.bf16.gmra.mrb[240].mxu1 %v12526_v49 }
 0x6ca   :  { %10118 = vmatprep.mubr.msk.bf16.mxu1 %vm9086_vm1, %v12527_v18 }
 0x6d1   :  { %9200 = vmatmul.mubr.bf16.gmra.mrb[244].mxu1 %v12529_v17 }
 0x6d2   :  { %v8942_v14 = vpop.permute.xlu0 %8941  ;;  %v8952_v63 = vpop.permute.xlu1 %8951 }
 0x6d6   :  { %v8957_v4 = vpop.permute.xlu0 %8956 }
 0x6d7   :  { %v8962_v27 = vpop.permute.xlu1 %8961 }
 0x6da   :  { %v8967_v28 = vpop.permute.xlu0 %8966 }
 0x6db   :  { %v8972_v52 = vpop.permute.xlu1 %8971 }
 0x6de   :  { %v8977_v5 = vpop.permute.xlu0 %8976 }
 0x6df   :  { %v8982_v25 = vpop.permute.xlu1 %8981 }
 0x6e2   :  { %v8987_v42 = vpop.permute.xlu0 %8986 }
 0x6e3   :  { %v8992_v12 = vpop.permute.xlu1 %8991 }
 0x6e6   :  { %v8997_v39 = vpop.permute.xlu0 %8996 }
 0x6e7   :  { %v9002_v46 = vpop.permute.xlu1 %9001 }
 0x6ea   :  { %v9007_v26 = vpop.permute.xlu0 %9006 }
 0x6eb   :  { %v9012_v30 = vpop.permute.xlu1 %9011 }
 0x76c   :  { %v9145_v54 = vpop.f32.mrb[216].mxu1 }
 0x76d   :  { %v9146_v43 = vadd.f32 %v9145_v54, %v8937_v41  ;;  %v9147_v0 = vpop.f32.mrb[217].mxu1 }
 0x76e   :  { %v9148_v35 = vpop.f32.mrb[218].mxu1 }
 0x76f   :  { %9208 = vst [vmem:[%s16055_s5] sm:$0xff] %v9146_v43  ;;  %v9149_v37 = vadd.f32 %v9148_v35, %v8942_v14  ;;  %v9150_v8 = vpop.f32.mrb[219].mxu1 }
 0x771   :  { %9209 = vst [vmem:[%s16055_s5 + $0x8] sm:$0xff] %v9149_v37 }
 0x774   :  { %v9153_v2 = vpop.f32.mrb[220].mxu1 }
 0x775   :  { %v9154_v60 = vadd.f32 %v9153_v2, %v8947_v11  ;;  %v9155_v10 = vpop.f32.mrb[221].mxu1 }
 0x776   :  { %v9156_v55 = vpop.f32.mrb[222].mxu1 }
 0x777   :  { %9210 = vst [vmem:[%s16055_s5 + $0x10] sm:$0xff] %v9154_v60  ;;  %v9157_v24 = vadd.f32 %v9156_v55, %v8952_v63  ;;  %v9158_v58 = vpop.f32.mrb[223].mxu1 }
 0x779   :  { %9211 = vst [vmem:[%s16055_s5 + $0x18] sm:$0xff] %v9157_v24 }
 0x77c   :  { %v9161_v16 = vpop.f32.mrb[224].mxu1 }
 0x77d   :  { %v9163_v45 = vpop.f32.mrb[225].mxu1  ;;  %v9162_v22 = vadd.f32 %v9161_v16, %v8957_v4 }
 0x77e   :  { %v9164_v44 = vpop.f32.mrb[226].mxu1 }
 0x77f   :  { %9212 = vst [vmem:[%s16055_s5 + $0x20] sm:$0xff] %v9162_v22  ;;  %v9165_v51 = vadd.f32 %v9164_v44, %v8962_v27  ;;  %v9166_v56 = vpop.f32.mrb[227].mxu1 }
 0x781   :  { %9213 = vst [vmem:[%s16055_s5 + $0x28] sm:$0xff] %v9165_v51 }
 0x784   :  { %v9169_v57 = vpop.f32.mrb[228].mxu1 }
 0x785   :  { %v9171_v9 = vpop.f32.mrb[229].mxu1  ;;  %v9170_v48 = vadd.f32 %v9169_v57, %v8967_v28 }
 0x786   :  { %v9172_v21 = vpop.f32.mrb[230].mxu1 }
 0x787   :  { %9214 = vst [vmem:[%s16055_s5 + $0x30] sm:$0xff] %v9170_v48  ;;  %v9173_v53 = vadd.f32 %v9172_v21, %v8972_v52  ;;  %v9174_v59 = vpop.f32.mrb[231].mxu1 }
 0x789   :  { %9215 = vst [vmem:[%s16055_s5 + $0x38] sm:$0xff] %v9173_v53 }
 0x78c   :  { %v9177_v40 = vpop.f32.mrb[232].mxu1 }
 0x78d   :  { %v9179_v33 = vpop.f32.mrb[233].mxu1  ;;  %v9178_v34 = vadd.f32 %v9177_v40, %v8977_v5 }
 0x78e   :  { %v9180_v6 = vpop.f32.mrb[234].mxu1 }
 0x78f   :  { %9216 = vst [vmem:[%s16055_s5 + $0x40] sm:$0xff] %v9178_v34  ;;  %v9181_v7 = vadd.f32 %v9180_v6, %v8982_v25  ;;  %v9182_v32 = vpop.f32.mrb[235].mxu1 }
 0x791   :  { %9217 = vst [vmem:[%s16055_s5 + $0x48] sm:$0xff] %v9181_v7 }
 0x794   :  { %v9185_v62 = vpop.f32.mrb[236].mxu1 }
 0x795   :  { %v9187_v36 = vpop.f32.mrb[237].mxu1  ;;  %v9186_v47 = vadd.f32 %v9185_v62, %v8987_v42 }
 0x796   :  { %v9188_v15 = vpop.f32.mrb[238].mxu1 }
 0x797   :  { %9218 = vst [vmem:[%s16055_s5 + $0x50] sm:$0xff] %v9186_v47  ;;  %v9189_v38 = vadd.f32 %v9188_v15, %v8992_v12  ;;  %v9190_v61 = vpop.f32.mrb[239].mxu1 }
 0x799   :  { %9219 = vst [vmem:[%s16055_s5 + $0x58] sm:$0xff] %v9189_v38 }
 0x79c   :  { %v9193_v31 = vpop.f32.mrb[240].mxu1 }
 0x79d   :  { %v9195_v1 = vpop.f32.mrb[241].mxu1  ;;  %v9194_v3 = vadd.f32 %v9193_v31, %v8997_v39 }
 0x79e   :  { %v9196_v20 = vpop.f32.mrb[242].mxu1 }
 0x79f   :  { %9220 = vst [vmem:[%s16055_s5 + $0x60] sm:$0xff] %v9194_v3  ;;  %v9197_v23 = vadd.f32 %v9196_v20, %v9002_v46  ;;  %v9198_v50 = vpop.f32.mrb[243].mxu1 }
 0x7a1   :  { %9221 = vst [vmem:[%s16055_s5 + $0x68] sm:$0xff] %v9197_v23 }
 0x7a4   :  { %v9201_v13 = vpop.f32.mrb[244].mxu1 }
 0x7a5   :  { %v9203_v19 = vpop.f32.mrb[245].mxu1  ;;  %v9202_v29 = vadd.f32 %v9201_v13, %v9007_v26 }
 0x7a6   :  { %v9204_v49 = vpop.f32.mrb[246].mxu1 }
 0x7a7   :  { %9222 = vst [vmem:[%s16055_s5 + $0x70] sm:$0xff] %v9202_v29  ;;  %v9205_v18 = vadd.f32 %v9204_v49, %v9012_v30  ;;  %v9206_v17 = vpop.f32.mrb[247].mxu1 }
 0x7a9   :  { %9223 = vst [vmem:[%s16055_s5 + $0x78] sm:$0xff] %v9205_v18 }

</bundles_post_ra>
